<compile_context>
chip_gen: v7x
topology: tpu7x:2x2x1
jax: 0.10.0
libtpu: 0.0.40
codegen_flags: <defaults>
</compile_context>

<pallas_src>
import functools

import jax
import jax.numpy as jnp
from jax.experimental import pallas as pl
from jax.experimental.pallas import tpu as pltpu

_BN_EPS = 1e-5
_LANE = 128
_SUBLANE = 8
_LATENT_IDX = 3  # encoder output is produced by layer index 3 of the fused 8-layer stack
_RELU_FLAGS = (True, True, True, False, True, True, True, False)


def _round_up(n, m):
    return ((n + m - 1) // m) * m


# ----------------------------------------------------------------------------
# Fused Pallas kernel: full encoder + decoder for one batch tile.
#   refs = (x_tile, w0..w7 (bf16, BN-scale folded), shifts (8, NMAXP) f32, z_out, xhat_out)
# Each layer:  y = relu?( (h_bf16 @ W_bf16) + shift )   (f32 MXU accumulation + f32 epilogue)
# ----------------------------------------------------------------------------
def _ae_fused_kernel(*refs, relu_flags, latent_idx, out_widths):
    n_layers = len(relu_flags)
    x_ref = refs[0]
    w_refs = refs[1 : 1 + n_layers]
    shifts_ref = refs[1 + n_layers]
    z_ref = refs[2 + n_layers]
    o_ref = refs[3 + n_layers]

    h = x_ref[...]  # bf16 (Tm, Dp0)
    for li in range(n_layers):
        npad = out_widths[li]
        w = w_refs[li][...]  # bf16, fed directly to the MXU (no f32 cast)
        y = jnp.dot(h.astype(jnp.bfloat16), w, preferred_element_type=jnp.float32)
        y = y + shifts_ref[li : li + 1, :npad]  # folded-BN shift, f32 epilogue
        if relu_flags[li]:
            y = jnp.maximum(y, 0.0)
        if li == latent_idx:
            z_ref[...] = y.astype(z_ref.dtype)
        h = y
    o_ref[...] = h.astype(o_ref.dtype)


# ----------------------------------------------------------------------------
# Parameter construction (deterministic, synthetic).  f32 master weights.
# ----------------------------------------------------------------------------
def _make_linear(key, n_in, n_out):
    bound = 1.0 / jnp.sqrt(jnp.float32(n_in))
    return jax.random.uniform(key, (n_in, n_out), jnp.float32, -bound, bound)


def _make_bn(key, n_out):
    k1, k2, k3, k4 = jax.random.split(key, 4)
    gamma = 1.0 + 0.1 * jax.random.normal(k1, (n_out,), jnp.float32)
    beta = 0.1 * jax.random.normal(k2, (n_out,), jnp.float32)
    running_mean = 0.1 * jax.random.normal(k3, (n_out,), jnp.float32)
    running_var = 1.0 + 0.1 * jax.random.uniform(k4, (n_out,), jnp.float32)
    scale = gamma / jnp.sqrt(running_var + _BN_EPS)  # eval-mode BN folded
    shift = beta - running_mean * scale
    return scale, shift


def make_autoencoder_params(key, n_in, n_latent=512):
    """Flat list of 8 layers: (w_f32 (K,N), scale (N,), shift (N,), relu_flag)."""
    keys = jax.random.split(key, 16)
    ident = lambda n: (jnp.ones((n,), jnp.float32), jnp.zeros((n,), jnp.float32))
    layers = [
        # Encoder: n_in->1024, 1024->512, 512->512 (BN+ReLU), 512->n_latent (plain linear)
        (_make_linear(keys[0], n_in, 1024), *_make_bn(keys[1], 1024), True),
        (_make_linear(keys[2], 1024, 512), *_make_bn(keys[3], 512), True),
        (_make_linear(keys[4], 512, 512), *_make_bn(keys[5], 512), True),
        (_make_linear(keys[6], 512, n_latent), *ident(n_latent), False),
        # Decoder: n_latent->512, 512->512, 512->1024 (BN+ReLU), 1024->n_in (plain linear)
        (_make_linear(keys[7], n_latent, 512), *_make_bn(keys[8], 512), True),
        (_make_linear(keys[9], 512, 512), *_make_bn(keys[10], 512), True),
        (_make_linear(keys[11], 512, 1024), *_make_bn(keys[12], 1024), True),
        (_make_linear(keys[13], 1024, n_in), *ident(n_in), False),
    ]
    return layers


def prepare_fused_params(layers):
    """Fold BN scale into weights (then cast bf16), zero-pad to lane multiples, and pack
    all 8 shift vectors into a single (8, NMAXP) f32 array (one DMA instead of 16)."""
    dims = [layers[0][0].shape[0]] + [w.shape[1] for (w, _, _, _) in layers]
    pdims = [_round_up(d, _LANE) for d in dims]
    nmaxp = max(pdims[1:])

    wpads = []
    shifts = jnp.zeros((len(layers), nmaxp), jnp.float32)
    for li, (w, scale, shift, _relu) in enumerate(layers):
        K, N = w.shape
        Kp, Np = pdims[li], pdims[li + 1]
        w_folded = w * scale[None, :]  # fold BN scale into weight columns (f32), then bf16
        wp = jnp.zeros((Kp, Np), jnp.bfloat16).at[:K, :N].set(w_folded.astype(jnp.bfloat16))
        wpads.append(wp)
        shifts = shifts.at[li, :N].set(shift)
    return wpads, shifts, tuple(dims), tuple(pdims)


# ----------------------------------------------------------------------------
# Forward pass (single fused pallas_call, 1-D batch grid, resident weights).
# ----------------------------------------------------------------------------
def autoencoder_forward(prepped, x, *, tile_m=256):
    wpads, shifts, dims, pdims = prepped
    n_layers = len(wpads)
    M, n_in = x.shape
    assert n_in == dims[0]
    n_latent = dims[_LATENT_IDX + 1]
    n_out = dims[-1]

    Tm = min(tile_m, _round_up(M, _SUBLANE))
    Mp = _round_up(M, Tm)
    d0p = pdims[0]
    zp_w = pdims[_LATENT_IDX + 1]
    op_w = pdims[-1]

    # Input streamed in bf16 (halves activation DMA; first matmul consumes bf16 anyway).
    xp = jnp.zeros((Mp, d0p), jnp.bfloat16).at[:M, :n_in].set(x.astype(jnp.bfloat16))

    kernel = functools.partial(
        _ae_fused_kernel,
        relu_flags=_RELU_FLAGS,
        latent_idx=_LATENT_IDX,
        out_widths=tuple(pdims[1:]),
    )

    grid = (Mp // Tm,)
    in_specs = [pl.BlockSpec((Tm, d0p), lambda i: (i, 0))]            # x: tiled over batch
    in_specs += [pl.BlockSpec(w.shape, lambda i: (0, 0)) for w in wpads]  # weights resident
    in_specs += [pl.BlockSpec(shifts.shape, lambda i: (0, 0))]        # packed shifts resident
    out_specs = (
        pl.BlockSpec((Tm, zp_w), lambda i: (i, 0)),
        pl.BlockSpec((Tm, op_w), lambda i: (i, 0)),
    )

    flops = 2 * Mp * sum(pdims[i] * pdims[i + 1] for i in range(n_layers))
    bytes_accessed = sum(int(w.size) * w.dtype.itemsize for w in wpads)
    bytes_accessed += int(shifts.size) * 4 + int(xp.size) * 2
    bytes_accessed += Mp * (zp_w + op_w) * 4

    z_p, xhat_p = pl.pallas_call(
        kernel,
        out_shape=(
            jax.ShapeDtypeStruct((Mp, zp_w), jnp.float32),
            jax.ShapeDtypeStruct((Mp, op_w), jnp.float32),
        ),
        grid=grid,
        in_specs=in_specs,
        out_specs=out_specs,
        compiler_params=pltpu.CompilerParams(
            dimension_semantics=("parallel",),       # megacore-shard batch tiles on v7x
            vmem_limit_bytes=32 * 1024 * 1024,       # conservative: fits v7x scoped default
        ),
        cost_estimate=pl.CostEstimate(
            flops=flops, transcendentals=0, bytes_accessed=bytes_accessed
        ),
    )(xp, *wpads, shifts)

    return xhat_p[:M, :n_out], z_p[:M, :n_latent]


# ----------------------------------------------------------------------------
# References: (a) bit-matching bf16 reference (same folded params), (b) f32 module semantics.
# ----------------------------------------------------------------------------
def autoencoder_reference_bf16(prepped, x):
    wpads, shifts, dims, pdims = prepped
    M = x.shape[0]
    h = jnp.zeros((M, pdims[0]), jnp.bfloat16).at[:, : dims[0]].set(x.astype(jnp.bfloat16))
    z = None
    for li, w in enumerate(wpads):
        y = jnp.dot(h.astype(jnp.bfloat16), w, preferred_element_type=jnp.float32)
        y = y + shifts[li : li + 1, : pdims[li + 1]]
        if _RELU_FLAGS[li]:
            y = jnp.maximum(y, 0.0)
        if li == _LATENT_IDX:
            z = y
        h = y
    return h[:, : dims[-1]], z[:, : dims[_LATENT_IDX + 1]]


def autoencoder_reference_f32(layers, x):
    h = x.astype(jnp.float32)
    z = None
    for li, (w, scale, shift, relu) in enumerate(layers):
        y = jnp.dot(h, w) * scale[None, :] + shift[None, :]
        if relu:
            y = jnp.maximum(y, 0.0)
        if li == _LATENT_IDX:
            z = y
        h = y
    return h, z


# ----------------------------------------------------------------------------
if __name__ == "__main__":
    key = jax.random.PRNGKey(0)
    k_param, k_x = jax.random.split(key)

    batch = 8
    n_in = 64       # small flattened input feature dim
    n_latent = 32   # small latent dim; hidden sizes 1024/512 come from the module spec

    layers = make_autoencoder_params(k_param, n_in, n_latent)
    prepped = prepare_fused_params(layers)
    x = jax.random.normal(k_x, (batch, n_in), jnp.float32)

    xhat, z = autoencoder_forward(prepped, x)
    xhat = jax.block_until_ready(xhat)
    z = jax.block_until_ready(z)

    assert xhat.shape == (batch, n_in)
    assert z.shape == (batch, n_latent)

    # Tight check vs. a reference doing the exact same bf16-MXU / f32-epilogue math.
    xhat_m, z_m = autoencoder_reference_bf16(prepped, x)
    assert jnp.allclose(z, z_m, atol=5e-3, rtol=5e-3)
    assert jnp.allclose(xhat, xhat_m, atol=5e-3, rtol=5e-3)

    # Looser check vs. the full-f32 original-module semantics (bf16 rounding tolerance).
    xhat_f, z_f = autoencoder_reference_f32(layers, x)
    assert jnp.allclose(z, z_f, atol=1e-1, rtol=1e-1)
    assert jnp.allclose(xhat, xhat_f, atol=1e-1, rtol=1e-1)

    print("KERNEL_OK")
</pallas_src>

<mosaic_0001>
module attributes {stable_mosaic.version = 11 : i64} {
  func.func @_ae_fused_kernel(%arg0: i32, %arg1: memref<8x128xbf16, #tpu.memory_space<vmem>>, %arg2: memref<128x1024xbf16, #tpu.memory_space<vmem>>, %arg3: memref<1024x512xbf16, #tpu.memory_space<vmem>>, %arg4: memref<512x512xbf16, #tpu.memory_space<vmem>>, %arg5: memref<512x128xbf16, #tpu.memory_space<vmem>>, %arg6: memref<128x512xbf16, #tpu.memory_space<vmem>>, %arg7: memref<512x512xbf16, #tpu.memory_space<vmem>>, %arg8: memref<512x1024xbf16, #tpu.memory_space<vmem>>, %arg9: memref<1024x128xbf16, #tpu.memory_space<vmem>>, %arg10: memref<8x1024xf32, #tpu.memory_space<vmem>>, %arg11: memref<8x128xf32, #tpu.memory_space<vmem>>, %arg12: memref<8x128xf32, #tpu.memory_space<vmem>>) attributes {dimension_semantics = [#tpu.dimension_semantics<parallel>], iteration_bounds = array<i64: 1>, scalar_prefetch = 0 : i64, scratch_operands = 0 : i64, tpu.core_type = #tpu.core_type<tc>, window_params = [{transform_indices = @transform_0, window_bounds = array<i64: 8, 128>}, {pipeline_mode = #tpu.pipeline_mode<synchronous>, transform_indices = @transform_1, window_bounds = array<i64: 128, 1024>}, {pipeline_mode = #tpu.pipeline_mode<synchronous>, transform_indices = @transform_2, window_bounds = array<i64: 1024, 512>}, {pipeline_mode = #tpu.pipeline_mode<synchronous>, transform_indices = @transform_3, window_bounds = array<i64: 512, 512>}, {pipeline_mode = #tpu.pipeline_mode<synchronous>, transform_indices = @transform_4, window_bounds = array<i64: 512, 128>}, {pipeline_mode = #tpu.pipeline_mode<synchronous>, transform_indices = @transform_5, window_bounds = array<i64: 128, 512>}, {pipeline_mode = #tpu.pipeline_mode<synchronous>, transform_indices = @transform_6, window_bounds = array<i64: 512, 512>}, {pipeline_mode = #tpu.pipeline_mode<synchronous>, transform_indices = @transform_7, window_bounds = array<i64: 512, 1024>}, {pipeline_mode = #tpu.pipeline_mode<synchronous>, transform_indices = @transform_8, window_bounds = array<i64: 1024, 128>}, {pipeline_mode = #tpu.pipeline_mode<synchronous>, transform_indices = @transform_9, window_bounds = array<i64: 8, 1024>}, {transform_indices = @transform_10, window_bounds = array<i64: 8, 128>}, {transform_indices = @transform_11, window_bounds = array<i64: 8, 128>}]} {
    %c0 = arith.constant 0 : index
    %c0_0 = arith.constant 0 : index
    %0 = vector.load %arg1[%c0, %c0_0] : memref<8x128xbf16, #tpu.memory_space<vmem>>, vector<8x128xbf16>
    %c0_1 = arith.constant 0 : index
    %c0_2 = arith.constant 0 : index
    %1 = vector.load %arg2[%c0_1, %c0_2] : memref<128x1024xbf16, #tpu.memory_space<vmem>>, vector<128x1024xbf16>
    %cst = arith.constant dense<0.000000e+00> : vector<8x1024xf32>
    %2 = tpu.matmul %0, %1, %cst {dimension_numbers = #tpu.dot_dimension_numbers<[1], [0], [0], [1], [0, 0, 1, 1], [], []>} : vector<8x128xbf16>, vector<128x1024xbf16>, vector<8x1024xf32> -> vector<8x1024xf32>
    %c0_3 = arith.constant 0 : index
    %c0_4 = arith.constant 0 : index
    %3 = vector.load %arg10[%c0_3, %c0_4] : memref<8x1024xf32, #tpu.memory_space<vmem>>, vector<1x1024xf32>
    %4 = vector.broadcast %3 : vector<1x1024xf32> to vector<8x1024xf32>
    %5 = arith.addf %2, %4 : vector<8x1024xf32>
    %cst_5 = arith.constant 0.000000e+00 : f32
    %6 = vector.broadcast %cst_5 : f32 to vector<8x1024xf32>
    %7 = arith.maximumf %5, %6 : vector<8x1024xf32>
    %c0_6 = arith.constant 0 : index
    %c0_7 = arith.constant 0 : index
    %8 = vector.load %arg3[%c0_6, %c0_7] : memref<1024x512xbf16, #tpu.memory_space<vmem>>, vector<1024x512xbf16>
    %9 = arith.truncf %7 : vector<8x1024xf32> to vector<8x1024xbf16>
    %cst_8 = arith.constant dense<0.000000e+00> : vector<8x512xf32>
    %10 = tpu.matmul %9, %8, %cst_8 {dimension_numbers = #tpu.dot_dimension_numbers<[1], [0], [0], [1], [0, 0, 1, 1], [], []>} : vector<8x1024xbf16>, vector<1024x512xbf16>, vector<8x512xf32> -> vector<8x512xf32>
    %c1 = arith.constant 1 : index
    %c0_9 = arith.constant 0 : index
    %11 = vector.load %arg10[%c1, %c0_9] : memref<8x1024xf32, #tpu.memory_space<vmem>>, vector<1x512xf32>
    %12 = vector.broadcast %11 : vector<1x512xf32> to vector<8x512xf32>
    %13 = arith.addf %10, %12 : vector<8x512xf32>
    %cst_10 = arith.constant 0.000000e+00 : f32
    %14 = vector.broadcast %cst_10 : f32 to vector<8x512xf32>
    %15 = arith.maximumf %13, %14 : vector<8x512xf32>
    %c0_11 = arith.constant 0 : index
    %c0_12 = arith.constant 0 : index
    %16 = vector.load %arg4[%c0_11, %c0_12] : memref<512x512xbf16, #tpu.memory_space<vmem>>, vector<512x512xbf16>
    %17 = arith.truncf %15 : vector<8x512xf32> to vector<8x512xbf16>
    %cst_13 = arith.constant dense<0.000000e+00> : vector<8x512xf32>
    %18 = tpu.matmul %17, %16, %cst_13 {dimension_numbers = #tpu.dot_dimension_numbers<[1], [0], [0], [1], [0, 0, 1, 1], [], []>} : vector<8x512xbf16>, vector<512x512xbf16>, vector<8x512xf32> -> vector<8x512xf32>
    %c2 = arith.constant 2 : index
    %c0_14 = arith.constant 0 : index
    %19 = vector.load %arg10[%c2, %c0_14] : memref<8x1024xf32, #tpu.memory_space<vmem>>, vector<1x512xf32>
    %20 = vector.broadcast %19 : vector<1x512xf32> to vector<8x512xf32>
    %21 = arith.addf %18, %20 : vector<8x512xf32>
    %cst_15 = arith.constant 0.000000e+00 : f32
    %22 = vector.broadcast %cst_15 : f32 to vector<8x512xf32>
    %23 = arith.maximumf %21, %22 : vector<8x512xf32>
    %c0_16 = arith.constant 0 : index
    %c0_17 = arith.constant 0 : index
    %24 = vector.load %arg5[%c0_16, %c0_17] : memref<512x128xbf16, #tpu.memory_space<vmem>>, vector<512x128xbf16>
    %25 = arith.truncf %23 : vector<8x512xf32> to vector<8x512xbf16>
    %cst_18 = arith.constant dense<0.000000e+00> : vector<8x128xf32>
    %26 = tpu.matmul %25, %24, %cst_18 {dimension_numbers = #tpu.dot_dimension_numbers<[1], [0], [0], [1], [0, 0, 1, 1], [], []>} : vector<8x512xbf16>, vector<512x128xbf16>, vector<8x128xf32> -> vector<8x128xf32>
    %c3 = arith.constant 3 : index
    %c0_19 = arith.constant 0 : index
    %27 = vector.load %arg10[%c3, %c0_19] : memref<8x1024xf32, #tpu.memory_space<vmem>>, vector<1x128xf32>
    %28 = vector.broadcast %27 : vector<1x128xf32> to vector<8x128xf32>
    %29 = arith.addf %26, %28 : vector<8x128xf32>
    %c0_20 = arith.constant 0 : index
    %c0_21 = arith.constant 0 : index
    %30 = vector.load %arg11[%c0_20, %c0_21] : memref<8x128xf32, #tpu.memory_space<vmem>>, vector<8x128xf32>
    tpu.vector_store %arg11[%c0_20, %c0_21], %29 {strides = array<i32>} : memref<8x128xf32, #tpu.memory_space<vmem>>, vector<8x128xf32>,
    %c0_22 = arith.constant 0 : index
    %c0_23 = arith.constant 0 : index
    %31 = vector.load %arg6[%c0_22, %c0_23] : memref<128x512xbf16, #tpu.memory_space<vmem>>, vector<128x512xbf16>
    %32 = arith.truncf %29 : vector<8x128xf32> to vector<8x128xbf16>
    %cst_24 = arith.constant dense<0.000000e+00> : vector<8x512xf32>
    %33 = tpu.matmul %32, %31, %cst_24 {dimension_numbers = #tpu.dot_dimension_numbers<[1], [0], [0], [1], [0, 0, 1, 1], [], []>} : vector<8x128xbf16>, vector<128x512xbf16>, vector<8x512xf32> -> vector<8x512xf32>
    %c4 = arith.constant 4 : index
    %c0_25 = arith.constant 0 : index
    %34 = vector.load %arg10[%c4, %c0_25] : memref<8x1024xf32, #tpu.memory_space<vmem>>, vector<1x512xf32>
    %35 = vector.broadcast %34 : vector<1x512xf32> to vector<8x512xf32>
    %36 = arith.addf %33, %35 : vector<8x512xf32>
    %cst_26 = arith.constant 0.000000e+00 : f32
    %37 = vector.broadcast %cst_26 : f32 to vector<8x512xf32>
    %38 = arith.maximumf %36, %37 : vector<8x512xf32>
    %c0_27 = arith.constant 0 : index
    %c0_28 = arith.constant 0 : index
    %39 = vector.load %arg7[%c0_27, %c0_28] : memref<512x512xbf16, #tpu.memory_space<vmem>>, vector<512x512xbf16>
    %40 = arith.truncf %38 : vector<8x512xf32> to vector<8x512xbf16>
    %cst_29 = arith.constant dense<0.000000e+00> : vector<8x512xf32>
    %41 = tpu.matmul %40, %39, %cst_29 {dimension_numbers = #tpu.dot_dimension_numbers<[1], [0], [0], [1], [0, 0, 1, 1], [], []>} : vector<8x512xbf16>, vector<512x512xbf16>, vector<8x512xf32> -> vector<8x512xf32>
    %c5 = arith.constant 5 : index
    %c0_30 = arith.constant 0 : index
    %42 = vector.load %arg10[%c5, %c0_30] : memref<8x1024xf32, #tpu.memory_space<vmem>>, vector<1x512xf32>
    %43 = vector.broadcast %42 : vector<1x512xf32> to vector<8x512xf32>
    %44 = arith.addf %41, %43 : vector<8x512xf32>
    %cst_31 = arith.constant 0.000000e+00 : f32
    %45 = vector.broadcast %cst_31 : f32 to vector<8x512xf32>
    %46 = arith.maximumf %44, %45 : vector<8x512xf32>
    %c0_32 = arith.constant 0 : index
    %c0_33 = arith.constant 0 : index
    %47 = vector.load %arg8[%c0_32, %c0_33] : memref<512x1024xbf16, #tpu.memory_space<vmem>>, vector<512x1024xbf16>
    %48 = arith.truncf %46 : vector<8x512xf32> to vector<8x512xbf16>
    %cst_34 = arith.constant dense<0.000000e+00> : vector<8x1024xf32>
    %49 = tpu.matmul %48, %47, %cst_34 {dimension_numbers = #tpu.dot_dimension_numbers<[1], [0], [0], [1], [0, 0, 1, 1], [], []>} : vector<8x512xbf16>, vector<512x1024xbf16>, vector<8x1024xf32> -> vector<8x1024xf32>
    %c6 = arith.constant 6 : index
    %c0_35 = arith.constant 0 : index
    %50 = vector.load %arg10[%c6, %c0_35] : memref<8x1024xf32, #tpu.memory_space<vmem>>, vector<1x1024xf32>
    %51 = vector.broadcast %50 : vector<1x1024xf32> to vector<8x1024xf32>
    %52 = arith.addf %49, %51 : vector<8x1024xf32>
    %cst_36 = arith.constant 0.000000e+00 : f32
    %53 = vector.broadcast %cst_36 : f32 to vector<8x1024xf32>
    %54 = arith.maximumf %52, %53 : vector<8x1024xf32>
    %c0_37 = arith.constant 0 : index
    %c0_38 = arith.constant 0 : index
    %55 = vector.load %arg9[%c0_37, %c0_38] : memref<1024x128xbf16, #tpu.memory_space<vmem>>, vector<1024x128xbf16>
    %56 = arith.truncf %54 : vector<8x1024xf32> to vector<8x1024xbf16>
    %cst_39 = arith.constant dense<0.000000e+00> : vector<8x128xf32>
    %57 = tpu.matmul %56, %55, %cst_39 {dimension_numbers = #tpu.dot_dimension_numbers<[1], [0], [0], [1], [0, 0, 1, 1], [], []>} : vector<8x1024xbf16>, vector<1024x128xbf16>, vector<8x128xf32> -> vector<8x128xf32>
    %c7 = arith.constant 7 : index
    %c0_40 = arith.constant 0 : index
    %58 = vector.load %arg10[%c7, %c0_40] : memref<8x1024xf32, #tpu.memory_space<vmem>>, vector<1x128xf32>
    %59 = vector.broadcast %58 : vector<1x128xf32> to vector<8x128xf32>
    %60 = arith.addf %57, %59 : vector<8x128xf32>
    %c0_41 = arith.constant 0 : index
    %c0_42 = arith.constant 0 : index
    %61 = vector.load %arg12[%c0_41, %c0_42] : memref<8x128xf32, #tpu.memory_space<vmem>>, vector<8x128xf32>
    tpu.vector_store %arg12[%c0_41, %c0_42], %60 {strides = array<i32>} : memref<8x128xf32, #tpu.memory_space<vmem>>, vector<8x128xf32>,
    return
  }
  func.func @transform_0(%arg0: i32) -> (i32, i32) {
    %c0_i32 = arith.constant 0 : i32
    %c0_i32_0 = arith.constant 0 : i32
    return %arg0, %c0_i32 : i32, i32
  }
  func.func @transform_1(%arg0: i32) -> (i32, i32) {
    %c0_i32 = arith.constant 0 : i32
    %c0_i32_0 = arith.constant 0 : i32
    %c0_i32_1 = arith.constant 0 : i32
    return %c0_i32, %c0_i32_0 : i32, i32
  }
  func.func @transform_2(%arg0: i32) -> (i32, i32) {
    %c0_i32 = arith.constant 0 : i32
    %c0_i32_0 = arith.constant 0 : i32
    %c0_i32_1 = arith.constant 0 : i32
    return %c0_i32, %c0_i32_0 : i32, i32
  }
  func.func @transform_3(%arg0: i32) -> (i32, i32) {
    %c0_i32 = arith.constant 0 : i32
    %c0_i32_0 = arith.constant 0 : i32
    %c0_i32_1 = arith.constant 0 : i32
    return %c0_i32, %c0_i32_0 : i32, i32
  }
  func.func @transform_4(%arg0: i32) -> (i32, i32) {
    %c0_i32 = arith.constant 0 : i32
    %c0_i32_0 = arith.constant 0 : i32
    %c0_i32_1 = arith.constant 0 : i32
    return %c0_i32, %c0_i32_0 : i32, i32
  }
  func.func @transform_5(%arg0: i32) -> (i32, i32) {
    %c0_i32 = arith.constant 0 : i32
    %c0_i32_0 = arith.constant 0 : i32
    %c0_i32_1 = arith.constant 0 : i32
    return %c0_i32, %c0_i32_0 : i32, i32
  }
  func.func @transform_6(%arg0: i32) -> (i32, i32) {
    %c0_i32 = arith.constant 0 : i32
    %c0_i32_0 = arith.constant 0 : i32
    %c0_i32_1 = arith.constant 0 : i32
    return %c0_i32, %c0_i32_0 : i32, i32
  }
  func.func @transform_7(%arg0: i32) -> (i32, i32) {
    %c0_i32 = arith.constant 0 : i32
    %c0_i32_0 = arith.constant 0 : i32
    %c0_i32_1 = arith.constant 0 : i32
    return %c0_i32, %c0_i32_0 : i32, i32
  }
  func.func @transform_8(%arg0: i32) -> (i32, i32) {
    %c0_i32 = arith.constant 0 : i32
    %c0_i32_0 = arith.constant 0 : i32
    %c0_i32_1 = arith.constant 0 : i32
    return %c0_i32, %c0_i32_0 : i32, i32
  }
  func.func @transform_9(%arg0: i32) -> (i32, i32) {
    %c0_i32 = arith.constant 0 : i32
    %c0_i32_0 = arith.constant 0 : i32
    %c0_i32_1 = arith.constant 0 : i32
    return %c0_i32, %c0_i32_0 : i32, i32
  }
  func.func @transform_10(%arg0: i32) -> (i32, i32) {
    %c0_i32 = arith.constant 0 : i32
    %c0_i32_0 = arith.constant 0 : i32
    return %arg0, %c0_i32 : i32, i32
  }
  func.func @transform_11(%arg0: i32) -> (i32, i32) {
    %c0_i32 = arith.constant 0 : i32
    %c0_i32_0 = arith.constant 0 : i32
    return %arg0, %c0_i32 : i32, i32
  }
}

</mosaic_0001>

<bundles_post_ra>
// kernel: tpu_custom_call.1
= control target key start
LH: loop header
LB: loop body
LE: loop exit
PB: predicated region body
PF: predicated region fallthrough
CT: control target
= control target key end

     0   :  { %17 = vsyncpa [#allocation3], 0  ;;  %s10661_s0 = inlined_call_operand.hbm [shape: bf16[8,128], index: 0, kind: input, shape index: {}]   ;;  %s10662_s1 = inlined_call_operand.hbm [shape: bf16[128,1024], index: 1, kind: input, shape index: {}]   ;;  %s10663_s2 = inlined_call_operand.hbm [shape: bf16[1024,512], index: 2, kind: input, shape index: {}]   ;;  %s10664_s3 = inlined_call_operand.hbm [shape: bf16[512,512], index: 3, kind: input, shape index: {}]   ;;  %s10665_s4 = inlined_call_operand.hbm [shape: bf16[512,128], index: 4, kind: input, shape index: {}]   ;;  %s10666_s5 = inlined_call_operand.hbm [shape: bf16[128,512], index: 5, kind: input, shape index: {}]   ;;  %s10667_s6 = inlined_call_operand.hbm [shape: bf16[512,512], index: 6, kind: input, shape index: {}]   ;;  %s10668_s7 = inlined_call_operand.hbm [shape: bf16[512,1024], index: 7, kind: input, shape index: {}]   ;;  %s10669_s8 = inlined_call_operand.hbm [shape: bf16[1024,128], index: 8, kind: input, shape index: {}]   ;;  %s10670_s9 = inlined_call_operand.hbm [shape: f32[8,1024], index: 9, kind: input, shape index: {}]   ;;  %s10671_s10 = inlined_call_operand.hbm [shape: f32[8,128], index: 10, kind: output, shape index: {0}]   ;;  %s10672_s11 = inlined_call_operand.hbm [shape: f32[8,128], index: 11, kind: output, shape index: {1}]  }
   0x1   :  { %18 = vsyncpa [#allocation6], 0 }
   0x2   :  { %19 = vsyncpa [#allocation9], 0 }
   0x3   :  { %20 = vsyncpa [#allocation12], 0 }
   0x4   :  { %21 = vsyncpa [#allocation15], 0 }
   0x5   :  { %22 = vsyncpa [#allocation18], 0 }
   0x6   :  { %23 = vsyncpa [#allocation4], 0 }
   0x7   :  { %24 = vsyncpa [#allocation21], 0  ;;  %s10258_s17 = smov [#allocation5]   ;;  %s9978_s21 = scalar_lea.hbm %s10662_s1, 8192 }
   0x8   :  { %s40_s18 = sshll.u32 %s10258_s17, 4  ;;  %p9979_p0 = scmp.ne.s32.totalorder %s10662_s1, %s9978_s21  ;;  %s41_s18 = int_to_ptr.vmem [resolvable:$true] %s40_s18 }
   0x9   :  { %p9982_p1 = scmp.lt.u32.totalorder %s9978_s21, %s10662_s1 }
   0xb   :  { %p9984_p2 = pnand %p9982_p1, %p9979_p0 }
   0xd   :  { %9987 = shalt.err (!%p9984_p2)
}
   0xe   :  { %s9988_s26 = scalar_lea.vmem %s41_s18, 8192  ;;  %p9993_p4 = scmp.lt.s32.totalorder %s41_s18, %s41_s18 }
   0xf   :  { %p9989_p3 = scmp.ne.s32.totalorder %s41_s18, %s9988_s26  ;;  %p9994_p5 = scmp.lt.s32.totalorder %s9988_s26, %s9988_s26 }
  0x11   :  { %p9995_p6 = por %p9994_p5, %p9993_p4 }
  0x13   :  { %p9996_p7 = pnand %p9995_p6, %p9989_p3 }
  0x15   :  { %9999 = shalt.err (!%p9996_p7)
}
  0x16   :  { %s10259_s27 = smov 512   ;;  %s10260_s28 = smov 32  }
  0x17   :  { %46 = dma.hbm_to_vmem [thread:$0]  %s10662_s1, 8192, %s41_s18, [#allocation6], %s10259_s27, %s10259_s27, %s10260_s28  }
  0x18   :  { %s10261_s12 = smov [#allocation8]   ;;  %s10262_s14 = smov [#allocation11]  }
  0x19   :  { %s64_s13 = sshll.u32 %s10261_s12, 4  ;;  %s88_s15 = sshll.u32 %s10262_s14, 4  ;;  %s65_s13 = int_to_ptr.vmem [resolvable:$true] %s64_s13  ;;  %s89_s15 = int_to_ptr.vmem [resolvable:$true] %s88_s15 }
  0x1a   :  { %s10000_s19 = scalar_lea.hbm %s10664_s3, 16384 }
  0x1b   :  { %p10001_p8 = scmp.ne.s32.totalorder %s10664_s3, %s10000_s19  ;;  %p10004_p9 = scmp.lt.u32.totalorder %s10000_s19, %s10664_s3 }
  0x1d   :  { %p10006_p10 = pnand %p10004_p9, %p10001_p8 }
  0x1f   :  { %10009 = shalt.err (!%p10006_p10)
}
  0x20   :  { %s10010_s1 = scalar_lea.vmem %s65_s13, 16384  ;;  %p10015_p12 = scmp.lt.s32.totalorder %s65_s13, %s65_s13 }
  0x21   :  { %p10011_p11 = scmp.ne.s32.totalorder %s65_s13, %s10010_s1  ;;  %p10016_p13 = scmp.lt.s32.totalorder %s10010_s1, %s10010_s1 }
  0x23   :  { %p10017_p0 = por %p10016_p13, %p10015_p12 }
  0x25   :  { %p10018_p1 = pnand %p10017_p0, %p10011_p11 }
  0x27   :  { %10021 = shalt.err (!%p10018_p1)
}
  0x28   :  { %s10263_s18 = smov 256   ;;  %s10264_s24 = smov 16  }
  0x29   :  { %70 = dma.hbm_to_vmem [thread:$0]  %s10664_s3, 16384, %s65_s13, [#allocation9], %s10263_s18, %s10263_s18, %s10264_s24  }
  0x2a   :  { %s10022_s12 = scalar_lea.hbm %s10666_s5, 4096 }
  0x2b   :  { %p10023_p2 = scmp.ne.s32.totalorder %s10666_s5, %s10022_s12  ;;  %p10026_p3 = scmp.lt.u32.totalorder %s10022_s12, %s10666_s5 }
  0x2d   :  { %p10028_p4 = pnand %p10026_p3, %p10023_p2 }
  0x2f   :  { %10031 = shalt.err (!%p10028_p4)
}
  0x30   :  { %s10032_s20 = scalar_lea.vmem %s89_s15, 4096  ;;  %p10037_p6 = scmp.lt.s32.totalorder %s89_s15, %s89_s15 }
  0x31   :  { %p10033_p5 = scmp.ne.s32.totalorder %s89_s15, %s10032_s20  ;;  %p10038_p7 = scmp.lt.s32.totalorder %s10032_s20, %s10032_s20 }
  0x33   :  { %p10039_p8 = por %p10038_p7, %p10037_p6 }
  0x35   :  { %p10040_p9 = pnand %p10039_p8, %p10033_p5 }
  0x37   :  { %10043 = shalt.err (!%p10040_p9)
}
  0x38   :  { %94 = dma.hbm_to_vmem [thread:$0]  %s10666_s5, 4096, %s89_s15, [#allocation12], %s10263_s18, %s10263_s18, %s10264_s24  }
  0x39   :  { %s10265_s21 = smov [#allocation14]   ;;  %s10266_s23 = smov [#allocation2]  }
  0x3a   :  { %s112_s22 = sshll.u32 %s10265_s21, 4  ;;  %s31_s1 = sshll.u32 %s10266_s23, 4  ;;  %s113_s22 = int_to_ptr.vmem [resolvable:$true] %s112_s22  ;;  %s32_s1 = int_to_ptr.vmem [resolvable:$true] %s31_s1 }
  0x3b   :  { %s10044_s29 = scalar_lea.hbm %s10668_s7, 32768 }
  0x3c   :  { %p10045_p10 = scmp.ne.s32.totalorder %s10668_s7, %s10044_s29  ;;  %p10048_p11 = scmp.lt.u32.totalorder %s10044_s29, %s10668_s7 }
  0x3e   :  { %p10050_p12 = pnand %p10048_p11, %p10045_p10 }
  0x40   :  { %10053 = shalt.err (!%p10050_p12)
}
  0x41   :  { %s10054_s5 = scalar_lea.vmem %s113_s22, 32768  ;;  %p10059_p0 = scmp.lt.s32.totalorder %s113_s22, %s113_s22 }
  0x42   :  { %p10055_p13 = scmp.ne.s32.totalorder %s113_s22, %s10054_s5  ;;  %p10060_p1 = scmp.lt.s32.totalorder %s10054_s5, %s10054_s5 }
  0x44   :  { %p10061_p2 = por %p10060_p1, %p10059_p0 }
  0x46   :  { %p10062_p3 = pnand %p10061_p2, %p10055_p13 }
  0x48   :  { %10065 = shalt.err (!%p10062_p3)
}
  0x49   :  { %118 = dma.hbm_to_vmem [thread:$0]  %s10668_s7, 32768, %s113_s22, [#allocation15], %s10259_s27, %s10259_s27, %s10260_s28  }
  0x4a   :  { %s10066_s3 = scalar_lea.hbm %s10661_s0, 64 }
  0x4b   :  { %p10067_p4 = scmp.ne.s32.totalorder %s10661_s0, %s10066_s3  ;;  %p10070_p5 = scmp.lt.u32.totalorder %s10066_s3, %s10661_s0 }
  0x4d   :  { %p10072_p6 = pnand %p10070_p5, %p10067_p4 }
  0x4f   :  { %10075 = shalt.err (!%p10072_p6)
}
  0x50   :  { %s10076_s26 = scalar_lea.vmem %s32_s1, 64  ;;  %p10081_p8 = scmp.lt.s32.totalorder %s32_s1, %s32_s1 }
  0x51   :  { %p10077_p7 = scmp.ne.s32.totalorder %s32_s1, %s10076_s26  ;;  %p10082_p9 = scmp.lt.s32.totalorder %s10076_s26, %s10076_s26 }
  0x53   :  { %p10083_p10 = por %p10082_p9, %p10081_p8 }
  0x55   :  { %p10084_p11 = pnand %p10083_p10, %p10077_p7 }
  0x57   :  { %10087 = shalt.err (!%p10084_p11)
}
  0x58   :  { %34 = dma.hbm_to_vmem [thread:$0]  %s10661_s0, 64, %s32_s1, [#allocation3]  }
  0x59   :  { %s10267_s28 = smov [#allocation7]   ;;  %s10268_s29 = smov [#allocation10]  }
  0x5a   :  { %s52_s22 = sshll.u32 %s10267_s28, 4  ;;  %s76_s30 = sshll.u32 %s10268_s29, 4  ;;  %s53_s22 = int_to_ptr.vmem [resolvable:$true] %s52_s22  ;;  %s77_s30 = int_to_ptr.vmem [resolvable:$true] %s76_s30 }
  0x5b   :  { %s10088_s16 = scalar_lea.hbm %s10663_s2, 32768 }
  0x5c   :  { %p10089_p12 = scmp.ne.s32.totalorder %s10663_s2, %s10088_s16  ;;  %p10092_p13 = scmp.lt.u32.totalorder %s10088_s16, %s10663_s2 }
  0x5e   :  { %p10094_p0 = pnand %p10092_p13, %p10089_p12 }
  0x60   :  { %10097 = shalt.err (!%p10094_p0)
}
  0x61   :  { %s10098_s0 = scalar_lea.vmem %s53_s22, 32768  ;;  %p10103_p2 = scmp.lt.s32.totalorder %s53_s22, %s53_s22 }
  0x62   :  { %p10099_p1 = scmp.ne.s32.totalorder %s53_s22, %s10098_s0  ;;  %p10104_p3 = scmp.lt.s32.totalorder %s10098_s0, %s10098_s0 }
  0x64   :  { %p10105_p4 = por %p10104_p3, %p10103_p2 }
  0x66   :  { %p10106_p5 = pnand %p10105_p4, %p10099_p1 }
  0x68   :  { %10109 = shalt.err (!%p10106_p5)
}
  0x69   :  { %58 = dma.hbm_to_vmem [thread:$0]  %s10663_s2, 32768, %s53_s22, [#allocation6], %s10263_s18, %s10263_s18, %s10264_s24  }
  0x6a   :  { %s10110_s21 = scalar_lea.hbm %s10665_s4, 4096 }
  0x6b   :  { %p10111_p6 = scmp.ne.s32.totalorder %s10665_s4, %s10110_s21  ;;  %p10114_p7 = scmp.lt.u32.totalorder %s10110_s21, %s10665_s4 }
  0x6d   :  { %p10116_p8 = pnand %p10114_p7, %p10111_p6 }
  0x6f   :  { %10119 = shalt.err (!%p10116_p8)
}
  0x70   :  { %s10120_s27 = scalar_lea.vmem %s77_s30, 4096  ;;  %p10125_p10 = scmp.lt.s32.totalorder %s77_s30, %s77_s30 }
  0x71   :  { %p10121_p9 = scmp.ne.s32.totalorder %s77_s30, %s10120_s27  ;;  %p10126_p11 = scmp.lt.s32.totalorder %s10120_s27, %s10120_s27 }
  0x73   :  { %p10127_p12 = por %p10126_p11, %p10125_p10 }
  0x75   :  { %p10128_p13 = pnand %p10127_p12, %p10121_p9 }
  0x77   :  { %10131 = shalt.err (!%p10128_p13)
}
  0x78   :  { %s10269_s2 = smov 64   ;;  %s10270_s28 = smov 4  }
  0x79   :  { %82 = dma.hbm_to_vmem [thread:$0]  %s10665_s4, 4096, %s77_s30, [#allocation9], %s10269_s2, %s10269_s2, %s10270_s28  }
  0x7a   :  { %s10271_s12 = smov [#allocation13]   ;;  %s10272_s16 = smov [#allocation16]  }
  0x7b   :  { %s100_s14 = sshll.u32 %s10271_s12, 4  ;;  %s124_s5 = sshll.u32 %s10272_s16, 4  ;;  %s101_s14 = int_to_ptr.vmem [resolvable:$true] %s100_s14  ;;  %s125_s5 = int_to_ptr.vmem [resolvable:$true] %s124_s5 }
  0x7c   :  { %s10132_s19 = scalar_lea.hbm %s10667_s6, 16384 }
  0x7d   :  { %p10133_p0 = scmp.ne.s32.totalorder %s10667_s6, %s10132_s19  ;;  %p10136_p1 = scmp.lt.u32.totalorder %s10132_s19, %s10667_s6 }
  0x7f   :  { %p10138_p2 = pnand %p10136_p1, %p10133_p0 }
  0x81   :  { %10141 = shalt.err (!%p10138_p2)
}
  0x82   :  { %s10142_s4 = scalar_lea.vmem %s101_s14, 16384  ;;  %p10147_p4 = scmp.lt.s32.totalorder %s101_s14, %s101_s14 }
  0x83   :  { %p10143_p3 = scmp.ne.s32.totalorder %s101_s14, %s10142_s4  ;;  %p10148_p5 = scmp.lt.s32.totalorder %s10142_s4, %s10142_s4 }
  0x85   :  { %p10149_p6 = por %p10148_p5, %p10147_p4 }
  0x87   :  { %p10150_p7 = pnand %p10149_p6, %p10143_p3 }
  0x89   :  { %10153 = shalt.err (!%p10150_p7)
}
  0x8a   :  { %106 = dma.hbm_to_vmem [thread:$0]  %s10667_s6, 16384, %s101_s14, [#allocation12], %s10263_s18, %s10263_s18, %s10264_s24  }
  0x8b   :  { %s10154_s25 = scalar_lea.hbm %s10669_s8, 8192 }
  0x8c   :  { %p10155_p8 = scmp.ne.s32.totalorder %s10669_s8, %s10154_s25  ;;  %p10158_p9 = scmp.lt.u32.totalorder %s10154_s25, %s10669_s8 }
  0x8e   :  { %p10160_p10 = pnand %p10158_p9, %p10155_p8 }
  0x90   :  { %10163 = shalt.err (!%p10160_p10)
}
  0x91   :  { %s10164_s29 = scalar_lea.vmem %s125_s5, 8192  ;;  %p10169_p12 = scmp.lt.s32.totalorder %s125_s5, %s125_s5 }
  0x92   :  { %p10165_p11 = scmp.ne.s32.totalorder %s125_s5, %s10164_s29  ;;  %p10170_p13 = scmp.lt.s32.totalorder %s10164_s29, %s10164_s29 }
  0x94   :  { %p10171_p0 = por %p10170_p13, %p10169_p12 }
  0x96   :  { %p10172_p1 = pnand %p10171_p0, %p10165_p11 }
  0x98   :  { %10175 = shalt.err (!%p10172_p1)
}
  0x99   :  { %130 = dma.hbm_to_vmem [thread:$0]  %s10669_s8, 8192, %s125_s5, [#allocation15], %s10269_s2, %s10269_s2, %s10270_s28  }
  0x9a   :  { %s10273_s24 = smov [#allocation17]   ;;  %s10176_s15 = scalar_lea.hbm %s10670_s9, 1024 }
  0x9b   :  { %s137_s12 = sshll.u32 %s10273_s24, 4  ;;  %p10177_p2 = scmp.ne.s32.totalorder %s10670_s9, %s10176_s15  ;;  %s138_s12 = int_to_ptr.vmem [resolvable:$true] %s137_s12 }
  0x9c   :  { %p10180_p3 = scmp.lt.u32.totalorder %s10176_s15, %s10670_s9 }
  0x9e   :  { %p10182_p4 = pnand %p10180_p3, %p10177_p2 }
  0xa0   :  { %10185 = shalt.err (!%p10182_p4)
}
  0xa1   :  { %s10186_s20 = scalar_lea.vmem %s138_s12, 1024  ;;  %p10191_p6 = scmp.lt.s32.totalorder %s138_s12, %s138_s12 }
  0xa2   :  { %p10187_p5 = scmp.ne.s32.totalorder %s138_s12, %s10186_s20  ;;  %p10192_p7 = scmp.lt.s32.totalorder %s10186_s20, %s10186_s20 }
  0xa4   :  { %p10193_p8 = por %p10192_p7, %p10191_p6 }
  0xa6   :  { %p10194_p9 = pnand %p10193_p8, %p10187_p5 }
  0xa8   :  { %10197 = shalt.err (!%p10194_p9)
}
  0xa9   :  { %140 = dma.hbm_to_vmem [thread:$0]  %s10670_s9, 1024, %s138_s12, [#allocation18]  }
  0xaa   :  { %10242 = dma.done.wait [#allocation3], 64  }
  0xab   :  { %10243 = vsyncadd [#allocation3], 4294967232 }
  0xac   :  { %10244 = dma.done.wait [#allocation6], 40960  }
  0xad   :  { %10245 = vsyncadd [#allocation6], 4294926336 }
  0xae   :  { %10246 = dma.done.wait [#allocation9], 20480  }
  0xaf   :  { %10247 = vsyncadd [#allocation9], 4294946816 }
  0xb0   :  { %10248 = dma.done.wait [#allocation12], 20480  }
  0xb1   :  { %10249 = vsyncadd [#allocation12], 4294946816 }
  0xb2   :  { %10250 = dma.done.wait [#allocation15], 40960  }
  0xb3   :  { %10251 = vsyncadd [#allocation15], 4294926336 }
  0xb4   :  { %10252 = dma.done.wait [#allocation18], 1024  }
  0xb5   :  { %10253 = vsyncadd [#allocation18], 4294966272  ;;  %v10274_v0 = vmov 0   ;;  %v173_v1 = vld [vmem:[#allocation5] sm:$0xff]  ;;  %v174_v14 = vld [vmem:[#allocation5 + $0x8] sm:$0xff]  ;;  %s10275_s9 = smov [#allocation19]  }
  0xb6   :  { %633 = vmatprep.mubr.bf16.mxu0 %v10274_v0  ;;  %674 = vmatprep.mubr.bf16.mxu1 %v10274_v0  ;;  %v177_v2 = vld [vmem:[#allocation5 + $0x20] sm:$0xff]  ;;  %v178_v15 = vld [vmem:[#allocation5 + $0x28] sm:$0xff]  ;;  %v175_v58 = vld [vmem:[#allocation5 + $0x10] sm:$0xff]  ;;  %s7851_s28 = sshll.u32 %s10275_s9, 4  ;;  %s7852_s28 = int_to_ptr.vmem [resolvable:$true] %s7851_s28 }
  0xb7   :  { %v181_v3 = vld [vmem:[#allocation5 + $0x40] sm:$0xff]  ;;  %v7880_v4 = vcombine.high %v173_v1, %v177_v2  ;;  %v7879_v5 = vcombine.low %v173_v1, %v177_v2  ;;  %v182_v16 = vld [vmem:[#allocation5 + $0x48] sm:$0xff]  ;;  %v7882_v18 = vcombine.high %v174_v14, %v178_v15  ;;  %v7881_v19 = vcombine.low %v174_v14, %v178_v15  ;;  %v179_v59 = vld [vmem:[#allocation5 + $0x30] sm:$0xff]  ;;  %s10198_s5 = scalar_lea.vmem %s7852_s28, 128  ;;  %p10203_p11 = scmp.lt.s32.totalorder %s7852_s28, %s7852_s28 }
  0xb8   :  { %v185_v6 = vld [vmem:[#allocation5 + $0x60] sm:$0xff]  ;;  %v186_v17 = vld [vmem:[#allocation5 + $0x68] sm:$0xff]  ;;  %v7884_v1 = vcombine.high %v175_v58, %v179_v59  ;;  %v10483_v2 = vld [vmem:[#allocation2] sm:$0xf]  ;;  %p10199_p10 = scmp.ne.s32.totalorder %s7852_s28, %s10198_s5  ;;  %p10204_p12 = scmp.lt.s32.totalorder %s10198_s5, %s10198_s5 }
  0xb9   :  { %v7888_v7 = vcombine.high %v181_v3, %v185_v6  ;;  %v189_v8 = vld [vmem:[#allocation5 + $0x80] sm:$0xff]  ;;  %601 = vmatprep.subr.bf16.mxu0 %v7880_v4  ;;  %v7887_v10 = vcombine.low %v181_v3, %v185_v6  ;;  %v7890_v20 = vcombine.high %v182_v16, %v186_v17  ;;  %v190_v22 = vld [vmem:[#allocation5 + $0x88] sm:$0xff]  ;;  %642 = vmatprep.subr.bf16.mxu1 %v7882_v18  ;;  %v183_v4 = vld [vmem:[#allocation5 + $0x50] sm:$0xff] }
  0xba   :  { %v193_v9 = vld [vmem:[#allocation5 + $0xa0] sm:$0xff]  ;;  %602 = vmatpush1.bf16.msra.mxu0 %v7879_v5  ;;  %v194_v23 = vld [vmem:[#allocation5 + $0xa8] sm:$0xff]  ;;  %643 = vmatpush1.bf16.msra.mxu1 %v7881_v19  ;;  %v7889_v27 = vcombine.low %v182_v16, %v186_v17  ;;  %v187_v5 = vld [vmem:[#allocation5 + $0x70] sm:$0xff]  ;;  %p10205_p13 = por %p10204_p12, %p10203_p11 }
  0xbb   :  { %603 = vmatprep.subr.bf16.mxu0 %v7888_v7  ;;  %v7896_v11 = vcombine.high %v189_v8, %v193_v9  ;;  %v197_v12 = vld [vmem:[#allocation5 + $0xc0] sm:$0xff]  ;;  %v7895_v21 = vcombine.low %v189_v8, %v193_v9  ;;  %644 = vmatprep.subr.bf16.mxu1 %v7890_v20  ;;  %v7898_v28 = vcombine.high %v190_v22, %v194_v23  ;;  %v198_v30 = vld [vmem:[#allocation5 + $0xc8] sm:$0xff]  ;;  %v176_v7 = vld [vmem:[#allocation5 + $0x18] sm:$0xff] }
  0xbc   :  { %v201_v13 = vld [vmem:[#allocation5 + $0xe0] sm:$0xff]  ;;  %v202_v31 = vld [vmem:[#allocation5 + $0xe8] sm:$0xff]  ;;  %v7897_v35 = vcombine.low %v190_v22, %v194_v23  ;;  %v7883_v8 = vcombine.low %v175_v58, %v179_v59  ;;  %v180_v9 = vld [vmem:[#allocation5 + $0x38] sm:$0xff]  ;;  %v7891_v16 = vcombine.low %v183_v4, %v187_v5  ;;  %p10206_p0 = pnand %p10205_p13, %p10199_p10 }
  0xbd   :  { %v7904_v24 = vcombine.high %v197_v12, %v201_v13  ;;  %v205_v25 = vld [vmem:[#allocation5 + $0x100] sm:$0xff]  ;;  %v7903_v29 = vcombine.low %v197_v12, %v201_v13  ;;  %v7906_v36 = vcombine.high %v198_v30, %v202_v31  ;;  %v206_v38 = vld [vmem:[#allocation5 + $0x108] sm:$0xff]  ;;  %v7905_v43 = vcombine.low %v198_v30, %v202_v31  ;;  %v191_v12 = vld [vmem:[#allocation5 + $0x90] sm:$0xff] }
  0xbe   :  { %604 = vmatpush1.bf16.msra.mxu0 %v7887_v10  ;;  %v209_v26 = vld [vmem:[#allocation5 + $0x120] sm:$0xff]  ;;  %645 = vmatpush1.bf16.msra.mxu1 %v7889_v27  ;;  %v210_v39 = vld [vmem:[#allocation5 + $0x128] sm:$0xff]  ;;  %v7892_v10 = vcombine.high %v183_v4, %v187_v5  ;;  %v195_v13 = vld [vmem:[#allocation5 + $0xb0] sm:$0xff]  ;;  %v7886_v14 = vcombine.high %v176_v7, %v180_v9 }
  0xbf   :  { %605 = vmatprep.subr.bf16.mxu0 %v7896_v11  ;;  %v7912_v32 = vcombine.high %v205_v25, %v209_v26  ;;  %v213_v33 = vld [vmem:[#allocation5 + $0x140] sm:$0xff]  ;;  %646 = vmatprep.subr.bf16.mxu1 %v7898_v28  ;;  %v7911_v37 = vcombine.low %v205_v25, %v209_v26  ;;  %v7914_v44 = vcombine.high %v206_v38, %v210_v39  ;;  %v214_v46 = vld [vmem:[#allocation5 + $0x148] sm:$0xff]  ;;  %v184_v15 = vld [vmem:[#allocation5 + $0x58] sm:$0xff] }
  0xc0   :  { %v217_v34 = vld [vmem:[#allocation5 + $0x160] sm:$0xff]  ;;  %v218_v47 = vld [vmem:[#allocation5 + $0x168] sm:$0xff]  ;;  %v7913_v51 = vcombine.low %v206_v38, %v210_v39  ;;  %v188_v17 = vld [vmem:[#allocation5 + $0x78] sm:$0xff]  ;;  %v7900_v18 = vcombine.high %v191_v12, %v195_v13 }
  0xc1   :  { %v7920_v40 = vcombine.high %v213_v33, %v217_v34  ;;  %v221_v41 = vld [vmem:[#allocation5 + $0x180] sm:$0xff]  ;;  %v7919_v45 = vcombine.low %v213_v33, %v217_v34  ;;  %v7922_v52 = vcombine.high %v214_v46, %v218_v47  ;;  %v222_v53 = vld [vmem:[#allocation5 + $0x188] sm:$0xff]  ;;  %v7921_v57 = vcombine.low %v214_v46, %v218_v47  ;;  %v199_v19 = vld [vmem:[#allocation5 + $0xd0] sm:$0xff] }
  0xc2   :  { %606 = vmatpush1.bf16.msra.mxu0 %v7895_v21  ;;  %v225_v42 = vld [vmem:[#allocation5 + $0x1a0] sm:$0xff]  ;;  %647 = vmatpush1.bf16.msra.mxu1 %v7897_v35  ;;  %v226_v55 = vld [vmem:[#allocation5 + $0x1a8] sm:$0xff]  ;;  %v203_v20 = vld [vmem:[#allocation5 + $0xf0] sm:$0xff]  ;;  %v7885_v21 = vcombine.low %v176_v7, %v180_v9  ;;  %v7894_v22 = vcombine.high %v184_v15, %v188_v17 }
  0xc3   :  { %607 = vmatprep.subr.bf16.mxu0 %v7904_v24  ;;  %648 = vmatprep.subr.bf16.mxu1 %v7906_v36  ;;  %v7928_v48 = vcombine.high %v221_v41, %v225_v42  ;;  %v229_v49 = vld [vmem:[#allocation5 + $0x1c0] sm:$0xff]  ;;  %v7927_v54 = vcombine.low %v221_v41, %v225_v42  ;;  %v7930_v60 = vcombine.high %v222_v53, %v226_v55  ;;  %v230_v61 = vld [vmem:[#allocation5 + $0x1c8] sm:$0xff]  ;;  %v192_v23 = vld [vmem:[#allocation5 + $0x98] sm:$0xff] }
  0xc4   :  { %v233_v50 = vld [vmem:[#allocation5 + $0x1e0] sm:$0xff]  ;;  %v234_v63 = vld [vmem:[#allocation5 + $0x1e8] sm:$0xff]  ;;  %v7929_v3 = vcombine.low %v222_v53, %v226_v55  ;;  %v7899_v24 = vcombine.low %v191_v12, %v195_v13  ;;  %v196_v25 = vld [vmem:[#allocation5 + $0xb8] sm:$0xff]  ;;  %v7908_v26 = vcombine.high %v199_v19, %v203_v20 }
  0xc5   :  { %v7936_v56 = vcombine.high %v229_v49, %v233_v50  ;;  %v7935_v62 = vcombine.low %v229_v49, %v233_v50  ;;  %v7938_v6 = vcombine.high %v230_v61, %v234_v63  ;;  %v7937_v11 = vcombine.low %v230_v61, %v234_v63  ;;  %v207_v27 = vld [vmem:[#allocation5 + $0x110] sm:$0xff]  ;;  %v200_v31 = vld [vmem:[#allocation5 + $0xd8] sm:$0xff] }
  0xc6   :  { %608 = vmatpush1.bf16.msra.mxu0 %v7903_v29  ;;  %649 = vmatpush1.bf16.msra.mxu1 %v7905_v43  ;;  %v211_v28 = vld [vmem:[#allocation5 + $0x130] sm:$0xff]  ;;  %v7893_v29 = vcombine.low %v184_v15, %v188_v17  ;;  %v7902_v30 = vcombine.high %v192_v23, %v196_v25  ;;  %v204_v33 = vld [vmem:[#allocation5 + $0xf8] sm:$0xff] }
  0xc7   :  { %609 = vmatprep.subr.bf16.mxu0 %v7912_v32  ;;  %650 = vmatprep.subr.bf16.mxu1 %v7914_v44  ;;  %v7907_v32 = vcombine.low %v199_v19, %v203_v20  ;;  %v7916_v34 = vcombine.high %v207_v27, %v211_v28  ;;  %v215_v35 = vld [vmem:[#allocation5 + $0x150] sm:$0xff]  ;;  %v7910_v38 = vcombine.high %v200_v31, %v204_v33  ;;  %v208_v39 = vld [vmem:[#allocation5 + $0x118] sm:$0xff] }
  0xc8   :  { %v219_v36 = vld [vmem:[#allocation5 + $0x170] sm:$0xff]  ;;  %v212_v41 = vld [vmem:[#allocation5 + $0x138] sm:$0xff] }
  0xc9   :  { %v7924_v42 = vcombine.high %v215_v35, %v219_v36  ;;  %v223_v43 = vld [vmem:[#allocation5 + $0x190] sm:$0xff]  ;;  %v7918_v46 = vcombine.high %v208_v39, %v212_v41  ;;  %v216_v47 = vld [vmem:[#allocation5 + $0x158] sm:$0xff]  ;;  %v7917_v53 = vcombine.low %v208_v39, %v212_v41 }
  0xca   :  { %610 = vmatpush1.bf16.msra.mxu0 %v7911_v37  ;;  %651 = vmatpush1.bf16.msra.mxu1 %v7913_v51  ;;  %v7901_v37 = vcombine.low %v192_v23, %v196_v25  ;;  %v227_v44 = vld [vmem:[#allocation5 + $0x1b0] sm:$0xff]  ;;  %v220_v49 = vld [vmem:[#allocation5 + $0x178] sm:$0xff] }
  0xcb   :  { %611 = vmatprep.subr.bf16.mxu0 %v7920_v40  ;;  %652 = vmatprep.subr.bf16.mxu1 %v7922_v52  ;;  %v7915_v40 = vcombine.low %v207_v27, %v211_v28  ;;  %v7932_v50 = vcombine.high %v223_v43, %v227_v44  ;;  %v231_v51 = vld [vmem:[#allocation5 + $0x1d0] sm:$0xff]  ;;  %v224_v55 = vld [vmem:[#allocation5 + $0x198] sm:$0xff]  ;;  %v7925_v59 = vcombine.low %v216_v47, %v220_v49 }
  0xcc   :  { %v235_v52 = vld [vmem:[#allocation5 + $0x1f0] sm:$0xff]  ;;  %v232_v61 = vld [vmem:[#allocation5 + $0x1d8] sm:$0xff] }
  0xcd   :  { %v7940_v58 = vcombine.high %v231_v51, %v235_v52  ;;  %v9068_v63 = vld [vmem:[#allocation7 + $0x4] ss:$16 sps:$4 sm:$0xff]   ;;  %v9066_v4 = vld [vmem:[#allocation7] ss:$16 sps:$4 sm:$0xff]   ;;  %v9071_v7 = vld [vmem:[#allocation7 + $0xc] ss:$16 sps:$4 sm:$0xff]  }
  0xce   :  { %612 = vmatpush1.bf16.msra.mxu0 %v7919_v45  ;;  %653 = vmatpush1.bf16.msra.mxu1 %v7921_v57  ;;  %v7909_v45 = vcombine.low %v200_v31, %v204_v33  ;;  %v228_v57 = vld [vmem:[#allocation5 + $0x1b8] sm:$0xff]  ;;  %v9072_v9 = vld [vmem:[#allocation7 + $0x20] ss:$16 sps:$4 sm:$0xff]   ;;  %v9104_v25 = vld [vmem:[#allocation7 + $0xc4] ss:$16 sps:$4 sm:$0xff]  }
  0xcf   :  { %613 = vmatprep.subr.bf16.mxu0 %v7928_v48  ;;  %654 = vmatprep.subr.bf16.mxu1 %v7930_v60  ;;  %v7923_v48 = vcombine.low %v215_v35, %v219_v36  ;;  %v7934_v60 = vcombine.high %v224_v55, %v228_v57  ;;  %v9077_v12 = vld [vmem:[#allocation7 + $0x2c] ss:$16 sps:$4 sm:$0xff]   ;;  %v9078_v13 = vld [vmem:[#allocation7 + $0x40] ss:$16 sps:$4 sm:$0xff]   ;;  %v9075_v15 = vld [vmem:[#allocation7 + $0x28] ss:$16 sps:$4 sm:$0xff]  }
  0xd0   :  { %v9084_v17 = vld [vmem:[#allocation7 + $0x60] ss:$16 sps:$4 sm:$0xff]   ;;  %v9081_v19 = vld [vmem:[#allocation7 + $0x48] ss:$16 sps:$4 sm:$0xff]   ;;  %v9089_v20 = vld [vmem:[#allocation7 + $0x6c] ss:$16 sps:$4 sm:$0xff]  }
  0xd1   :  { %v9087_v23 = vld [vmem:[#allocation7 + $0x68] ss:$16 sps:$4 sm:$0xff]   ;;  %v9101_v27 = vld [vmem:[#allocation7 + $0xac] ss:$16 sps:$4 sm:$0xff]   ;;  %v9102_v28 = vld [vmem:[#allocation7 + $0xc0] ss:$16 sps:$4 sm:$0xff]  }
  0xd2   :  { %614 = vmatpush1.bf16.msra.mxu0 %v7927_v54  ;;  %655 = vmatpush1.bf16.msra.mxu1 %v7929_v3  ;;  %v7926_v54 = vcombine.high %v216_v47, %v220_v49  ;;  %v7933_v3 = vcombine.low %v224_v55, %v228_v57  ;;  %v9107_v31 = vld [vmem:[#allocation7 + $0xcc] ss:$16 sps:$4 sm:$0xff]   ;;  %v9116_v33 = vld [vmem:[#allocation7 + $0x104] ss:$16 sps:$4 sm:$0xff]   ;;  %v9114_v36 = vld [vmem:[#allocation7 + $0x100] ss:$16 sps:$4 sm:$0xff]  }
  0xd3   :  { %615 = vmatprep.subr.bf16.mxu0 %v7936_v56  ;;  %656 = vmatprep.subr.bf16.mxu1 %v7938_v6  ;;  %v7931_v56 = vcombine.low %v223_v43, %v227_v44  ;;  %v9074_v6 = vld [vmem:[#allocation7 + $0x24] ss:$16 sps:$4 sm:$0xff]   ;;  %v9113_v35 = vld [vmem:[#allocation7 + $0xec] ss:$16 sps:$4 sm:$0xff]   ;;  %v9126_v44 = vld [vmem:[#allocation7 + $0x140] ss:$16 sps:$4 sm:$0xff]  }
  0xd4   :  { %v9119_v39 = vld [vmem:[#allocation7 + $0x10c] ss:$16 sps:$4 sm:$0xff]   ;;  %v9128_v41 = vld [vmem:[#allocation7 + $0x144] ss:$16 sps:$4 sm:$0xff]   ;;  %v9144_v57 = vld [vmem:[#allocation7 + $0x1a0] ss:$16 sps:$4 sm:$0xff]  }
  0xd5   :  { %v9125_v43 = vld [vmem:[#allocation7 + $0x12c] ss:$16 sps:$4 sm:$0xff]   ;;  %v9140_v49 = vld [vmem:[#allocation7 + $0x184] ss:$16 sps:$4 sm:$0xff]  }
  0xd6   :  { %616 = vmatpush1.bf16.msra.mxu0 %v7935_v62  ;;  %657 = vmatpush1.bf16.msra.mxu1 %v7937_v11  ;;  %v236_v62 = vld [vmem:[#allocation5 + $0x1f8] sm:$0xff] }
  0xd7   :  { %683 = vmatprep.subr.bf16.mxu0 %v7884_v1  ;;  %724 = vmatprep.subr.bf16.mxu1 %v7886_v14  ;;  %v7939_v1 = vcombine.low %v231_v51, %v235_v52  ;;  %v7942_v5 = vcombine.high %v232_v61, %v236_v62  ;;  %v9069_v11 = vld [vmem:[#allocation7 + $0x8] ss:$16 sps:$4 sm:$0xff]   ;;  %v9086_v14 = vld [vmem:[#allocation7 + $0x64] ss:$16 sps:$4 sm:$0xff]   ;;  %v9131_v47 = vld [vmem:[#allocation7 + $0x14c] ss:$16 sps:$4 sm:$0xff]  }
  0xd8   :  { %v9137_v51 = vld [vmem:[#allocation7 + $0x16c] ss:$16 sps:$4 sm:$0xff]   ;;  %v9138_v52 = vld [vmem:[#allocation7 + $0x180] ss:$16 sps:$4 sm:$0xff]  }
  0xd9   :  { %634 = vmatmul.mubr.bf16.vlgmr.msra.gmra.mrb[0].mxu0 %v10483_v2  ;;  %675 = vmatmul.mubr.bf16.vlgmr.msra.gmra.mrb[0].mxu1 %v10483_v2  ;;  %v9143_v55 = vld [vmem:[#allocation7 + $0x18c] ss:$16 sps:$4 sm:$0xff]  }
  0xda   :  { %684 = vmatpush1.bf16.msra.mxu0 %v7883_v8  ;;  %715 = vmatprep.mubr.bf16.mxu0 %v10274_v0  ;;  %v7941_v8 = vcombine.low %v232_v61, %v236_v62  ;;  %v9150_v61 = vld [vmem:[#allocation7 + $0x1c0] ss:$16 sps:$4 sm:$0xff]   ;;  %v9155_v62 = vld [vmem:[#allocation7 + $0x1cc] ss:$16 sps:$4 sm:$0xff]  }
  0xdb   :  { %685 = vmatprep.subr.bf16.mxu0 %v7892_v10  ;;  %725 = vmatpush1.bf16.msra.mxu1 %v7885_v21  ;;  %v9080_v10 = vld [vmem:[#allocation7 + $0x44] ss:$16 sps:$4 sm:$0xff]   ;;  %v9090_v21 = vld [vmem:[#allocation7 + $0x80] ss:$16 sps:$4 sm:$0xff]  }
  0xdc   :  { %756 = vmatprep.mubr.bf16.mxu1 %v10274_v0  ;;  %726 = vmatprep.subr.bf16.mxu1 %v7894_v22  ;;  %v9098_v22 = vld [vmem:[#allocation7 + $0xa4] ss:$16 sps:$4 sm:$0xff]  }
  0xde   :  { %686 = vmatpush1.bf16.msra.mxu0 %v7891_v16  ;;  %v9083_v16 = vld [vmem:[#allocation7 + $0x4c] ss:$16 sps:$4 sm:$0xff]  }
  0xdf   :  { %687 = vmatprep.subr.bf16.mxu0 %v7900_v18  ;;  %727 = vmatpush1.bf16.msra.mxu1 %v7893_v29  ;;  %v9092_v18 = vld [vmem:[#allocation7 + $0x84] ss:$16 sps:$4 sm:$0xff]  }
  0xe0   :  { %728 = vmatprep.subr.bf16.mxu1 %v7902_v30  ;;  %v9110_v29 = vld [vmem:[#allocation7 + $0xe4] ss:$16 sps:$4 sm:$0xff]   ;;  %v9099_v30 = vld [vmem:[#allocation7 + $0xa8] ss:$16 sps:$4 sm:$0xff]  }
  0xe2   :  { %688 = vmatpush1.bf16.msra.mxu0 %v7899_v24  ;;  %v9095_v24 = vld [vmem:[#allocation7 + $0x8c] ss:$16 sps:$4 sm:$0xff]  }
  0xe3   :  { %689 = vmatprep.subr.bf16.mxu0 %v7908_v26  ;;  %729 = vmatpush1.bf16.msra.mxu1 %v7901_v37  ;;  %v9093_v26 = vld [vmem:[#allocation7 + $0x88] ss:$16 sps:$4 sm:$0xff]   ;;  %v9122_v37 = vld [vmem:[#allocation7 + $0x124] ss:$16 sps:$4 sm:$0xff]  }
  0xe4   :  { %730 = vmatprep.subr.bf16.mxu1 %v7910_v38  ;;  %v9111_v38 = vld [vmem:[#allocation7 + $0xe8] ss:$16 sps:$4 sm:$0xff]  }
  0xe6   :  { %690 = vmatpush1.bf16.msra.mxu0 %v7907_v32  ;;  %v9108_v32 = vld [vmem:[#allocation7 + $0xe0] ss:$16 sps:$4 sm:$0xff]  }
  0xe7   :  { %691 = vmatprep.subr.bf16.mxu0 %v7916_v34  ;;  %731 = vmatpush1.bf16.msra.mxu1 %v7909_v45  ;;  %v9105_v34 = vld [vmem:[#allocation7 + $0xc8] ss:$16 sps:$4 sm:$0xff]   ;;  %v9134_v45 = vld [vmem:[#allocation7 + $0x164] ss:$16 sps:$4 sm:$0xff]  }
  0xe8   :  { %732 = vmatprep.subr.bf16.mxu1 %v7918_v46  ;;  %v9123_v46 = vld [vmem:[#allocation7 + $0x128] ss:$16 sps:$4 sm:$0xff]  }
  0xea   :  { %692 = vmatpush1.bf16.msra.mxu0 %v7915_v40  ;;  %v9120_v40 = vld [vmem:[#allocation7 + $0x120] ss:$16 sps:$4 sm:$0xff]  }
  0xeb   :  { %693 = vmatprep.subr.bf16.mxu0 %v7924_v42  ;;  %733 = vmatpush1.bf16.msra.mxu1 %v7917_v53  ;;  %v9117_v42 = vld [vmem:[#allocation7 + $0x108] ss:$16 sps:$4 sm:$0xff]   ;;  %v9146_v53 = vld [vmem:[#allocation7 + $0x1a4] ss:$16 sps:$4 sm:$0xff]  }
  0xec   :  { %734 = vmatprep.subr.bf16.mxu1 %v7926_v54  ;;  %v9135_v54 = vld [vmem:[#allocation7 + $0x168] ss:$16 sps:$4 sm:$0xff]  }
  0xee   :  { %694 = vmatpush1.bf16.msra.mxu0 %v7923_v48  ;;  %v9132_v48 = vld [vmem:[#allocation7 + $0x160] ss:$16 sps:$4 sm:$0xff]  }
  0xef   :  { %695 = vmatprep.subr.bf16.mxu0 %v7932_v50  ;;  %735 = vmatpush1.bf16.msra.mxu1 %v7925_v59  ;;  %v9129_v50 = vld [vmem:[#allocation7 + $0x148] ss:$16 sps:$4 sm:$0xff]   ;;  %v9152_v59 = vld [vmem:[#allocation7 + $0x1c4] ss:$16 sps:$4 sm:$0xff]  }
  0xf0   :  { %736 = vmatprep.subr.bf16.mxu1 %v7934_v60  ;;  %v9147_v60 = vld [vmem:[#allocation7 + $0x1a8] ss:$16 sps:$4 sm:$0xff]  }
  0xf2   :  { %696 = vmatpush1.bf16.msra.mxu0 %v7931_v56  ;;  %v9141_v56 = vld [vmem:[#allocation7 + $0x188] ss:$16 sps:$4 sm:$0xff]  }
  0xf3   :  { %697 = vmatprep.subr.bf16.mxu0 %v7940_v58  ;;  %737 = vmatpush1.bf16.msra.mxu1 %v7933_v3  ;;  %v9149_v58 = vld [vmem:[#allocation7 + $0x1ac] ss:$16 sps:$4 sm:$0xff]   ;;  %v9156_v3 = vld [vmem:[#allocation7 + $0x1e0] ss:$16 sps:$4 sm:$0xff]  }
  0xf4   :  { %738 = vmatprep.subr.bf16.mxu1 %v7942_v5  ;;  %v9164_v5 = vld [vmem:[#allocation7 + $0x204] ss:$16 sps:$4 sm:$0xff]  }
  0xf6   :  { %698 = vmatpush1.bf16.msra.mxu0 %v7939_v1  ;;  %v9153_v1 = vld [vmem:[#allocation7 + $0x1c8] ss:$16 sps:$4 sm:$0xff]  }
  0xf7   :  { %2340 = vmatprep.subr.bf16.mxu0 %v9068_v63  ;;  %739 = vmatpush1.bf16.msra.mxu1 %v7941_v8  ;;  %v9158_v63 = vld [vmem:[#allocation7 + $0x1e4] ss:$16 sps:$4 sm:$0xff]   ;;  %v241_v8 = vlaneseq }
  0xf8   :  { %2504 = vmatprep.subr.bf16.mxu1 %v9071_v7  ;;  %v9167_v7 = vld [vmem:[#allocation7 + $0x20c] ss:$16 sps:$4 sm:$0xff]  }
  0xf9   :  { %716 = vmatmul.mubr.bf16.vlgmr.msra.gmra.mrb[4].mxu0 %v10483_v2 }
  0xfa   :  { %2341 = vmatpush1.bf16.msra.mxu0 %v9066_v4  ;;  %757 = vmatmul.mubr.bf16.vlgmr.msra.gmra.mrb[4].mxu1 %v10483_v2  ;;  %v9096_v2 = vld [vmem:[#allocation7 + $0xa0] ss:$16 sps:$4 sm:$0xff]   ;;  %v9161_v4 = vld [vmem:[#allocation7 + $0x1ec] ss:$16 sps:$4 sm:$0xff]  }
  0xfb   :  { %2342 = vmatprep.subr.bf16.mxu0 %v9074_v6  ;;  %2505 = vmatpush1.bf16.msra.mxu1 %v9069_v11  ;;  %v9159_v6 = vld [vmem:[#allocation7 + $0x1e8] ss:$16 sps:$4 sm:$0xff]  }
  0xfc   :  { %2506 = vmatprep.subr.bf16.mxu1 %v9077_v12  ;;  %v238_v11 = vld [vmem:[#allocation17] ss:$8 sm:$0xf0] }
  0xfe   :  { %2343 = vmatpush1.bf16.msra.mxu0 %v9072_v9  ;;  %v237_v9 = vld [vmem:[#allocation17] ss:$8 sm:$0xf] }
  0xff   :  { %2344 = vmatprep.subr.bf16.mxu0 %v9080_v10  ;;  %2507 = vmatpush1.bf16.msra.mxu1 %v9075_v15  ;;  %v10491_v10 = vshrl.u32 %v241_v8, 7  ;;  %v10493_v12 = vor.u32 %v238_v11, %v237_v9  ;;  %v9210_v9 = vld [vmem:[#allocation7 + $0x300] ss:$16 sps:$4 sm:$0xff]   ;;  %v9213_v11 = vld [vmem:[#allocation7 + $0x308] ss:$16 sps:$4 sm:$0xff]  }
 0x100   :  { %2508 = vmatprep.subr.bf16.mxu1 %v9083_v16 }
 0x102   :  { %2345 = vmatpush1.bf16.msra.mxu0 %v9078_v13  ;;  %v10496_v13 = vsub.s32 0, %v10491_v10 }
 0x103   :  { %2346 = vmatprep.subr.bf16.mxu0 %v9086_v14  ;;  %2509 = vmatpush1.bf16.msra.mxu1 %v9081_v19  ;;  %v10499_v14 = vsub.s32 1, %v10491_v10 }
 0x104   :  { %2510 = vmatprep.subr.bf16.mxu1 %v9089_v20  ;;  %v244_v15 = vrot.slane %v10493_v12, %v10496_v13 }
 0x105   :  { %v248_v16 = vrot.slane %v10493_v12, %v10499_v14 }
 0x106   :  { %2347 = vmatpush1.bf16.msra.mxu0 %v9084_v17 }
 0x107   :  { %2348 = vmatprep.subr.bf16.mxu0 %v9092_v18  ;;  %2511 = vmatpush1.bf16.msra.mxu1 %v9087_v23  ;;  %v10506_v18 = vsub.s32 3, %v10491_v10 }
 0x108   :  { %2512 = vmatprep.subr.bf16.mxu1 %v9095_v24 }
 0x10a   :  { %2349 = vmatpush1.bf16.msra.mxu0 %v9090_v21 }
 0x10b   :  { %2350 = vmatprep.subr.bf16.mxu0 %v9098_v22  ;;  %2513 = vmatpush1.bf16.msra.mxu1 %v9093_v26  ;;  %v9165_v26 = vld [vmem:[#allocation7 + $0x208] ss:$16 sps:$4 sm:$0xff]  }
 0x10c   :  { %2514 = vmatprep.subr.bf16.mxu1 %v9101_v27  ;;  %v256_v27 = vrot.slane %v10493_v12, %v10506_v18 }
 0x10e   :  { %2351 = vmatpush1.bf16.msra.mxu0 %v9096_v2 }
 0x10f   :  { %2352 = vmatprep.subr.bf16.mxu0 %v9104_v25  ;;  %2515 = vmatpush1.bf16.msra.mxu1 %v9099_v30  ;;  %v9162_v25 = vld [vmem:[#allocation7 + $0x200] ss:$16 sps:$4 sm:$0xff]  }
 0x110   :  { %2516 = vmatprep.subr.bf16.mxu1 %v9107_v31  ;;  %v9170_v31 = vld [vmem:[#allocation7 + $0x224] ss:$16 sps:$4 sm:$0xff]  }
 0x112   :  { %2353 = vmatpush1.bf16.msra.mxu0 %v9102_v28 }
 0x113   :  { %2354 = vmatprep.subr.bf16.mxu0 %v9110_v29  ;;  %2517 = vmatpush1.bf16.msra.mxu1 %v9105_v34 }
 0x114   :  { %2518 = vmatprep.subr.bf16.mxu1 %v9113_v35 }
 0x116   :  { %2355 = vmatpush1.bf16.msra.mxu0 %v9108_v32  ;;  %v9173_v32 = vld [vmem:[#allocation7 + $0x22c] ss:$16 sps:$4 sm:$0xff]  }
 0x117   :  { %2356 = vmatprep.subr.bf16.mxu0 %v9116_v33  ;;  %2519 = vmatpush1.bf16.msra.mxu1 %v9111_v38  ;;  %v9171_v38 = vld [vmem:[#allocation7 + $0x228] ss:$16 sps:$4 sm:$0xff]  }
 0x118   :  { %2520 = vmatprep.subr.bf16.mxu1 %v9119_v39 }
 0x11a   :  { %2357 = vmatpush1.bf16.msra.mxu0 %v9114_v36 }
 0x11b   :  { %2358 = vmatprep.subr.bf16.mxu0 %v9122_v37  ;;  %2521 = vmatpush1.bf16.msra.mxu1 %v9117_v42  ;;  %v9168_v37 = vld [vmem:[#allocation7 + $0x220] ss:$16 sps:$4 sm:$0xff]  }
 0x11c   :  { %2522 = vmatprep.subr.bf16.mxu1 %v9125_v43  ;;  %v9174_v43 = vld [vmem:[#allocation7 + $0x240] ss:$16 sps:$4 sm:$0xff]  }
 0x11e   :  { %2359 = vmatpush1.bf16.msra.mxu0 %v9120_v40  ;;  %v9176_v40 = vld [vmem:[#allocation7 + $0x244] ss:$16 sps:$4 sm:$0xff]  }
 0x11f   :  { %2360 = vmatprep.subr.bf16.mxu0 %v9128_v41  ;;  %2523 = vmatpush1.bf16.msra.mxu1 %v9123_v46  ;;  %v9179_v41 = vld [vmem:[#allocation7 + $0x24c] ss:$16 sps:$4 sm:$0xff]  }
 0x120   :  { %2524 = vmatprep.subr.bf16.mxu1 %v9131_v47  ;;  %v9185_v46 = vld [vmem:[#allocation7 + $0x26c] ss:$16 sps:$4 sm:$0xff]   ;;  %v9180_v47 = vld [vmem:[#allocation7 + $0x260] ss:$16 sps:$4 sm:$0xff]  }
 0x122   :  { %2361 = vmatpush1.bf16.msra.mxu0 %v9126_v44  ;;  %v9177_v44 = vld [vmem:[#allocation7 + $0x248] ss:$16 sps:$4 sm:$0xff]  }
 0x123   :  { %2362 = vmatprep.subr.bf16.mxu0 %v9134_v45  ;;  %2525 = vmatpush1.bf16.msra.mxu1 %v9129_v50  ;;  %v9182_v45 = vld [vmem:[#allocation7 + $0x264] ss:$16 sps:$4 sm:$0xff]   ;;  %v9191_v50 = vld [vmem:[#allocation7 + $0x28c] ss:$16 sps:$4 sm:$0xff]  }
 0x124   :  { %2526 = vmatprep.subr.bf16.mxu1 %v9137_v51  ;;  %v9186_v51 = vld [vmem:[#allocation7 + $0x280] ss:$16 sps:$4 sm:$0xff]  }
 0x126   :  { %2363 = vmatpush1.bf16.msra.mxu0 %v9132_v48  ;;  %v9183_v48 = vld [vmem:[#allocation7 + $0x268] ss:$16 sps:$4 sm:$0xff]  }
 0x127   :  { %2364 = vmatprep.subr.bf16.mxu0 %v9140_v49  ;;  %2527 = vmatpush1.bf16.msra.mxu1 %v9135_v54  ;;  %v9188_v49 = vld [vmem:[#allocation7 + $0x284] ss:$16 sps:$4 sm:$0xff]   ;;  %v9197_v54 = vld [vmem:[#allocation7 + $0x2ac] ss:$16 sps:$4 sm:$0xff]  }
 0x128   :  { %2528 = vmatprep.subr.bf16.mxu1 %v9143_v55  ;;  %v9192_v55 = vld [vmem:[#allocation7 + $0x2a0] ss:$16 sps:$4 sm:$0xff]  }
 0x12a   :  { %2365 = vmatpush1.bf16.msra.mxu0 %v9138_v52  ;;  %v9189_v52 = vld [vmem:[#allocation7 + $0x288] ss:$16 sps:$4 sm:$0xff]  }
 0x12b   :  { %2366 = vmatprep.subr.bf16.mxu0 %v9146_v53  ;;  %2529 = vmatpush1.bf16.msra.mxu1 %v9141_v56  ;;  %v9194_v53 = vld [vmem:[#allocation7 + $0x2a4] ss:$16 sps:$4 sm:$0xff]   ;;  %v9195_v56 = vld [vmem:[#allocation7 + $0x2a8] ss:$16 sps:$4 sm:$0xff]  }
 0x12c   :  { %2530 = vmatprep.subr.bf16.mxu1 %v9149_v58  ;;  %v9203_v58 = vld [vmem:[#allocation7 + $0x2cc] ss:$16 sps:$4 sm:$0xff]  }
 0x12e   :  { %2367 = vmatpush1.bf16.msra.mxu0 %v9144_v57  ;;  %v9200_v57 = vld [vmem:[#allocation7 + $0x2c4] ss:$16 sps:$4 sm:$0xff]  }
 0x12f   :  { %2368 = vmatprep.subr.bf16.mxu0 %v9152_v59  ;;  %2531 = vmatpush1.bf16.msra.mxu1 %v9147_v60  ;;  %v9198_v59 = vld [vmem:[#allocation7 + $0x2c0] ss:$16 sps:$4 sm:$0xff]   ;;  %v9201_v60 = vld [vmem:[#allocation7 + $0x2c8] ss:$16 sps:$4 sm:$0xff]  }
 0x130   :  { %2532 = vmatprep.subr.bf16.mxu1 %v9155_v62  ;;  %v9209_v62 = vld [vmem:[#allocation7 + $0x2ec] ss:$16 sps:$4 sm:$0xff]  }
 0x132   :  { %2369 = vmatpush1.bf16.msra.mxu0 %v9150_v61  ;;  %v9206_v61 = vld [vmem:[#allocation7 + $0x2e4] ss:$16 sps:$4 sm:$0xff]  }
 0x133   :  { %2370 = vmatprep.subr.bf16.mxu0 %v9158_v63  ;;  %2533 = vmatpush1.bf16.msra.mxu1 %v9153_v1 }
 0x134   :  { %2534 = vmatprep.subr.bf16.mxu1 %v9161_v4  ;;  %v9207_v4 = vld [vmem:[#allocation7 + $0x2e8] ss:$16 sps:$4 sm:$0xff]  }
 0x136   :  { %2371 = vmatpush1.bf16.msra.mxu0 %v9156_v3  ;;  %v9204_v3 = vld [vmem:[#allocation7 + $0x2e0] ss:$16 sps:$4 sm:$0xff]  }
 0x137   :  { %2381 = vmatprep.subr.bf16.mxu0 %v9164_v5  ;;  %2535 = vmatpush1.bf16.msra.mxu1 %v9159_v6  ;;  %v9212_v6 = vld [vmem:[#allocation7 + $0x304] ss:$16 sps:$4 sm:$0xff]  }
 0x138   :  { %2545 = vmatprep.subr.bf16.mxu1 %v9167_v7  ;;  %v9215_v7 = vld [vmem:[#allocation7 + $0x30c] ss:$16 sps:$4 sm:$0xff]  }
 0x1ac   :  { %v635_v17 = vpop.f32.mrb[0].mxu0  ;;  %v10510_v29 = vpop.f32.mrb[0].mxu1 }
 0x1ad   :  { %v636_v19 = vadd.f32 %v635_v17, %v244_v15  ;;  %v637_v20 = vpop.f32.mrb[1].mxu0  ;;  %v678_v33 = vpop.f32.mrb[1].mxu1  ;;  %v9218_v15 = vld [vmem:[#allocation7 + $0x324] ss:$16 sps:$4 sm:$0xff]   ;;  %v9216_v17 = vld [vmem:[#allocation7 + $0x320] ss:$16 sps:$4 sm:$0xff]  }
 0x1ae   :  { %v638_v21 = vadd.f32 %v637_v20, %v248_v16  ;;  %v639_v22 = vpop.f32.mrb[2].mxu0  ;;  %v679_v34 = vadd.f32 %v678_v33, %v256_v27  ;;  %v680_v35 = vpop.f32.mrb[2].mxu1  ;;  %v9221_v16 = vld [vmem:[#allocation7 + $0x32c] ss:$16 sps:$4 sm:$0xff]   ;;  %v9224_v20 = vld [vmem:[#allocation7 + $0x344] ss:$16 sps:$4 sm:$0xff]  }
 0x1af   :  { %v765_v23 = vmax.f32 %v636_v19, 0.0  ;;  %v640_v24 = vpop.f32.mrb[3].mxu0  ;;  %v681_v36 = vpop.f32.mrb[3].mxu1  ;;  %v9219_v19 = vld [vmem:[#allocation7 + $0x328] ss:$16 sps:$4 sm:$0xff]   ;;  %v263_v35 = vsub.s32 5, %v10491_v10 }
 0x1b0   :  { %v766_v2 = vmax.f32 %v638_v21, 0.0  ;;  %v768_v39 = vmax.f32 %v679_v34, 0.0  ;;  %v9227_v21 = vld [vmem:[#allocation7 + $0x34c] ss:$16 sps:$4 sm:$0xff]   ;;  %v9222_v22 = vld [vmem:[#allocation7 + $0x340] ss:$16 sps:$4 sm:$0xff]  }
 0x1b1   :  { %v1029_v30 = vpack.c.bf16 %v765_v23, %v765_v23  ;;  %v9225_v23 = vld [vmem:[#allocation7 + $0x348] ss:$16 sps:$4 sm:$0xff]   ;;  %v9230_v24 = vld [vmem:[#allocation7 + $0x364] ss:$16 sps:$4 sm:$0xff]   ;;  %v9245_v34 = vld [vmem:[#allocation7 + $0x3ac] ss:$16 sps:$4 sm:$0xff]  }
 0x1b2   :  { %v1030_v28 = vpack.c.bf16 %v766_v2, %v766_v2  ;;  %v1032_v42 = vpack.c.bf16 %v768_v39, %v768_v39  ;;  %v9233_v2 = vld [vmem:[#allocation7 + $0x36c] ss:$16 sps:$4 sm:$0xff]   ;;  %v9236_v27 = vld [vmem:[#allocation7 + $0x384] ss:$16 sps:$4 sm:$0xff]  }
 0x1b3   :  { %v9242_v33 = vld [vmem:[#allocation7 + $0x3a4] ss:$16 sps:$4 sm:$0xff]  }
 0x1b4   :  { %2372 = vmatprep.mubr.bf16.mxu0 %v1030_v28  ;;  %2536 = vmatprep.mubr.bf16.mxu1 %v1030_v28  ;;  %v9239_v28 = vld [vmem:[#allocation7 + $0x38c] ss:$16 sps:$4 sm:$0xff]  }
 0x1b5   :  { %2373 = vmatmul.mubr.bf16.vlgmr.msra.gmra.mrb[8].mxu0 %v1029_v30  ;;  %2537 = vmatmul.mubr.bf16.vlgmr.msra.gmra.mrb[8].mxu1 %v1029_v30  ;;  %v10517_v30 = vsub.s32 2, %v10491_v10 }
 0x1b6   :  { %2382 = vmatpush1.bf16.msra.mxu0 %v9162_v25  ;;  %2546 = vmatpush1.bf16.msra.mxu1 %v9165_v26  ;;  %v9228_v25 = vld [vmem:[#allocation7 + $0x360] ss:$16 sps:$4 sm:$0xff]   ;;  %v9231_v26 = vld [vmem:[#allocation7 + $0x368] ss:$16 sps:$4 sm:$0xff]  }
 0x1b7   :  { %2383 = vmatprep.subr.bf16.mxu0 %v9170_v31  ;;  %2547 = vmatprep.subr.bf16.mxu1 %v9173_v32  ;;  %v9234_v31 = vld [vmem:[#allocation7 + $0x380] ss:$16 sps:$4 sm:$0xff]   ;;  %v9237_v32 = vld [vmem:[#allocation7 + $0x388] ss:$16 sps:$4 sm:$0xff]   ;;  %v252_v36 = vrot.slane %v10493_v12, %v10517_v30 }
 0x1b8   :  { %2413 = vmatprep.mubr.bf16.mxu0 %v1032_v42  ;;  %2577 = vmatprep.mubr.bf16.mxu1 %v1032_v42  ;;  %v264_v42 = vrot.slane %v10493_v12, %v263_v35 }
 0x1ba   :  { %2384 = vmatpush1.bf16.msra.mxu0 %v9168_v37  ;;  %2548 = vmatpush1.bf16.msra.mxu1 %v9171_v38  ;;  %v9240_v37 = vld [vmem:[#allocation7 + $0x3a0] ss:$16 sps:$4 sm:$0xff]   ;;  %v9243_v38 = vld [vmem:[#allocation7 + $0x3a8] ss:$16 sps:$4 sm:$0xff]  }
 0x1bb   :  { %2385 = vmatprep.subr.bf16.mxu0 %v9176_v40  ;;  %2549 = vmatprep.subr.bf16.mxu1 %v9179_v41  ;;  %v9248_v40 = vld [vmem:[#allocation7 + $0x3c4] ss:$16 sps:$4 sm:$0xff]   ;;  %v9251_v41 = vld [vmem:[#allocation7 + $0x3cc] ss:$16 sps:$4 sm:$0xff]  }
 0x1be   :  { %2386 = vmatpush1.bf16.msra.mxu0 %v9174_v43  ;;  %2550 = vmatpush1.bf16.msra.mxu1 %v9177_v44 }
 0x1bf   :  { %2387 = vmatprep.subr.bf16.mxu0 %v9182_v45  ;;  %2551 = vmatprep.subr.bf16.mxu1 %v9185_v46  ;;  %v677_v45 = vadd.f32 %v10510_v29, %v252_v36  ;;  %v9263_v29 = vld [vmem:[#allocation7 + $0x40c] ss:$16 sps:$4 sm:$0xff]  }
 0x1c0   :  { %v9311_v36 = vld [vmem:[#allocation7 + $0x50c] ss:$16 sps:$4 sm:$0xff]  }
 0x1c2   :  { %2388 = vmatpush1.bf16.msra.mxu0 %v9180_v47  ;;  %2552 = vmatpush1.bf16.msra.mxu1 %v9183_v48  ;;  %v9246_v47 = vld [vmem:[#allocation7 + $0x3c0] ss:$16 sps:$4 sm:$0xff]   ;;  %v9249_v48 = vld [vmem:[#allocation7 + $0x3c8] ss:$16 sps:$4 sm:$0xff]  }
 0x1c3   :  { %2389 = vmatprep.subr.bf16.mxu0 %v9188_v49  ;;  %2553 = vmatprep.subr.bf16.mxu1 %v9191_v50  ;;  %v9254_v49 = vld [vmem:[#allocation7 + $0x3e4] ss:$16 sps:$4 sm:$0xff]   ;;  %v9257_v50 = vld [vmem:[#allocation7 + $0x3ec] ss:$16 sps:$4 sm:$0xff]  }
 0x1c6   :  { %2390 = vmatpush1.bf16.msra.mxu0 %v9186_v51  ;;  %2554 = vmatpush1.bf16.msra.mxu1 %v9189_v52  ;;  %v9252_v52 = vld [vmem:[#allocation7 + $0x3e0] ss:$16 sps:$4 sm:$0xff]  }
 0x1c7   :  { %2391 = vmatprep.subr.bf16.mxu0 %v9194_v53  ;;  %2555 = vmatprep.subr.bf16.mxu1 %v9197_v54  ;;  %v767_v53 = vmax.f32 %v677_v45, 0.0  ;;  %v9255_v54 = vld [vmem:[#allocation7 + $0x3e8] ss:$16 sps:$4 sm:$0xff]   ;;  %v9320_v45 = vld [vmem:[#allocation7 + $0x544] ss:$16 sps:$4 sm:$0xff]  }
 0x1ca   :  { %2392 = vmatpush1.bf16.msra.mxu0 %v9192_v55  ;;  %2556 = vmatpush1.bf16.msra.mxu1 %v9195_v56  ;;  %v9260_v55 = vld [vmem:[#allocation7 + $0x404] ss:$16 sps:$4 sm:$0xff]  }
 0x1cb   :  { %2393 = vmatprep.subr.bf16.mxu0 %v9200_v57  ;;  %2557 = vmatprep.subr.bf16.mxu1 %v9203_v58  ;;  %v9258_v57 = vld [vmem:[#allocation7 + $0x400] ss:$16 sps:$4 sm:$0xff]   ;;  %v9261_v58 = vld [vmem:[#allocation7 + $0x408] ss:$16 sps:$4 sm:$0xff]  }
 0x1cc   :  { %v10512_v63 = vpop.f32.mrb[4].mxu0 }
 0x1cd   :  { %v10514_v1 = vpop.f32.mrb[5].mxu0  ;;  %v10522_v39 = vpop.f32.mrb[4].mxu1 }
 0x1ce   :  { %2394 = vmatpush1.bf16.msra.mxu0 %v9198_v59  ;;  %2558 = vmatpush1.bf16.msra.mxu1 %v9201_v60  ;;  %v721_v5 = vpop.f32.mrb[6].mxu0  ;;  %v10527_v43 = vpop.f32.mrb[5].mxu1  ;;  %v720_v51 = vadd.f32 %v10514_v1, %v264_v42  ;;  %v1031_v59 = vpack.c.bf16 %v767_v53, %v767_v53  ;;  %v9266_v60 = vld [vmem:[#allocation7 + $0x424] ss:$16 sps:$4 sm:$0xff]   ;;  %v9264_v1 = vld [vmem:[#allocation7 + $0x420] ss:$16 sps:$4 sm:$0xff]  }
 0x1cf   :  { %2395 = vmatprep.subr.bf16.mxu0 %v9206_v61  ;;  %2559 = vmatprep.subr.bf16.mxu1 %v9209_v62  ;;  %v722_v8 = vpop.f32.mrb[7].mxu0  ;;  %v762_v44 = vpop.f32.mrb[6].mxu1  ;;  %v9269_v61 = vld [vmem:[#allocation7 + $0x42c] ss:$16 sps:$4 sm:$0xff]   ;;  %v9312_v42 = vld [vmem:[#allocation7 + $0x520] ss:$16 sps:$4 sm:$0xff]  }
 0x1d0   :  { %v763_v46 = vpop.f32.mrb[7].mxu1  ;;  %v770_v56 = vmax.f32 %v720_v51, 0.0  ;;  %v9275_v5 = vld [vmem:[#allocation7 + $0x44c] ss:$16 sps:$4 sm:$0xff]   ;;  %v9278_v8 = vld [vmem:[#allocation7 + $0x464] ss:$16 sps:$4 sm:$0xff]  }
 0x1d1   :  { %v9315_v44 = vld [vmem:[#allocation7 + $0x528] ss:$16 sps:$4 sm:$0xff]   ;;  %v9323_v46 = vld [vmem:[#allocation7 + $0x54c] ss:$16 sps:$4 sm:$0xff]   ;;  %v9324_v51 = vld [vmem:[#allocation7 + $0x560] ss:$16 sps:$4 sm:$0xff]  }
 0x1d2   :  { %2396 = vmatpush1.bf16.msra.mxu0 %v9204_v3  ;;  %2560 = vmatpush1.bf16.msra.mxu1 %v9207_v4  ;;  %v1034_v62 = vpack.c.bf16 %v770_v56, %v770_v56  ;;  %v9267_v3 = vld [vmem:[#allocation7 + $0x428] ss:$16 sps:$4 sm:$0xff]   ;;  %v9272_v4 = vld [vmem:[#allocation7 + $0x444] ss:$16 sps:$4 sm:$0xff]  }
 0x1d3   :  { %2397 = vmatprep.subr.bf16.mxu0 %v9212_v6  ;;  %2561 = vmatprep.subr.bf16.mxu1 %v9215_v7  ;;  %v9270_v6 = vld [vmem:[#allocation7 + $0x440] ss:$16 sps:$4 sm:$0xff]   ;;  %v9273_v7 = vld [vmem:[#allocation7 + $0x448] ss:$16 sps:$4 sm:$0xff]   ;;  %v9332_v53 = vld [vmem:[#allocation7 + $0x584] ss:$16 sps:$4 sm:$0xff]  }
 0x1d4   :  { %v9333_v56 = vld [vmem:[#allocation7 + $0x588] ss:$16 sps:$4 sm:$0xff]  }
 0x1d6   :  { %2398 = vmatpush1.bf16.msra.mxu0 %v9210_v9  ;;  %2562 = vmatpush1.bf16.msra.mxu1 %v9213_v11  ;;  %v9281_v9 = vld [vmem:[#allocation7 + $0x46c] ss:$16 sps:$4 sm:$0xff]   ;;  %v9276_v11 = vld [vmem:[#allocation7 + $0x460] ss:$16 sps:$4 sm:$0xff]  }
 0x1d7   :  { %2399 = vmatprep.subr.bf16.mxu0 %v9218_v15  ;;  %2563 = vmatprep.subr.bf16.mxu1 %v9221_v16  ;;  %v9279_v15 = vld [vmem:[#allocation7 + $0x468] ss:$16 sps:$4 sm:$0xff]   ;;  %v9284_v16 = vld [vmem:[#allocation7 + $0x484] ss:$16 sps:$4 sm:$0xff]  }
 0x1da   :  { %2400 = vmatpush1.bf16.msra.mxu0 %v9216_v17  ;;  %2564 = vmatpush1.bf16.msra.mxu1 %v9219_v19  ;;  %v9287_v17 = vld [vmem:[#allocation7 + $0x48c] ss:$16 sps:$4 sm:$0xff]   ;;  %v9282_v19 = vld [vmem:[#allocation7 + $0x480] ss:$16 sps:$4 sm:$0xff]  }
 0x1db   :  { %2401 = vmatprep.subr.bf16.mxu0 %v9224_v20  ;;  %2565 = vmatprep.subr.bf16.mxu1 %v9227_v21  ;;  %v9285_v20 = vld [vmem:[#allocation7 + $0x488] ss:$16 sps:$4 sm:$0xff]   ;;  %v9290_v21 = vld [vmem:[#allocation7 + $0x4a4] ss:$16 sps:$4 sm:$0xff]  }
 0x1de   :  { %2402 = vmatpush1.bf16.msra.mxu0 %v9222_v22  ;;  %2566 = vmatpush1.bf16.msra.mxu1 %v9225_v23  ;;  %v9293_v22 = vld [vmem:[#allocation7 + $0x4ac] ss:$16 sps:$4 sm:$0xff]   ;;  %v9288_v23 = vld [vmem:[#allocation7 + $0x4a0] ss:$16 sps:$4 sm:$0xff]  }
 0x1df   :  { %2403 = vmatprep.subr.bf16.mxu0 %v9230_v24  ;;  %2567 = vmatprep.subr.bf16.mxu1 %v9233_v2  ;;  %v9291_v24 = vld [vmem:[#allocation7 + $0x4a8] ss:$16 sps:$4 sm:$0xff]   ;;  %v9296_v2 = vld [vmem:[#allocation7 + $0x4c4] ss:$16 sps:$4 sm:$0xff]  }
 0x1e2   :  { %2404 = vmatpush1.bf16.msra.mxu0 %v9228_v25  ;;  %2568 = vmatpush1.bf16.msra.mxu1 %v9231_v26  ;;  %v9299_v25 = vld [vmem:[#allocation7 + $0x4cc] ss:$16 sps:$4 sm:$0xff]   ;;  %v9294_v26 = vld [vmem:[#allocation7 + $0x4c0] ss:$16 sps:$4 sm:$0xff]  }
 0x1e3   :  { %2405 = vmatprep.subr.bf16.mxu0 %v9236_v27  ;;  %2569 = vmatprep.subr.bf16.mxu1 %v9239_v28  ;;  %v9297_v27 = vld [vmem:[#allocation7 + $0x4c8] ss:$16 sps:$4 sm:$0xff]   ;;  %v9302_v28 = vld [vmem:[#allocation7 + $0x4e4] ss:$16 sps:$4 sm:$0xff]  }
 0x1e6   :  { %2406 = vmatpush1.bf16.msra.mxu0 %v9234_v31  ;;  %2570 = vmatpush1.bf16.msra.mxu1 %v9237_v32  ;;  %v9305_v31 = vld [vmem:[#allocation7 + $0x4ec] ss:$16 sps:$4 sm:$0xff]   ;;  %v9300_v32 = vld [vmem:[#allocation7 + $0x4e0] ss:$16 sps:$4 sm:$0xff]  }
 0x1e7   :  { %2407 = vmatprep.subr.bf16.mxu0 %v9242_v33  ;;  %2571 = vmatprep.subr.bf16.mxu1 %v9245_v34  ;;  %v9303_v33 = vld [vmem:[#allocation7 + $0x4e8] ss:$16 sps:$4 sm:$0xff]   ;;  %v9308_v34 = vld [vmem:[#allocation7 + $0x504] ss:$16 sps:$4 sm:$0xff]  }
 0x1ea   :  { %2408 = vmatpush1.bf16.msra.mxu0 %v9240_v37  ;;  %2572 = vmatpush1.bf16.msra.mxu1 %v9243_v38  ;;  %v9306_v37 = vld [vmem:[#allocation7 + $0x500] ss:$16 sps:$4 sm:$0xff]   ;;  %v9309_v38 = vld [vmem:[#allocation7 + $0x508] ss:$16 sps:$4 sm:$0xff]  }
 0x1eb   :  { %2409 = vmatprep.subr.bf16.mxu0 %v9248_v40  ;;  %2573 = vmatprep.subr.bf16.mxu1 %v9251_v41  ;;  %v9314_v40 = vld [vmem:[#allocation7 + $0x524] ss:$16 sps:$4 sm:$0xff]   ;;  %v9317_v41 = vld [vmem:[#allocation7 + $0x52c] ss:$16 sps:$4 sm:$0xff]  }
 0x1ee   :  { %2410 = vmatpush1.bf16.msra.mxu0 %v9246_v47  ;;  %2574 = vmatpush1.bf16.msra.mxu1 %v9249_v48  ;;  %v9318_v47 = vld [vmem:[#allocation7 + $0x540] ss:$16 sps:$4 sm:$0xff]   ;;  %v9321_v48 = vld [vmem:[#allocation7 + $0x548] ss:$16 sps:$4 sm:$0xff]  }
 0x1ef   :  { %2411 = vmatprep.subr.bf16.mxu0 %v9254_v49  ;;  %2575 = vmatprep.subr.bf16.mxu1 %v9257_v50  ;;  %v9326_v49 = vld [vmem:[#allocation7 + $0x564] ss:$16 sps:$4 sm:$0xff]   ;;  %v9329_v50 = vld [vmem:[#allocation7 + $0x56c] ss:$16 sps:$4 sm:$0xff]  }
 0x1f2   :  { %2412 = vmatpush1.bf16.msra.mxu0 %v9252_v52  ;;  %2576 = vmatpush1.bf16.msra.mxu1 %v9255_v54  ;;  %v9327_v52 = vld [vmem:[#allocation7 + $0x568] ss:$16 sps:$4 sm:$0xff]   ;;  %v9335_v54 = vld [vmem:[#allocation7 + $0x58c] ss:$16 sps:$4 sm:$0xff]  }
 0x1f3   :  { %2422 = vmatprep.subr.bf16.mxu0 %v9260_v55  ;;  %2586 = vmatprep.subr.bf16.mxu1 %v9263_v29  ;;  %v259_v55 = vsub.s32 4, %v10491_v10  ;;  %v9330_v29 = vld [vmem:[#allocation7 + $0x580] ss:$16 sps:$4 sm:$0xff]  }
 0x1f5   :  { %2414 = vmatmul.mubr.bf16.vlgmr.msra.gmra.mrb[8].mxu0 %v1031_v59  ;;  %2578 = vmatmul.mubr.bf16.vlgmr.msra.gmra.mrb[8].mxu1 %v1031_v59  ;;  %v271_v59 = vsub.s32 7, %v10491_v10 }
 0x1f6   :  { %2423 = vmatpush1.bf16.msra.mxu0 %v9258_v57  ;;  %2587 = vmatpush1.bf16.msra.mxu1 %v9261_v58  ;;  %v9338_v57 = vld [vmem:[#allocation7 + $0x5a4] ss:$16 sps:$4 sm:$0xff]   ;;  %v9341_v58 = vld [vmem:[#allocation7 + $0x5ac] ss:$16 sps:$4 sm:$0xff]  }
 0x1f7   :  { %2424 = vmatprep.subr.bf16.mxu0 %v9266_v60  ;;  %2588 = vmatprep.subr.bf16.mxu1 %v9269_v61  ;;  %v260_v60 = vrot.slane %v10493_v12, %v259_v55  ;;  %v9336_v61 = vld [vmem:[#allocation7 + $0x5a0] ss:$16 sps:$4 sm:$0xff]  }
 0x1f8   :  { %2454 = vmatprep.mubr.bf16.mxu0 %v1034_v62  ;;  %2618 = vmatprep.mubr.bf16.mxu1 %v1034_v62  ;;  %v9339_v62 = vld [vmem:[#allocation7 + $0x5a8] ss:$16 sps:$4 sm:$0xff]  }
 0x1fa   :  { %2425 = vmatpush1.bf16.msra.mxu0 %v9264_v1  ;;  %2589 = vmatpush1.bf16.msra.mxu1 %v9267_v3  ;;  %v9344_v1 = vld [vmem:[#allocation7 + $0x5c4] ss:$16 sps:$4 sm:$0xff]   ;;  %v9347_v3 = vld [vmem:[#allocation7 + $0x5cc] ss:$16 sps:$4 sm:$0xff]  }
 0x1fb   :  { %2426 = vmatprep.subr.bf16.mxu0 %v9272_v4  ;;  %2590 = vmatprep.subr.bf16.mxu1 %v9275_v5  ;;  %v9342_v4 = vld [vmem:[#allocation7 + $0x5c0] ss:$16 sps:$4 sm:$0xff]   ;;  %v9345_v5 = vld [vmem:[#allocation7 + $0x5c8] ss:$16 sps:$4 sm:$0xff]  }
 0x1fe   :  { %2427 = vmatpush1.bf16.msra.mxu0 %v9270_v6  ;;  %2591 = vmatpush1.bf16.msra.mxu1 %v9273_v7  ;;  %v272_v6 = vrot.slane %v10493_v12, %v271_v59  ;;  %v718_v7 = vadd.f32 %v10512_v63, %v260_v60  ;;  %v9354_v63 = vld [vmem:[#allocation7 + $0x600] ss:$16 sps:$4 sm:$0xff]   ;;  %v9405_v60 = vld [vmem:[#allocation7 + $0x708] ss:$16 sps:$4 sm:$0xff]  }
 0x1ff   :  { %2428 = vmatprep.subr.bf16.mxu0 %v9278_v8  ;;  %2592 = vmatprep.subr.bf16.mxu1 %v9281_v9  ;;  %v9350_v8 = vld [vmem:[#allocation7 + $0x5e4] ss:$16 sps:$4 sm:$0xff]   ;;  %v9353_v9 = vld [vmem:[#allocation7 + $0x5ec] ss:$16 sps:$4 sm:$0xff]  }
 0x202   :  { %2429 = vmatpush1.bf16.msra.mxu0 %v9276_v11  ;;  %2593 = vmatpush1.bf16.msra.mxu1 %v9279_v15  ;;  %v761_v11 = vadd.f32 %v10527_v43, %v272_v6  ;;  %v769_v15 = vmax.f32 %v718_v7, 0.0  ;;  %v9414_v6 = vld [vmem:[#allocation7 + $0x740] ss:$16 sps:$4 sm:$0xff]   ;;  %v9417_v7 = vld [vmem:[#allocation7 + $0x748] ss:$16 sps:$4 sm:$0xff]  }
 0x203   :  { %2430 = vmatprep.subr.bf16.mxu0 %v9284_v16  ;;  %2594 = vmatprep.subr.bf16.mxu1 %v9287_v17  ;;  %v9348_v16 = vld [vmem:[#allocation7 + $0x5e0] ss:$16 sps:$4 sm:$0xff]   ;;  %v9351_v17 = vld [vmem:[#allocation7 + $0x5e8] ss:$16 sps:$4 sm:$0xff]  }
 0x206   :  { %2431 = vmatpush1.bf16.msra.mxu0 %v9282_v19  ;;  %2595 = vmatpush1.bf16.msra.mxu1 %v9285_v20  ;;  %v9356_v19 = vld [vmem:[#allocation7 + $0x604] ss:$16 sps:$4 sm:$0xff]   ;;  %v9359_v20 = vld [vmem:[#allocation7 + $0x60c] ss:$16 sps:$4 sm:$0xff]  }
 0x207   :  { %2432 = vmatprep.subr.bf16.mxu0 %v9290_v21  ;;  %2596 = vmatprep.subr.bf16.mxu1 %v9293_v22  ;;  %v772_v21 = vmax.f32 %v761_v11, 0.0  ;;  %v1033_v22 = vpack.c.bf16 %v769_v15, %v769_v15  ;;  %v9420_v11 = vld [vmem:[#allocation7 + $0x760] ss:$16 sps:$4 sm:$0xff]   ;;  %v9423_v15 = vld [vmem:[#allocation7 + $0x768] ss:$16 sps:$4 sm:$0xff]  }
 0x209   :  { %v1036_v43 = vpack.c.bf16 %v772_v21, %v772_v21  ;;  %v267_v21 = vsub.s32 6, %v10491_v10 }
 0x20a   :  { %2433 = vmatpush1.bf16.msra.mxu0 %v9288_v23  ;;  %2597 = vmatpush1.bf16.msra.mxu1 %v9291_v24  ;;  %v9357_v23 = vld [vmem:[#allocation7 + $0x608] ss:$16 sps:$4 sm:$0xff]   ;;  %v9362_v24 = vld [vmem:[#allocation7 + $0x624] ss:$16 sps:$4 sm:$0xff]  }
 0x20b   :  { %2434 = vmatprep.subr.bf16.mxu0 %v9296_v2  ;;  %2598 = vmatprep.subr.bf16.mxu1 %v9299_v25  ;;  %v9365_v2 = vld [vmem:[#allocation7 + $0x62c] ss:$16 sps:$4 sm:$0xff]   ;;  %v9360_v25 = vld [vmem:[#allocation7 + $0x620] ss:$16 sps:$4 sm:$0xff]  }
 0x20e   :  { %2435 = vmatpush1.bf16.msra.mxu0 %v9294_v26  ;;  %2599 = vmatpush1.bf16.msra.mxu1 %v9297_v27  ;;  %v9363_v26 = vld [vmem:[#allocation7 + $0x628] ss:$16 sps:$4 sm:$0xff]   ;;  %v9368_v27 = vld [vmem:[#allocation7 + $0x644] ss:$16 sps:$4 sm:$0xff]  }
 0x20f   :  { %2436 = vmatprep.subr.bf16.mxu0 %v9302_v28  ;;  %2600 = vmatprep.subr.bf16.mxu1 %v9305_v31  ;;  %v9371_v28 = vld [vmem:[#allocation7 + $0x64c] ss:$16 sps:$4 sm:$0xff]   ;;  %v9366_v31 = vld [vmem:[#allocation7 + $0x640] ss:$16 sps:$4 sm:$0xff]  }
 0x212   :  { %2437 = vmatpush1.bf16.msra.mxu0 %v9300_v32  ;;  %2601 = vmatpush1.bf16.msra.mxu1 %v9303_v33  ;;  %v9369_v32 = vld [vmem:[#allocation7 + $0x648] ss:$16 sps:$4 sm:$0xff]   ;;  %v9374_v33 = vld [vmem:[#allocation7 + $0x664] ss:$16 sps:$4 sm:$0xff]  }
 0x213   :  { %2438 = vmatprep.subr.bf16.mxu0 %v9308_v34  ;;  %2602 = vmatprep.subr.bf16.mxu1 %v9311_v36  ;;  %v9377_v34 = vld [vmem:[#allocation7 + $0x66c] ss:$16 sps:$4 sm:$0xff]   ;;  %v9372_v36 = vld [vmem:[#allocation7 + $0x660] ss:$16 sps:$4 sm:$0xff]  }
 0x216   :  { %2439 = vmatpush1.bf16.msra.mxu0 %v9306_v37  ;;  %2603 = vmatpush1.bf16.msra.mxu1 %v9309_v38  ;;  %v9375_v37 = vld [vmem:[#allocation7 + $0x668] ss:$16 sps:$4 sm:$0xff]   ;;  %v9380_v38 = vld [vmem:[#allocation7 + $0x684] ss:$16 sps:$4 sm:$0xff]  }
 0x217   :  { %2440 = vmatprep.subr.bf16.mxu0 %v9314_v40  ;;  %2604 = vmatprep.subr.bf16.mxu1 %v9317_v41  ;;  %v9383_v40 = vld [vmem:[#allocation7 + $0x68c] ss:$16 sps:$4 sm:$0xff]   ;;  %v9378_v41 = vld [vmem:[#allocation7 + $0x680] ss:$16 sps:$4 sm:$0xff]  }
 0x21a   :  { %2441 = vmatpush1.bf16.msra.mxu0 %v9312_v42  ;;  %2605 = vmatpush1.bf16.msra.mxu1 %v9315_v44  ;;  %v9381_v42 = vld [vmem:[#allocation7 + $0x688] ss:$16 sps:$4 sm:$0xff]   ;;  %v9386_v44 = vld [vmem:[#allocation7 + $0x6a4] ss:$16 sps:$4 sm:$0xff]  }
 0x21b   :  { %2442 = vmatprep.subr.bf16.mxu0 %v9320_v45  ;;  %2606 = vmatprep.subr.bf16.mxu1 %v9323_v46  ;;  %v9389_v45 = vld [vmem:[#allocation7 + $0x6ac] ss:$16 sps:$4 sm:$0xff]   ;;  %v9384_v46 = vld [vmem:[#allocation7 + $0x6a0] ss:$16 sps:$4 sm:$0xff]  }
 0x21e   :  { %2443 = vmatpush1.bf16.msra.mxu0 %v9318_v47  ;;  %2607 = vmatpush1.bf16.msra.mxu1 %v9321_v48  ;;  %v9387_v47 = vld [vmem:[#allocation7 + $0x6a8] ss:$16 sps:$4 sm:$0xff]   ;;  %v9392_v48 = vld [vmem:[#allocation7 + $0x6c4] ss:$16 sps:$4 sm:$0xff]  }
 0x21f   :  { %2444 = vmatprep.subr.bf16.mxu0 %v9326_v49  ;;  %2608 = vmatprep.subr.bf16.mxu1 %v9329_v50  ;;  %v9395_v49 = vld [vmem:[#allocation7 + $0x6cc] ss:$16 sps:$4 sm:$0xff]   ;;  %v9390_v50 = vld [vmem:[#allocation7 + $0x6c0] ss:$16 sps:$4 sm:$0xff]  }
 0x222   :  { %2445 = vmatpush1.bf16.msra.mxu0 %v9324_v51  ;;  %2609 = vmatpush1.bf16.msra.mxu1 %v9327_v52  ;;  %v9393_v51 = vld [vmem:[#allocation7 + $0x6c8] ss:$16 sps:$4 sm:$0xff]   ;;  %v9398_v52 = vld [vmem:[#allocation7 + $0x6e4] ss:$16 sps:$4 sm:$0xff]  }
 0x223   :  { %2446 = vmatprep.subr.bf16.mxu0 %v9332_v53  ;;  %2610 = vmatprep.subr.bf16.mxu1 %v9335_v54  ;;  %v9401_v53 = vld [vmem:[#allocation7 + $0x6ec] ss:$16 sps:$4 sm:$0xff]   ;;  %v9396_v54 = vld [vmem:[#allocation7 + $0x6e0] ss:$16 sps:$4 sm:$0xff]  }
 0x226   :  { %2447 = vmatpush1.bf16.msra.mxu0 %v9330_v29  ;;  %2611 = vmatpush1.bf16.msra.mxu1 %v9333_v56  ;;  %v9399_v29 = vld [vmem:[#allocation7 + $0x6e8] ss:$16 sps:$4 sm:$0xff]   ;;  %v9404_v56 = vld [vmem:[#allocation7 + $0x704] ss:$16 sps:$4 sm:$0xff]  }
 0x227   :  { %2448 = vmatprep.subr.bf16.mxu0 %v9338_v57  ;;  %2612 = vmatprep.subr.bf16.mxu1 %v9341_v58  ;;  %v9407_v57 = vld [vmem:[#allocation7 + $0x70c] ss:$16 sps:$4 sm:$0xff]   ;;  %v9402_v58 = vld [vmem:[#allocation7 + $0x700] ss:$16 sps:$4 sm:$0xff]  }
 0x22a   :  { %2449 = vmatpush1.bf16.msra.mxu0 %v9336_v61  ;;  %2613 = vmatpush1.bf16.msra.mxu1 %v9339_v62  ;;  %v9410_v61 = vld [vmem:[#allocation7 + $0x724] ss:$16 sps:$4 sm:$0xff]   ;;  %v9413_v62 = vld [vmem:[#allocation7 + $0x72c] ss:$16 sps:$4 sm:$0xff]  }
 0x22b   :  { %2450 = vmatprep.subr.bf16.mxu0 %v9344_v1  ;;  %2614 = vmatprep.subr.bf16.mxu1 %v9347_v3  ;;  %v9408_v1 = vld [vmem:[#allocation7 + $0x720] ss:$16 sps:$4 sm:$0xff]   ;;  %v9411_v3 = vld [vmem:[#allocation7 + $0x728] ss:$16 sps:$4 sm:$0xff]  }
 0x22e   :  { %2451 = vmatpush1.bf16.msra.mxu0 %v9342_v4  ;;  %2615 = vmatpush1.bf16.msra.mxu1 %v9345_v5  ;;  %v9416_v4 = vld [vmem:[#allocation7 + $0x744] ss:$16 sps:$4 sm:$0xff]   ;;  %v9419_v5 = vld [vmem:[#allocation7 + $0x74c] ss:$16 sps:$4 sm:$0xff]  }
 0x22f   :  { %2452 = vmatprep.subr.bf16.mxu0 %v9350_v8  ;;  %2616 = vmatprep.subr.bf16.mxu1 %v9353_v9  ;;  %v9422_v8 = vld [vmem:[#allocation7 + $0x764] ss:$16 sps:$4 sm:$0xff]   ;;  %v9425_v9 = vld [vmem:[#allocation7 + $0x76c] ss:$16 sps:$4 sm:$0xff]  }
 0x232   :  { %2453 = vmatpush1.bf16.msra.mxu0 %v9348_v16  ;;  %2617 = vmatpush1.bf16.msra.mxu1 %v9351_v17  ;;  %v9428_v16 = vld [vmem:[#allocation7 + $0x784] ss:$16 sps:$4 sm:$0xff]   ;;  %v9431_v17 = vld [vmem:[#allocation7 + $0x78c] ss:$16 sps:$4 sm:$0xff]  }
 0x233   :  { %2463 = vmatprep.subr.bf16.mxu0 %v9356_v19  ;;  %2627 = vmatprep.subr.bf16.mxu1 %v9359_v20  ;;  %v9426_v19 = vld [vmem:[#allocation7 + $0x780] ss:$16 sps:$4 sm:$0xff]   ;;  %v9429_v20 = vld [vmem:[#allocation7 + $0x788] ss:$16 sps:$4 sm:$0xff]  }
 0x235   :  { %2455 = vmatmul.mubr.bf16.vlgmr.msra.gmra.mrb[8].mxu0 %v1033_v22  ;;  %2619 = vmatmul.mubr.bf16.vlgmr.msra.gmra.mrb[8].mxu1 %v1033_v22  ;;  %v9434_v22 = vld [vmem:[#allocation7 + $0x7a4] ss:$16 sps:$4 sm:$0xff]  }
 0x236   :  { %2464 = vmatpush1.bf16.msra.mxu0 %v9354_v63  ;;  %2628 = vmatpush1.bf16.msra.mxu1 %v9357_v23  ;;  %v9437_v63 = vld [vmem:[#allocation7 + $0x7ac] ss:$16 sps:$4 sm:$0xff]   ;;  %v9432_v23 = vld [vmem:[#allocation7 + $0x7a0] ss:$16 sps:$4 sm:$0xff]  }
 0x237   :  { %2465 = vmatprep.subr.bf16.mxu0 %v9362_v24  ;;  %2629 = vmatprep.subr.bf16.mxu1 %v9365_v2  ;;  %v9435_v24 = vld [vmem:[#allocation7 + $0x7a8] ss:$16 sps:$4 sm:$0xff]   ;;  %v268_v2 = vrot.slane %v10493_v12, %v267_v21  ;;  %v9452_v12 = vld [vmem:[#allocation8 + $0x4] ss:$16 sps:$4 sm:$0xff]  }
 0x238   :  { %2495 = vmatprep.mubr.bf16.mxu0 %v1036_v43  ;;  %2659 = vmatprep.mubr.bf16.mxu1 %v1036_v43  ;;  %v9440_v43 = vld [vmem:[#allocation7 + $0x7c4] ss:$16 sps:$4 sm:$0xff]  }
 0x23a   :  { %2466 = vmatpush1.bf16.msra.mxu0 %v9360_v25  ;;  %2630 = vmatpush1.bf16.msra.mxu1 %v9363_v26  ;;  %v9443_v25 = vld [vmem:[#allocation7 + $0x7cc] ss:$16 sps:$4 sm:$0xff]   ;;  %v9438_v26 = vld [vmem:[#allocation7 + $0x7c0] ss:$16 sps:$4 sm:$0xff]  }
 0x23b   :  { %2467 = vmatprep.subr.bf16.mxu0 %v9368_v27  ;;  %2631 = vmatprep.subr.bf16.mxu1 %v9371_v28  ;;  %v9441_v27 = vld [vmem:[#allocation7 + $0x7c8] ss:$16 sps:$4 sm:$0xff]   ;;  %v759_v28 = vadd.f32 %v10522_v39, %v268_v2  ;;  %v9458_v39 = vld [vmem:[#allocation8 + $0x24] ss:$16 sps:$4 sm:$0xff]   ;;  %v9510_v2 = vld [vmem:[#allocation8 + $0x140] ss:$16 sps:$4 sm:$0xff]  }
 0x23e   :  { %2468 = vmatpush1.bf16.msra.mxu0 %v9366_v31  ;;  %2632 = vmatpush1.bf16.msra.mxu1 %v9369_v32  ;;  %v9446_v31 = vld [vmem:[#allocation7 + $0x7e4] ss:$16 sps:$4 sm:$0xff]   ;;  %v9449_v32 = vld [vmem:[#allocation7 + $0x7ec] ss:$16 sps:$4 sm:$0xff]  }
 0x23f   :  { %2469 = vmatprep.subr.bf16.mxu0 %v9374_v33  ;;  %2633 = vmatprep.subr.bf16.mxu1 %v9377_v34  ;;  %v9444_v33 = vld [vmem:[#allocation7 + $0x7e0] ss:$16 sps:$4 sm:$0xff]   ;;  %v9447_v34 = vld [vmem:[#allocation7 + $0x7e8] ss:$16 sps:$4 sm:$0xff]  }
 0x242   :  { %2470 = vmatpush1.bf16.msra.mxu0 %v9372_v36  ;;  %2634 = vmatpush1.bf16.msra.mxu1 %v9375_v37  ;;  %v771_v36 = vmax.f32 %v759_v28, 0.0  ;;  %v9455_v37 = vld [vmem:[#allocation8 + $0xc] ss:$16 sps:$4 sm:$0xff]   ;;  %v9519_v28 = vld [vmem:[#allocation8 + $0x168] ss:$16 sps:$4 sm:$0xff]  }
 0x243   :  { %2471 = vmatprep.subr.bf16.mxu0 %v9380_v38  ;;  %2635 = vmatprep.subr.bf16.mxu1 %v9383_v40  ;;  %v9450_v38 = vld [vmem:[#allocation8] ss:$16 sps:$4 sm:$0xff]   ;;  %v9453_v40 = vld [vmem:[#allocation8 + $0x8] ss:$16 sps:$4 sm:$0xff]  }
 0x246   :  { %2472 = vmatpush1.bf16.msra.mxu0 %v9378_v41  ;;  %2636 = vmatpush1.bf16.msra.mxu1 %v9381_v42  ;;  %v1035_v41 = vpack.c.bf16 %v771_v36, %v771_v36  ;;  %v9461_v42 = vld [vmem:[#allocation8 + $0x2c] ss:$16 sps:$4 sm:$0xff]   ;;  %v9530_v36 = vld [vmem:[#allocation8 + $0x1a4] ss:$16 sps:$4 sm:$0xff]  }
 0x247   :  { %2473 = vmatprep.subr.bf16.mxu0 %v9386_v44  ;;  %2637 = vmatprep.subr.bf16.mxu1 %v9389_v45  ;;  %v9456_v44 = vld [vmem:[#allocation8 + $0x20] ss:$16 sps:$4 sm:$0xff]   ;;  %v9459_v45 = vld [vmem:[#allocation8 + $0x28] ss:$16 sps:$4 sm:$0xff]  }
 0x24a   :  { %2474 = vmatpush1.bf16.msra.mxu0 %v9384_v46  ;;  %2638 = vmatpush1.bf16.msra.mxu1 %v9387_v47  ;;  %v9464_v46 = vld [vmem:[#allocation8 + $0x44] ss:$16 sps:$4 sm:$0xff]   ;;  %v9467_v47 = vld [vmem:[#allocation8 + $0x4c] ss:$16 sps:$4 sm:$0xff]  }
 0x24b   :  { %2475 = vmatprep.subr.bf16.mxu0 %v9392_v48  ;;  %2639 = vmatprep.subr.bf16.mxu1 %v9395_v49  ;;  %v9462_v48 = vld [vmem:[#allocation8 + $0x40] ss:$16 sps:$4 sm:$0xff]   ;;  %v9465_v49 = vld [vmem:[#allocation8 + $0x48] ss:$16 sps:$4 sm:$0xff]  }
 0x24e   :  { %2476 = vmatpush1.bf16.msra.mxu0 %v9390_v50  ;;  %2640 = vmatpush1.bf16.msra.mxu1 %v9393_v51  ;;  %v9470_v50 = vld [vmem:[#allocation8 + $0x64] ss:$16 sps:$4 sm:$0xff]   ;;  %v9473_v51 = vld [vmem:[#allocation8 + $0x6c] ss:$16 sps:$4 sm:$0xff]  }
 0x24f   :  { %2477 = vmatprep.subr.bf16.mxu0 %v9398_v52  ;;  %2641 = vmatprep.subr.bf16.mxu1 %v9401_v53  ;;  %v9468_v52 = vld [vmem:[#allocation8 + $0x60] ss:$16 sps:$4 sm:$0xff]   ;;  %v9471_v53 = vld [vmem:[#allocation8 + $0x68] ss:$16 sps:$4 sm:$0xff]  }
 0x252   :  { %2478 = vmatpush1.bf16.msra.mxu0 %v9396_v54  ;;  %2642 = vmatpush1.bf16.msra.mxu1 %v9399_v29  ;;  %v9476_v54 = vld [vmem:[#allocation8 + $0x84] ss:$16 sps:$4 sm:$0xff]   ;;  %v9479_v29 = vld [vmem:[#allocation8 + $0x8c] ss:$16 sps:$4 sm:$0xff]  }
 0x253   :  { %2479 = vmatprep.subr.bf16.mxu0 %v9404_v56  ;;  %2643 = vmatprep.subr.bf16.mxu1 %v9407_v57  ;;  %v9474_v56 = vld [vmem:[#allocation8 + $0x80] ss:$16 sps:$4 sm:$0xff]   ;;  %v9477_v57 = vld [vmem:[#allocation8 + $0x88] ss:$16 sps:$4 sm:$0xff]  }
 0x256   :  { %2480 = vmatpush1.bf16.msra.mxu0 %v9402_v58  ;;  %2644 = vmatpush1.bf16.msra.mxu1 %v9405_v60  ;;  %v9482_v58 = vld [vmem:[#allocation8 + $0xa4] ss:$16 sps:$4 sm:$0xff]   ;;  %v9485_v60 = vld [vmem:[#allocation8 + $0xac] ss:$16 sps:$4 sm:$0xff]  }
 0x257   :  { %2481 = vmatprep.subr.bf16.mxu0 %v9410_v61  ;;  %2645 = vmatprep.subr.bf16.mxu1 %v9413_v62  ;;  %v9480_v61 = vld [vmem:[#allocation8 + $0xa0] ss:$16 sps:$4 sm:$0xff]   ;;  %v9483_v62 = vld [vmem:[#allocation8 + $0xa8] ss:$16 sps:$4 sm:$0xff]  }
 0x25a   :  { %2482 = vmatpush1.bf16.msra.mxu0 %v9408_v1  ;;  %2646 = vmatpush1.bf16.msra.mxu1 %v9411_v3  ;;  %v9488_v1 = vld [vmem:[#allocation8 + $0xc4] ss:$16 sps:$4 sm:$0xff]   ;;  %v9491_v3 = vld [vmem:[#allocation8 + $0xcc] ss:$16 sps:$4 sm:$0xff]  }
 0x25b   :  { %2483 = vmatprep.subr.bf16.mxu0 %v9416_v4  ;;  %2647 = vmatprep.subr.bf16.mxu1 %v9419_v5  ;;  %v9486_v4 = vld [vmem:[#allocation8 + $0xc0] ss:$16 sps:$4 sm:$0xff]   ;;  %v9489_v5 = vld [vmem:[#allocation8 + $0xc8] ss:$16 sps:$4 sm:$0xff]  }
 0x25e   :  { %2484 = vmatpush1.bf16.msra.mxu0 %v9414_v6  ;;  %2648 = vmatpush1.bf16.msra.mxu1 %v9417_v7  ;;  %v9494_v6 = vld [vmem:[#allocation8 + $0xe4] ss:$16 sps:$4 sm:$0xff]   ;;  %v9497_v7 = vld [vmem:[#allocation8 + $0xec] ss:$16 sps:$4 sm:$0xff]  }
 0x25f   :  { %2485 = vmatprep.subr.bf16.mxu0 %v9422_v8  ;;  %2649 = vmatprep.subr.bf16.mxu1 %v9425_v9  ;;  %v9492_v8 = vld [vmem:[#allocation8 + $0xe0] ss:$16 sps:$4 sm:$0xff]   ;;  %v9495_v9 = vld [vmem:[#allocation8 + $0xe8] ss:$16 sps:$4 sm:$0xff]  }
 0x262   :  { %2486 = vmatpush1.bf16.msra.mxu0 %v9420_v11  ;;  %2650 = vmatpush1.bf16.msra.mxu1 %v9423_v15  ;;  %v9500_v11 = vld [vmem:[#allocation8 + $0x104] ss:$16 sps:$4 sm:$0xff]   ;;  %v9503_v15 = vld [vmem:[#allocation8 + $0x10c] ss:$16 sps:$4 sm:$0xff]  }
 0x263   :  { %2487 = vmatprep.subr.bf16.mxu0 %v9428_v16  ;;  %2651 = vmatprep.subr.bf16.mxu1 %v9431_v17  ;;  %v9498_v16 = vld [vmem:[#allocation8 + $0x100] ss:$16 sps:$4 sm:$0xff]   ;;  %v9501_v17 = vld [vmem:[#allocation8 + $0x108] ss:$16 sps:$4 sm:$0xff]  }
 0x266   :  { %2488 = vmatpush1.bf16.msra.mxu0 %v9426_v19  ;;  %2652 = vmatpush1.bf16.msra.mxu1 %v9429_v20  ;;  %v9506_v19 = vld [vmem:[#allocation8 + $0x124] ss:$16 sps:$4 sm:$0xff]   ;;  %v9509_v20 = vld [vmem:[#allocation8 + $0x12c] ss:$16 sps:$4 sm:$0xff]  }
 0x267   :  { %2489 = vmatprep.subr.bf16.mxu0 %v9434_v22  ;;  %2653 = vmatprep.subr.bf16.mxu1 %v9437_v63  ;;  %v9504_v22 = vld [vmem:[#allocation8 + $0x120] ss:$16 sps:$4 sm:$0xff]   ;;  %v9507_v63 = vld [vmem:[#allocation8 + $0x128] ss:$16 sps:$4 sm:$0xff]  }
 0x26a   :  { %2490 = vmatpush1.bf16.msra.mxu0 %v9432_v23  ;;  %2654 = vmatpush1.bf16.msra.mxu1 %v9435_v24  ;;  %v9512_v23 = vld [vmem:[#allocation8 + $0x144] ss:$16 sps:$4 sm:$0xff]   ;;  %v9515_v24 = vld [vmem:[#allocation8 + $0x14c] ss:$16 sps:$4 sm:$0xff]  }
 0x26b   :  { %2491 = vmatprep.subr.bf16.mxu0 %v9440_v43  ;;  %2655 = vmatprep.subr.bf16.mxu1 %v9443_v25  ;;  %v9513_v43 = vld [vmem:[#allocation8 + $0x148] ss:$16 sps:$4 sm:$0xff]   ;;  %v9518_v25 = vld [vmem:[#allocation8 + $0x164] ss:$16 sps:$4 sm:$0xff]  }
 0x26e   :  { %2492 = vmatpush1.bf16.msra.mxu0 %v9438_v26  ;;  %2656 = vmatpush1.bf16.msra.mxu1 %v9441_v27  ;;  %v9521_v26 = vld [vmem:[#allocation8 + $0x16c] ss:$16 sps:$4 sm:$0xff]   ;;  %v9516_v27 = vld [vmem:[#allocation8 + $0x160] ss:$16 sps:$4 sm:$0xff]  }
 0x26f   :  { %2493 = vmatprep.subr.bf16.mxu0 %v9446_v31  ;;  %2657 = vmatprep.subr.bf16.mxu1 %v9449_v32  ;;  %v9524_v31 = vld [vmem:[#allocation8 + $0x184] ss:$16 sps:$4 sm:$0xff]   ;;  %v9527_v32 = vld [vmem:[#allocation8 + $0x18c] ss:$16 sps:$4 sm:$0xff]  }
 0x272   :  { %2494 = vmatpush1.bf16.msra.mxu0 %v9444_v33  ;;  %2658 = vmatpush1.bf16.msra.mxu1 %v9447_v34  ;;  %v9522_v33 = vld [vmem:[#allocation8 + $0x180] ss:$16 sps:$4 sm:$0xff]   ;;  %v9525_v34 = vld [vmem:[#allocation8 + $0x188] ss:$16 sps:$4 sm:$0xff]  }
 0x273   :  { %3467 = vmatprep.subr.bf16.mxu0 %v9452_v12  ;;  %3549 = vmatprep.subr.bf16.mxu1 %v9455_v37  ;;  %v9533_v12 = vld [vmem:[#allocation8 + $0x1ac] ss:$16 sps:$4 sm:$0xff]   ;;  %v9528_v37 = vld [vmem:[#allocation8 + $0x1a0] ss:$16 sps:$4 sm:$0xff]  }
 0x275   :  { %2496 = vmatmul.mubr.bf16.vlgmr.msra.gmra.mrb[8].mxu0 %v1035_v41  ;;  %2660 = vmatmul.mubr.bf16.vlgmr.msra.gmra.mrb[8].mxu1 %v1035_v41  ;;  %v9539_v41 = vld [vmem:[#allocation8 + $0x1cc] ss:$16 sps:$4 sm:$0xff]  }
 0x276   :  { %3468 = vmatpush1.bf16.msra.mxu0 %v9450_v38  ;;  %3550 = vmatpush1.bf16.msra.mxu1 %v9453_v40  ;;  %v9531_v38 = vld [vmem:[#allocation8 + $0x1a8] ss:$16 sps:$4 sm:$0xff]   ;;  %v9536_v40 = vld [vmem:[#allocation8 + $0x1c4] ss:$16 sps:$4 sm:$0xff]  }
 0x277   :  { %3469 = vmatprep.subr.bf16.mxu0 %v9458_v39  ;;  %3551 = vmatprep.subr.bf16.mxu1 %v9461_v42  ;;  %v9534_v39 = vld [vmem:[#allocation8 + $0x1c0] ss:$16 sps:$4 sm:$0xff]   ;;  %v9537_v42 = vld [vmem:[#allocation8 + $0x1c8] ss:$16 sps:$4 sm:$0xff]  }
 0x27a   :  { %3470 = vmatpush1.bf16.msra.mxu0 %v9456_v44  ;;  %3552 = vmatpush1.bf16.msra.mxu1 %v9459_v45  ;;  %v9542_v44 = vld [vmem:[#allocation8 + $0x1e4] ss:$16 sps:$4 sm:$0xff]   ;;  %v9545_v45 = vld [vmem:[#allocation8 + $0x1ec] ss:$16 sps:$4 sm:$0xff]  }
 0x27b   :  { %3471 = vmatprep.subr.bf16.mxu0 %v9464_v46  ;;  %3553 = vmatprep.subr.bf16.mxu1 %v9467_v47  ;;  %v9540_v46 = vld [vmem:[#allocation8 + $0x1e0] ss:$16 sps:$4 sm:$0xff]   ;;  %v9543_v47 = vld [vmem:[#allocation8 + $0x1e8] ss:$16 sps:$4 sm:$0xff]  }
 0x27e   :  { %3472 = vmatpush1.bf16.msra.mxu0 %v9462_v48  ;;  %3554 = vmatpush1.bf16.msra.mxu1 %v9465_v49  ;;  %v9548_v48 = vld [vmem:[#allocation8 + $0x204] ss:$16 sps:$4 sm:$0xff]   ;;  %v9551_v49 = vld [vmem:[#allocation8 + $0x20c] ss:$16 sps:$4 sm:$0xff]  }
 0x27f   :  { %3473 = vmatprep.subr.bf16.mxu0 %v9470_v50  ;;  %3555 = vmatprep.subr.bf16.mxu1 %v9473_v51  ;;  %v10546_v50 = vld [vmem:[#allocation17 + $0x1] ss:$8 sm:$0xf] }
 0x280   :  { %v1043_v51 = vrot.slane %v10546_v50, %v10496_v13 }
 0x282   :  { %3474 = vmatpush1.bf16.msra.mxu0 %v9468_v52  ;;  %3556 = vmatpush1.bf16.msra.mxu1 %v9471_v53  ;;  %v1047_v52 = vrot.slane %v10546_v50, %v10499_v14  ;;  %v1055_v53 = vrot.slane %v10546_v50, %v10506_v18 }
 0x283   :  { %3475 = vmatprep.subr.bf16.mxu0 %v9476_v54  ;;  %3557 = vmatprep.subr.bf16.mxu1 %v9479_v29 }
 0x286   :  { %3476 = vmatpush1.bf16.msra.mxu0 %v9474_v56  ;;  %3558 = vmatpush1.bf16.msra.mxu1 %v9477_v57 }
 0x287   :  { %3477 = vmatprep.subr.bf16.mxu0 %v9482_v58  ;;  %3559 = vmatprep.subr.bf16.mxu1 %v9485_v60 }
 0x28a   :  { %3478 = vmatpush1.bf16.msra.mxu0 %v9480_v61  ;;  %3560 = vmatpush1.bf16.msra.mxu1 %v9483_v62 }
 0x28b   :  { %3479 = vmatprep.subr.bf16.mxu0 %v9488_v1  ;;  %3561 = vmatprep.subr.bf16.mxu1 %v9491_v3 }
 0x28e   :  { %3480 = vmatpush1.bf16.msra.mxu0 %v9486_v4  ;;  %3562 = vmatpush1.bf16.msra.mxu1 %v9489_v5 }
 0x28f   :  { %3481 = vmatprep.subr.bf16.mxu0 %v9494_v6  ;;  %3563 = vmatprep.subr.bf16.mxu1 %v9497_v7 }
 0x292   :  { %3482 = vmatpush1.bf16.msra.mxu0 %v9492_v8  ;;  %3564 = vmatpush1.bf16.msra.mxu1 %v9495_v9  ;;  %v9546_v9 = vld [vmem:[#allocation8 + $0x200] ss:$16 sps:$4 sm:$0xff]  }
 0x293   :  { %3483 = vmatprep.subr.bf16.mxu0 %v9500_v11  ;;  %3565 = vmatprep.subr.bf16.mxu1 %v9503_v15  ;;  %v9549_v11 = vld [vmem:[#allocation8 + $0x208] ss:$16 sps:$4 sm:$0xff]  }
 0x296   :  { %3484 = vmatpush1.bf16.msra.mxu0 %v9498_v16  ;;  %3566 = vmatpush1.bf16.msra.mxu1 %v9501_v17  ;;  %v9554_v16 = vld [vmem:[#allocation8 + $0x224] ss:$16 sps:$4 sm:$0xff]   ;;  %v9557_v17 = vld [vmem:[#allocation8 + $0x22c] ss:$16 sps:$4 sm:$0xff]  }
 0x297   :  { %3485 = vmatprep.subr.bf16.mxu0 %v9506_v19  ;;  %3567 = vmatprep.subr.bf16.mxu1 %v9509_v20  ;;  %v9552_v20 = vld [vmem:[#allocation8 + $0x220] ss:$16 sps:$4 sm:$0xff]  }
 0x29a   :  { %3486 = vmatpush1.bf16.msra.mxu0 %v9504_v22  ;;  %3568 = vmatpush1.bf16.msra.mxu1 %v9507_v63  ;;  %v9555_v22 = vld [vmem:[#allocation8 + $0x228] ss:$16 sps:$4 sm:$0xff]   ;;  %v9560_v63 = vld [vmem:[#allocation8 + $0x244] ss:$16 sps:$4 sm:$0xff]  }
 0x29b   :  { %3487 = vmatprep.subr.bf16.mxu0 %v9512_v23  ;;  %3569 = vmatprep.subr.bf16.mxu1 %v9515_v24  ;;  %v9563_v23 = vld [vmem:[#allocation8 + $0x24c] ss:$16 sps:$4 sm:$0xff]   ;;  %v9558_v24 = vld [vmem:[#allocation8 + $0x240] ss:$16 sps:$4 sm:$0xff]  }
 0x29e   :  { %3488 = vmatpush1.bf16.msra.mxu0 %v9510_v2  ;;  %3570 = vmatpush1.bf16.msra.mxu1 %v9513_v43  ;;  %v9561_v2 = vld [vmem:[#allocation8 + $0x248] ss:$16 sps:$4 sm:$0xff]   ;;  %v9566_v43 = vld [vmem:[#allocation8 + $0x264] ss:$16 sps:$4 sm:$0xff]  }
 0x29f   :  { %3489 = vmatprep.subr.bf16.mxu0 %v9518_v25  ;;  %3571 = vmatprep.subr.bf16.mxu1 %v9521_v26  ;;  %v9569_v25 = vld [vmem:[#allocation8 + $0x26c] ss:$16 sps:$4 sm:$0xff]   ;;  %v9564_v26 = vld [vmem:[#allocation8 + $0x260] ss:$16 sps:$4 sm:$0xff]  }
 0x2a2   :  { %3490 = vmatpush1.bf16.msra.mxu0 %v9516_v27  ;;  %3572 = vmatpush1.bf16.msra.mxu1 %v9519_v28  ;;  %v9567_v27 = vld [vmem:[#allocation8 + $0x268] ss:$16 sps:$4 sm:$0xff]   ;;  %v9572_v28 = vld [vmem:[#allocation8 + $0x284] ss:$16 sps:$4 sm:$0xff]  }
 0x2a3   :  { %3491 = vmatprep.subr.bf16.mxu0 %v9524_v31  ;;  %3573 = vmatprep.subr.bf16.mxu1 %v9527_v32  ;;  %v9575_v31 = vld [vmem:[#allocation8 + $0x28c] ss:$16 sps:$4 sm:$0xff]   ;;  %v9570_v32 = vld [vmem:[#allocation8 + $0x280] ss:$16 sps:$4 sm:$0xff]  }
 0x2a6   :  { %3492 = vmatpush1.bf16.msra.mxu0 %v9522_v33  ;;  %3574 = vmatpush1.bf16.msra.mxu1 %v9525_v34  ;;  %v9573_v33 = vld [vmem:[#allocation8 + $0x288] ss:$16 sps:$4 sm:$0xff]   ;;  %v9578_v34 = vld [vmem:[#allocation8 + $0x2a4] ss:$16 sps:$4 sm:$0xff]  }
 0x2a7   :  { %3493 = vmatprep.subr.bf16.mxu0 %v9530_v36  ;;  %3575 = vmatprep.subr.bf16.mxu1 %v9533_v12  ;;  %v9581_v36 = vld [vmem:[#allocation8 + $0x2ac] ss:$16 sps:$4 sm:$0xff]   ;;  %v9576_v12 = vld [vmem:[#allocation8 + $0x2a0] ss:$16 sps:$4 sm:$0xff]  }
 0x2aa   :  { %3494 = vmatpush1.bf16.msra.mxu0 %v9528_v37  ;;  %3576 = vmatpush1.bf16.msra.mxu1 %v9531_v38  ;;  %v9579_v37 = vld [vmem:[#allocation8 + $0x2a8] ss:$16 sps:$4 sm:$0xff]   ;;  %v9584_v38 = vld [vmem:[#allocation8 + $0x2c4] ss:$16 sps:$4 sm:$0xff]  }
 0x2ab   :  { %3495 = vmatprep.subr.bf16.mxu0 %v9536_v40  ;;  %3577 = vmatprep.subr.bf16.mxu1 %v9539_v41  ;;  %v9587_v40 = vld [vmem:[#allocation8 + $0x2cc] ss:$16 sps:$4 sm:$0xff]   ;;  %v9582_v41 = vld [vmem:[#allocation8 + $0x2c0] ss:$16 sps:$4 sm:$0xff]  }
 0x2ae   :  { %3496 = vmatpush1.bf16.msra.mxu0 %v9534_v39  ;;  %3578 = vmatpush1.bf16.msra.mxu1 %v9537_v42  ;;  %v9585_v39 = vld [vmem:[#allocation8 + $0x2c8] ss:$16 sps:$4 sm:$0xff]   ;;  %v9590_v42 = vld [vmem:[#allocation8 + $0x2e4] ss:$16 sps:$4 sm:$0xff]  }
 0x2af   :  { %3497 = vmatprep.subr.bf16.mxu0 %v9542_v44  ;;  %3579 = vmatprep.subr.bf16.mxu1 %v9545_v45  ;;  %v9593_v44 = vld [vmem:[#allocation8 + $0x2ec] ss:$16 sps:$4 sm:$0xff]   ;;  %v9588_v45 = vld [vmem:[#allocation8 + $0x2e0] ss:$16 sps:$4 sm:$0xff]  }
 0x2b2   :  { %3498 = vmatpush1.bf16.msra.mxu0 %v9540_v46  ;;  %3580 = vmatpush1.bf16.msra.mxu1 %v9543_v47  ;;  %v9591_v46 = vld [vmem:[#allocation8 + $0x2e8] ss:$16 sps:$4 sm:$0xff]   ;;  %v9596_v47 = vld [vmem:[#allocation8 + $0x304] ss:$16 sps:$4 sm:$0xff]  }
 0x2b3   :  { %3508 = vmatprep.subr.bf16.mxu0 %v9548_v48  ;;  %3590 = vmatprep.subr.bf16.mxu1 %v9551_v49  ;;  %v9599_v48 = vld [vmem:[#allocation8 + $0x30c] ss:$16 sps:$4 sm:$0xff]   ;;  %v9594_v49 = vld [vmem:[#allocation8 + $0x300] ss:$16 sps:$4 sm:$0xff]  }
 0x348   :  { %v2497_v54 = vpop.f32.mrb[8].mxu0  ;;  %v10554_v29 = vpop.f32.mrb[8].mxu1 }
 0x349   :  { %v8971_v56 = vadd.f32 %v2497_v54, %v1043_v51  ;;  %v2499_v57 = vpop.f32.mrb[9].mxu0  ;;  %v2663_v58 = vpop.f32.mrb[9].mxu1  ;;  %v9597_v51 = vld [vmem:[#allocation8 + $0x308] ss:$16 sps:$4 sm:$0xff]   ;;  %v9600_v54 = vld [vmem:[#allocation8 + $0x320] ss:$16 sps:$4 sm:$0xff]  }
 0x34a   :  { %v8972_v60 = vadd.f32 %v2499_v57, %v1047_v52  ;;  %v8974_v61 = vadd.f32 %v2663_v58, %v1055_v53  ;;  %v2501_v62 = vpop.f32.mrb[10].mxu0  ;;  %v2665_v1 = vpop.f32.mrb[10].mxu1  ;;  %v9602_v52 = vld [vmem:[#allocation8 + $0x324] ss:$16 sps:$4 sm:$0xff]   ;;  %v9605_v53 = vld [vmem:[#allocation8 + $0x32c] ss:$16 sps:$4 sm:$0xff]  }
 0x34b   :  { %v2668_v3 = vmax.f32 %v8971_v56, 0.0  ;;  %v2502_v4 = vpop.f32.mrb[11].mxu0  ;;  %v2666_v5 = vpop.f32.mrb[11].mxu1  ;;  %v9603_v56 = vld [vmem:[#allocation8 + $0x328] ss:$16 sps:$4 sm:$0xff]  }
 0x34c   :  { %v2669_v6 = vmax.f32 %v8972_v60, 0.0  ;;  %v2671_v7 = vmax.f32 %v8974_v61, 0.0  ;;  %v9608_v57 = vld [vmem:[#allocation8 + $0x344] ss:$16 sps:$4 sm:$0xff]   ;;  %v9611_v58 = vld [vmem:[#allocation8 + $0x34c] ss:$16 sps:$4 sm:$0xff]  }
 0x34d   :  { %v2800_v15 = vpack.c.bf16 %v2668_v3, %v2668_v3  ;;  %v9606_v60 = vld [vmem:[#allocation8 + $0x340] ss:$16 sps:$4 sm:$0xff]   ;;  %v9609_v61 = vld [vmem:[#allocation8 + $0x348] ss:$16 sps:$4 sm:$0xff]   ;;  %v9614_v62 = vld [vmem:[#allocation8 + $0x364] ss:$16 sps:$4 sm:$0xff]  }
 0x34e   :  { %v2801_v8 = vpack.c.bf16 %v2669_v6, %v2669_v6  ;;  %v2803_v19 = vpack.c.bf16 %v2671_v7, %v2671_v7  ;;  %v9617_v1 = vld [vmem:[#allocation8 + $0x36c] ss:$16 sps:$4 sm:$0xff]   ;;  %v9612_v3 = vld [vmem:[#allocation8 + $0x360] ss:$16 sps:$4 sm:$0xff]   ;;  %v9615_v4 = vld [vmem:[#allocation8 + $0x368] ss:$16 sps:$4 sm:$0xff]  }
 0x34f   :  { %v9620_v5 = vld [vmem:[#allocation8 + $0x384] ss:$16 sps:$4 sm:$0xff]   ;;  %v9623_v6 = vld [vmem:[#allocation8 + $0x38c] ss:$16 sps:$4 sm:$0xff]   ;;  %v9618_v7 = vld [vmem:[#allocation8 + $0x380] ss:$16 sps:$4 sm:$0xff]  }
 0x350   :  { %3499 = vmatprep.mubr.bf16.mxu0 %v2801_v8  ;;  %3581 = vmatprep.mubr.bf16.mxu1 %v2801_v8  ;;  %v9621_v8 = vld [vmem:[#allocation8 + $0x388] ss:$16 sps:$4 sm:$0xff]  }
 0x351   :  { %3500 = vmatmul.mubr.bf16.vlgmr.msra.gmra.mrb[12].mxu0 %v2800_v15  ;;  %3582 = vmatmul.mubr.bf16.vlgmr.msra.gmra.mrb[12].mxu1 %v2800_v15  ;;  %v9624_v15 = vld [vmem:[#allocation8 + $0x3a0] ss:$16 sps:$4 sm:$0xff]  }
 0x352   :  { %3509 = vmatpush1.bf16.msra.mxu0 %v9546_v9  ;;  %3591 = vmatpush1.bf16.msra.mxu1 %v9549_v11  ;;  %v9626_v9 = vld [vmem:[#allocation8 + $0x3a4] ss:$16 sps:$4 sm:$0xff]   ;;  %v9629_v11 = vld [vmem:[#allocation8 + $0x3ac] ss:$16 sps:$4 sm:$0xff]  }
 0x353   :  { %3540 = vmatprep.mubr.bf16.mxu0 %v2803_v19  ;;  %3622 = vmatprep.mubr.bf16.mxu1 %v2803_v19  ;;  %v9632_v19 = vld [vmem:[#allocation8 + $0x3c4] ss:$16 sps:$4 sm:$0xff]  }
 0x354   :  { %3510 = vmatprep.subr.bf16.mxu0 %v9554_v16  ;;  %3592 = vmatprep.subr.bf16.mxu1 %v9557_v17  ;;  %v9627_v16 = vld [vmem:[#allocation8 + $0x3a8] ss:$16 sps:$4 sm:$0xff]   ;;  %v1051_v17 = vrot.slane %v10546_v50, %v10517_v30  ;;  %v9642_v50 = vld [vmem:[#allocation10 + $0x40] sm:$0xff]  }
 0x356   :  { %3511 = vmatpush1.bf16.msra.mxu0 %v9552_v20  ;;  %3593 = vmatpush1.bf16.msra.mxu1 %v9555_v22  ;;  %v9635_v20 = vld [vmem:[#allocation8 + $0x3cc] ss:$16 sps:$4 sm:$0xff]   ;;  %v9630_v22 = vld [vmem:[#allocation8 + $0x3c0] ss:$16 sps:$4 sm:$0xff]  }
 0x357   :  { %3512 = vmatprep.subr.bf16.mxu0 %v9560_v63  ;;  %3594 = vmatprep.subr.bf16.mxu1 %v9563_v23  ;;  %v9633_v63 = vld [vmem:[#allocation8 + $0x3c8] ss:$16 sps:$4 sm:$0xff]   ;;  %v8973_v23 = vadd.f32 %v10554_v29, %v1051_v17 }
 0x358   :  { %v9646_v29 = vld [vmem:[#allocation10 + $0x48] sm:$0xff]  }
 0x35a   :  { %3513 = vmatpush1.bf16.msra.mxu0 %v9558_v24  ;;  %3595 = vmatpush1.bf16.msra.mxu1 %v9561_v2  ;;  %v9638_v24 = vld [vmem:[#allocation8 + $0x3e4] ss:$16 sps:$4 sm:$0xff]   ;;  %v9641_v2 = vld [vmem:[#allocation8 + $0x3ec] ss:$16 sps:$4 sm:$0xff]  }
 0x35b   :  { %3514 = vmatprep.subr.bf16.mxu0 %v9566_v43  ;;  %3596 = vmatprep.subr.bf16.mxu1 %v9569_v25  ;;  %v9636_v43 = vld [vmem:[#allocation8 + $0x3e0] ss:$16 sps:$4 sm:$0xff]   ;;  %v9639_v25 = vld [vmem:[#allocation8 + $0x3e8] ss:$16 sps:$4 sm:$0xff]  }
 0x35e   :  { %3515 = vmatpush1.bf16.msra.mxu0 %v9564_v26  ;;  %3597 = vmatpush1.bf16.msra.mxu1 %v9567_v27  ;;  %v2670_v26 = vmax.f32 %v8973_v23, 0.0  ;;  %v9643_v27 = vld [vmem:[#allocation10 + $0xc0] sm:$0xff]  }
 0x35f   :  { %3516 = vmatprep.subr.bf16.mxu0 %v9572_v28  ;;  %3598 = vmatprep.subr.bf16.mxu1 %v9575_v31  ;;  %v9644_v28 = vld [vmem:[#allocation10] sm:$0xff]  }
 0x360   :  { %v9645_v31 = vld [vmem:[#allocation10 + $0x80] sm:$0xff]  }
 0x362   :  { %3517 = vmatpush1.bf16.msra.mxu0 %v9570_v32  ;;  %3599 = vmatpush1.bf16.msra.mxu1 %v9573_v33  ;;  %v2802_v32 = vpack.c.bf16 %v2670_v26, %v2670_v26  ;;  %v9647_v33 = vld [vmem:[#allocation10 + $0xc8] sm:$0xff]  }
 0x363   :  { %3518 = vmatprep.subr.bf16.mxu0 %v9578_v34  ;;  %3600 = vmatprep.subr.bf16.mxu1 %v9581_v36  ;;  %v9648_v34 = vld [vmem:[#allocation10 + $0x8] sm:$0xff]  }
 0x364   :  { %v9649_v36 = vld [vmem:[#allocation10 + $0x88] sm:$0xff]  }
 0x366   :  { %3519 = vmatpush1.bf16.msra.mxu0 %v9576_v12  ;;  %3601 = vmatpush1.bf16.msra.mxu1 %v9579_v37  ;;  %v9650_v12 = vld [vmem:[#allocation10 + $0x50] sm:$0xff]  }
 0x367   :  { %3520 = vmatprep.subr.bf16.mxu0 %v9584_v38  ;;  %3602 = vmatprep.subr.bf16.mxu1 %v9587_v40  ;;  %v9651_v37 = vld [vmem:[#allocation10 + $0xd0] sm:$0xff]  }
 0x368   :  { %v9652_v38 = vld [vmem:[#allocation10 + $0x10] sm:$0xff]  }
 0x369   :  { %v9653_v40 = vld [vmem:[#allocation10 + $0x90] sm:$0xff]  }
 0x36a   :  { %3521 = vmatpush1.bf16.msra.mxu0 %v9582_v41  ;;  %3603 = vmatpush1.bf16.msra.mxu1 %v9585_v39  ;;  %v9654_v41 = vld [vmem:[#allocation10 + $0x58] sm:$0xff]  }
 0x36b   :  { %3522 = vmatprep.subr.bf16.mxu0 %v9590_v42  ;;  %3604 = vmatprep.subr.bf16.mxu1 %v9593_v44  ;;  %v9655_v39 = vld [vmem:[#allocation10 + $0xd8] sm:$0xff]  }
 0x36c   :  { %v9656_v42 = vld [vmem:[#allocation10 + $0x18] sm:$0xff]  }
 0x36d   :  { %v9657_v44 = vld [vmem:[#allocation10 + $0x98] sm:$0xff]  }
 0x36e   :  { %3523 = vmatpush1.bf16.msra.mxu0 %v9588_v45  ;;  %3605 = vmatpush1.bf16.msra.mxu1 %v9591_v46  ;;  %v9658_v45 = vld [vmem:[#allocation10 + $0x60] sm:$0xff]  }
 0x36f   :  { %3524 = vmatprep.subr.bf16.mxu0 %v9596_v47  ;;  %3606 = vmatprep.subr.bf16.mxu1 %v9599_v48  ;;  %v9659_v46 = vld [vmem:[#allocation10 + $0xe0] sm:$0xff]  }
 0x370   :  { %v9660_v47 = vld [vmem:[#allocation10 + $0x20] sm:$0xff]  }
 0x371   :  { %v9661_v48 = vld [vmem:[#allocation10 + $0xa0] sm:$0xff]  }
 0x372   :  { %3525 = vmatpush1.bf16.msra.mxu0 %v9594_v49  ;;  %3607 = vmatpush1.bf16.msra.mxu1 %v9597_v51  ;;  %v9662_v49 = vld [vmem:[#allocation10 + $0x68] sm:$0xff]  }
 0x373   :  { %3526 = vmatprep.subr.bf16.mxu0 %v9602_v52  ;;  %3608 = vmatprep.subr.bf16.mxu1 %v9605_v53  ;;  %v9663_v51 = vld [vmem:[#allocation10 + $0xe8] sm:$0xff]  }
 0x374   :  { %v9664_v52 = vld [vmem:[#allocation10 + $0x28] sm:$0xff]  }
 0x375   :  { %v9665_v53 = vld [vmem:[#allocation10 + $0xa8] sm:$0xff]  }
 0x376   :  { %3527 = vmatpush1.bf16.msra.mxu0 %v9600_v54  ;;  %3609 = vmatpush1.bf16.msra.mxu1 %v9603_v56  ;;  %v9666_v54 = vld [vmem:[#allocation10 + $0x70] sm:$0xff]  }
 0x377   :  { %3528 = vmatprep.subr.bf16.mxu0 %v9608_v57  ;;  %3610 = vmatprep.subr.bf16.mxu1 %v9611_v58  ;;  %v9667_v56 = vld [vmem:[#allocation10 + $0xf0] sm:$0xff]  }
 0x378   :  { %v9668_v57 = vld [vmem:[#allocation10 + $0x30] sm:$0xff]  }
 0x379   :  { %v9669_v58 = vld [vmem:[#allocation10 + $0xb0] sm:$0xff]  }
 0x37a   :  { %3529 = vmatpush1.bf16.msra.mxu0 %v9606_v60  ;;  %3611 = vmatpush1.bf16.msra.mxu1 %v9609_v61  ;;  %v9670_v60 = vld [vmem:[#allocation10 + $0x78] sm:$0xff]  }
 0x37b   :  { %3530 = vmatprep.subr.bf16.mxu0 %v9614_v62  ;;  %3612 = vmatprep.subr.bf16.mxu1 %v9617_v1  ;;  %v9671_v61 = vld [vmem:[#allocation10 + $0xf8] sm:$0xff]  }
 0x37c   :  { %v9672_v62 = vld [vmem:[#allocation10 + $0x38] sm:$0xff]  }
 0x37d   :  { %v9673_v1 = vld [vmem:[#allocation10 + $0xb8] sm:$0xff]  }
 0x37e   :  { %3531 = vmatpush1.bf16.msra.mxu0 %v9612_v3  ;;  %3613 = vmatpush1.bf16.msra.mxu1 %v9615_v4  ;;  %v9676_v3 = vld [vmem:[#allocation11 + $0x4] ss:$16 sps:$4 sm:$0xff]   ;;  %v9679_v4 = vld [vmem:[#allocation11 + $0xc] ss:$16 sps:$4 sm:$0xff]  }
 0x37f   :  { %3532 = vmatprep.subr.bf16.mxu0 %v9620_v5  ;;  %3614 = vmatprep.subr.bf16.mxu1 %v9623_v6  ;;  %v2805_v5 = vld [vmem:[#allocation17 + $0x2] ss:$8 sm:$0xf] }
 0x380   :  { %v2810_v6 = vrot.slane %v2805_v5, %v10496_v13 }
 0x382   :  { %3533 = vmatpush1.bf16.msra.mxu0 %v9618_v7  ;;  %3615 = vmatpush1.bf16.msra.mxu1 %v9621_v8  ;;  %v2818_v7 = vrot.slane %v2805_v5, %v10517_v30  ;;  %v2814_v8 = vrot.slane %v2805_v5, %v10499_v14 }
 0x383   :  { %3534 = vmatprep.subr.bf16.mxu0 %v9626_v9  ;;  %3616 = vmatprep.subr.bf16.mxu1 %v9629_v11  ;;  %v2822_v9 = vrot.slane %v2805_v5, %v10506_v18  ;;  %v9724_v5 = vld [vmem:[#allocation13 + $0x4] ss:$16 sps:$4 sm:$0xff]  }
 0x386   :  { %3535 = vmatpush1.bf16.msra.mxu0 %v9624_v15  ;;  %3617 = vmatpush1.bf16.msra.mxu1 %v9627_v16 }
 0x387   :  { %3536 = vmatprep.subr.bf16.mxu0 %v9632_v19  ;;  %3618 = vmatprep.subr.bf16.mxu1 %v9635_v20 }
 0x38a   :  { %3537 = vmatpush1.bf16.msra.mxu0 %v9630_v22  ;;  %3619 = vmatpush1.bf16.msra.mxu1 %v9633_v63 }
 0x38b   :  { %3538 = vmatprep.subr.bf16.mxu0 %v9638_v24  ;;  %3620 = vmatprep.subr.bf16.mxu1 %v9641_v2 }
 0x38e   :  { %3539 = vmatpush1.bf16.msra.mxu0 %v9636_v43  ;;  %3621 = vmatpush1.bf16.msra.mxu1 %v9639_v25 }
 0x38f   :  { %8839 = vmatprep.subr.bf16.mxu0 %v9642_v50  ;;  %8861 = vmatprep.subr.bf16.mxu1 %v9643_v27 }
 0x391   :  { %3541 = vmatmul.mubr.bf16.vlgmr.msra.gmra.mrb[12].mxu0 %v2802_v32  ;;  %3623 = vmatmul.mubr.bf16.vlgmr.msra.gmra.mrb[12].mxu1 %v2802_v32  ;;  %v9674_v32 = vld [vmem:[#allocation11] ss:$16 sps:$4 sm:$0xff]  }
 0x392   :  { %8840 = vmatpush3.bf16.msra.mxu0 %v9644_v28  ;;  %8862 = vmatpush3.bf16.msra.mxu1 %v9645_v31 }
 0x393   :  { %8841 = vmatprep.subr.bf16.mxu0 %v9646_v29  ;;  %8863 = vmatprep.subr.bf16.mxu1 %v9647_v33  ;;  %v9677_v29 = vld [vmem:[#allocation11 + $0x8] ss:$16 sps:$4 sm:$0xff]  }
 0x396   :  { %8842 = vmatpush3.bf16.msra.mxu0 %v9648_v34  ;;  %8864 = vmatpush3.bf16.msra.mxu1 %v9649_v36  ;;  %v9682_v36 = vld [vmem:[#allocation11 + $0x24] ss:$16 sps:$4 sm:$0xff]  }
 0x397   :  { %8843 = vmatprep.subr.bf16.mxu0 %v9650_v12  ;;  %8865 = vmatprep.subr.bf16.mxu1 %v9651_v37  ;;  %v9685_v12 = vld [vmem:[#allocation11 + $0x2c] ss:$16 sps:$4 sm:$0xff]   ;;  %v9680_v37 = vld [vmem:[#allocation11 + $0x20] ss:$16 sps:$4 sm:$0xff]  }
 0x39a   :  { %8844 = vmatpush3.bf16.msra.mxu0 %v9652_v38  ;;  %8866 = vmatpush3.bf16.msra.mxu1 %v9653_v40  ;;  %v9683_v38 = vld [vmem:[#allocation11 + $0x28] ss:$16 sps:$4 sm:$0xff]   ;;  %v9688_v40 = vld [vmem:[#allocation11 + $0x44] ss:$16 sps:$4 sm:$0xff]  }
 0x39b   :  { %8845 = vmatprep.subr.bf16.mxu0 %v9654_v41  ;;  %8867 = vmatprep.subr.bf16.mxu1 %v9655_v39  ;;  %v9691_v41 = vld [vmem:[#allocation11 + $0x4c] ss:$16 sps:$4 sm:$0xff]   ;;  %v9686_v39 = vld [vmem:[#allocation11 + $0x40] ss:$16 sps:$4 sm:$0xff]  }
 0x39e   :  { %8846 = vmatpush3.bf16.msra.mxu0 %v9656_v42  ;;  %8868 = vmatpush3.bf16.msra.mxu1 %v9657_v44  ;;  %v9689_v42 = vld [vmem:[#allocation11 + $0x48] ss:$16 sps:$4 sm:$0xff]   ;;  %v9694_v44 = vld [vmem:[#allocation11 + $0x64] ss:$16 sps:$4 sm:$0xff]  }
 0x39f   :  { %8847 = vmatprep.subr.bf16.mxu0 %v9658_v45  ;;  %8869 = vmatprep.subr.bf16.mxu1 %v9659_v46  ;;  %v9697_v45 = vld [vmem:[#allocation11 + $0x6c] ss:$16 sps:$4 sm:$0xff]   ;;  %v9692_v46 = vld [vmem:[#allocation11 + $0x60] ss:$16 sps:$4 sm:$0xff]  }
 0x3a2   :  { %8848 = vmatpush3.bf16.msra.mxu0 %v9660_v47  ;;  %8870 = vmatpush3.bf16.msra.mxu1 %v9661_v48  ;;  %v9695_v47 = vld [vmem:[#allocation11 + $0x68] ss:$16 sps:$4 sm:$0xff]   ;;  %v9700_v48 = vld [vmem:[#allocation11 + $0x84] ss:$16 sps:$4 sm:$0xff]  }
 0x3a3   :  { %8849 = vmatprep.subr.bf16.mxu0 %v9662_v49  ;;  %8871 = vmatprep.subr.bf16.mxu1 %v9663_v51  ;;  %v9703_v49 = vld [vmem:[#allocation11 + $0x8c] ss:$16 sps:$4 sm:$0xff]   ;;  %v9698_v51 = vld [vmem:[#allocation11 + $0x80] ss:$16 sps:$4 sm:$0xff]  }
 0x3a6   :  { %8850 = vmatpush3.bf16.msra.mxu0 %v9664_v52  ;;  %8872 = vmatpush3.bf16.msra.mxu1 %v9665_v53  ;;  %v9706_v52 = vld [vmem:[#allocation11 + $0xa4] ss:$16 sps:$4 sm:$0xff]   ;;  %v9709_v53 = vld [vmem:[#allocation11 + $0xac] ss:$16 sps:$4 sm:$0xff]  }
 0x3a7   :  { %8851 = vmatprep.subr.bf16.mxu0 %v9666_v54  ;;  %8873 = vmatprep.subr.bf16.mxu1 %v9667_v56  ;;  %v9704_v54 = vld [vmem:[#allocation11 + $0xa0] ss:$16 sps:$4 sm:$0xff]   ;;  %v9707_v56 = vld [vmem:[#allocation11 + $0xa8] ss:$16 sps:$4 sm:$0xff]  }
 0x3aa   :  { %8852 = vmatpush3.bf16.msra.mxu0 %v9668_v57  ;;  %8874 = vmatpush3.bf16.msra.mxu1 %v9669_v58  ;;  %v9712_v57 = vld [vmem:[#allocation11 + $0xc4] ss:$16 sps:$4 sm:$0xff]   ;;  %v9715_v58 = vld [vmem:[#allocation11 + $0xcc] ss:$16 sps:$4 sm:$0xff]  }
 0x3ab   :  { %8853 = vmatprep.subr.bf16.mxu0 %v9670_v60  ;;  %8875 = vmatprep.subr.bf16.mxu1 %v9671_v61  ;;  %v9710_v60 = vld [vmem:[#allocation11 + $0xc0] ss:$16 sps:$4 sm:$0xff]   ;;  %v9713_v61 = vld [vmem:[#allocation11 + $0xc8] ss:$16 sps:$4 sm:$0xff]  }
 0x3ae   :  { %8854 = vmatpush3.bf16.msra.mxu0 %v9672_v62  ;;  %8876 = vmatpush3.bf16.msra.mxu1 %v9673_v1  ;;  %v9718_v62 = vld [vmem:[#allocation11 + $0xe4] ss:$16 sps:$4 sm:$0xff]   ;;  %v9721_v1 = vld [vmem:[#allocation11 + $0xec] ss:$16 sps:$4 sm:$0xff]  }
 0x3af   :  { %4193 = vmatprep.subr.bf16.mxu0 %v9676_v3  ;;  %4234 = vmatprep.subr.bf16.mxu1 %v9679_v4  ;;  %v9716_v3 = vld [vmem:[#allocation11 + $0xe0] ss:$16 sps:$4 sm:$0xff]   ;;  %v9719_v4 = vld [vmem:[#allocation11 + $0xe8] ss:$16 sps:$4 sm:$0xff]  }
 0x464   :  { %v3542_v11 = vpop.f32.mrb[12].mxu0  ;;  %v3624_v15 = vpop.f32.mrb[12].mxu1 }
 0x465   :  { %v8975_v16 = vadd.f32 %v3542_v11, %v2810_v6  ;;  %v8977_v17 = vadd.f32 %v3624_v15, %v2818_v7  ;;  %v3544_v19 = vpop.f32.mrb[13].mxu0  ;;  %v3626_v20 = vpop.f32.mrb[13].mxu1  ;;  %v9727_v6 = vld [vmem:[#allocation13 + $0xc] ss:$16 sps:$4 sm:$0xff]  }
 0x466   :  { %v8976_v22 = vadd.f32 %v3544_v19, %v2814_v8  ;;  %v8978_v63 = vadd.f32 %v3626_v20, %v2822_v9  ;;  %v3546_v23 = vpop.f32.mrb[14].mxu0  ;;  %v3628_v24 = vpop.f32.mrb[14].mxu1  ;;  %v3703_v9 = vld [vmem:[#allocation17 + $0x3] ss:$0 sm:$0xff] }
 0x467   :  { %v3631_v2 = vmax.f32 %v8975_v16, 0.0  ;;  %v3633_v43 = vmax.f32 %v8977_v17, 0.0  ;;  %v3547_v25 = vpop.f32.mrb[15].mxu0  ;;  %v3629_v26 = vpop.f32.mrb[15].mxu1 }
 0x468   :  { %v3632_v50 = vmax.f32 %v8976_v22, 0.0  ;;  %v3634_v27 = vmax.f32 %v8978_v63, 0.0  ;;  %v9730_v26 = vld [vmem:[#allocation13 + $0x24] ss:$16 sps:$4 sm:$0xff]  }
 0x469   :  { %v3699_v33 = vpack.c.bf16 %v3631_v2, %v3631_v2  ;;  %v3701_v34 = vpack.c.bf16 %v3633_v43, %v3633_v43  ;;  %v9722_v2 = vld [vmem:[#allocation13] ss:$16 sps:$4 sm:$0xff]   ;;  %v9725_v43 = vld [vmem:[#allocation13 + $0x8] ss:$16 sps:$4 sm:$0xff]  }
 0x46a   :  { %v3700_v28 = vpack.c.bf16 %v3632_v50, %v3632_v50  ;;  %v3702_v31 = vpack.c.bf16 %v3634_v27, %v3634_v27  ;;  %v9733_v50 = vld [vmem:[#allocation13 + $0x2c] ss:$16 sps:$4 sm:$0xff]   ;;  %v9728_v27 = vld [vmem:[#allocation13 + $0x20] ss:$16 sps:$4 sm:$0xff]  }
 0x46c   :  { %3928 = vmatprep.mubr.bf16.mxu0 %v3700_v28  ;;  %3968 = vmatprep.mubr.bf16.mxu1 %v3702_v31  ;;  %v9731_v28 = vld [vmem:[#allocation13 + $0x28] ss:$16 sps:$4 sm:$0xff]   ;;  %v9736_v31 = vld [vmem:[#allocation13 + $0x44] ss:$16 sps:$4 sm:$0xff]  }
 0x46d   :  { %3929 = vmatmul.mubr.bf16.vlgmr.msra.gmra.mrb[16].mxu0 %v3699_v33  ;;  %3969 = vmatmul.mubr.bf16.vlgmr.msra.gmra.mrb[16].mxu1 %v3701_v34  ;;  %v9737_v33 = vld [vmem:[#allocation13 + $0x48] ss:$16 sps:$4 sm:$0xff]   ;;  %v9742_v34 = vld [vmem:[#allocation13 + $0x64] ss:$16 sps:$4 sm:$0xff]  }
 0x46e   :  { %4194 = vmatpush1.bf16.msra.mxu0 %v9674_v32  ;;  %4235 = vmatpush1.bf16.msra.mxu1 %v9677_v29  ;;  %v9739_v32 = vld [vmem:[#allocation13 + $0x4c] ss:$16 sps:$4 sm:$0xff]   ;;  %v9734_v29 = vld [vmem:[#allocation13 + $0x40] ss:$16 sps:$4 sm:$0xff]  }
 0x46f   :  { %4195 = vmatprep.subr.bf16.mxu0 %v9682_v36  ;;  %4236 = vmatprep.subr.bf16.mxu1 %v9685_v12  ;;  %v9745_v36 = vld [vmem:[#allocation13 + $0x6c] ss:$16 sps:$4 sm:$0xff]   ;;  %v9740_v12 = vld [vmem:[#allocation13 + $0x60] ss:$16 sps:$4 sm:$0xff]  }
 0x470   :  { %4225 = vmatprep.mubr.bf16.mxu0 %v10274_v0  ;;  %4266 = vmatprep.mubr.bf16.mxu1 %v10274_v0  ;;  %v9701_v0 = vld [vmem:[#allocation11 + $0x88] ss:$16 sps:$4 sm:$0xff]  }
 0x472   :  { %4196 = vmatpush1.bf16.msra.mxu0 %v9680_v37  ;;  %4237 = vmatpush1.bf16.msra.mxu1 %v9683_v38  ;;  %v9743_v37 = vld [vmem:[#allocation13 + $0x68] ss:$16 sps:$4 sm:$0xff]   ;;  %v9748_v38 = vld [vmem:[#allocation13 + $0x84] ss:$16 sps:$4 sm:$0xff]  }
 0x473   :  { %4197 = vmatprep.subr.bf16.mxu0 %v9688_v40  ;;  %4238 = vmatprep.subr.bf16.mxu1 %v9691_v41  ;;  %v9751_v40 = vld [vmem:[#allocation13 + $0x8c] ss:$16 sps:$4 sm:$0xff]   ;;  %v9746_v41 = vld [vmem:[#allocation13 + $0x80] ss:$16 sps:$4 sm:$0xff]  }
 0x476   :  { %4198 = vmatpush1.bf16.msra.mxu0 %v9686_v39  ;;  %4239 = vmatpush1.bf16.msra.mxu1 %v9689_v42  ;;  %v9749_v39 = vld [vmem:[#allocation13 + $0x88] ss:$16 sps:$4 sm:$0xff]   ;;  %v9754_v42 = vld [vmem:[#allocation13 + $0xa4] ss:$16 sps:$4 sm:$0xff]  }
 0x477   :  { %4199 = vmatprep.subr.bf16.mxu0 %v9694_v44  ;;  %4240 = vmatprep.subr.bf16.mxu1 %v9697_v45  ;;  %v9757_v44 = vld [vmem:[#allocation13 + $0xac] ss:$16 sps:$4 sm:$0xff]   ;;  %v9752_v45 = vld [vmem:[#allocation13 + $0xa0] ss:$16 sps:$4 sm:$0xff]  }
 0x47a   :  { %4200 = vmatpush1.bf16.msra.mxu0 %v9692_v46  ;;  %4241 = vmatpush1.bf16.msra.mxu1 %v9695_v47  ;;  %v9755_v46 = vld [vmem:[#allocation13 + $0xa8] ss:$16 sps:$4 sm:$0xff]   ;;  %v9760_v47 = vld [vmem:[#allocation13 + $0xc4] ss:$16 sps:$4 sm:$0xff]  }
 0x47b   :  { %4201 = vmatprep.subr.bf16.mxu0 %v9700_v48  ;;  %4242 = vmatprep.subr.bf16.mxu1 %v9703_v49  ;;  %v9763_v48 = vld [vmem:[#allocation13 + $0xcc] ss:$16 sps:$4 sm:$0xff]   ;;  %v9758_v49 = vld [vmem:[#allocation13 + $0xc0] ss:$16 sps:$4 sm:$0xff]  }
 0x47e   :  { %4202 = vmatpush1.bf16.msra.mxu0 %v9698_v51  ;;  %4243 = vmatpush1.bf16.msra.mxu1 %v9701_v0  ;;  %v9761_v51 = vld [vmem:[#allocation13 + $0xc8] ss:$16 sps:$4 sm:$0xff]   ;;  %v9766_v0 = vld [vmem:[#allocation13 + $0xe4] ss:$16 sps:$4 sm:$0xff]  }
 0x47f   :  { %4203 = vmatprep.subr.bf16.mxu0 %v9706_v52  ;;  %4244 = vmatprep.subr.bf16.mxu1 %v9709_v53  ;;  %v9769_v52 = vld [vmem:[#allocation13 + $0xec] ss:$16 sps:$4 sm:$0xff]   ;;  %v9764_v53 = vld [vmem:[#allocation13 + $0xe0] ss:$16 sps:$4 sm:$0xff]  }
 0x482   :  { %4204 = vmatpush1.bf16.msra.mxu0 %v9704_v54  ;;  %4245 = vmatpush1.bf16.msra.mxu1 %v9707_v56  ;;  %v9767_v54 = vld [vmem:[#allocation13 + $0xe8] ss:$16 sps:$4 sm:$0xff]   ;;  %v9772_v56 = vld [vmem:[#allocation13 + $0x104] ss:$16 sps:$4 sm:$0xff]  }
 0x483   :  { %4205 = vmatprep.subr.bf16.mxu0 %v9712_v57  ;;  %4246 = vmatprep.subr.bf16.mxu1 %v9715_v58  ;;  %v9775_v57 = vld [vmem:[#allocation13 + $0x10c] ss:$16 sps:$4 sm:$0xff]   ;;  %v9770_v58 = vld [vmem:[#allocation13 + $0x100] ss:$16 sps:$4 sm:$0xff]  }
 0x486   :  { %4206 = vmatpush1.bf16.msra.mxu0 %v9710_v60  ;;  %4247 = vmatpush1.bf16.msra.mxu1 %v9713_v61  ;;  %v9773_v60 = vld [vmem:[#allocation13 + $0x108] ss:$16 sps:$4 sm:$0xff]   ;;  %v9778_v61 = vld [vmem:[#allocation13 + $0x124] ss:$16 sps:$4 sm:$0xff]  }
 0x487   :  { %4207 = vmatprep.subr.bf16.mxu0 %v9718_v62  ;;  %4248 = vmatprep.subr.bf16.mxu1 %v9721_v1  ;;  %v9781_v62 = vld [vmem:[#allocation13 + $0x12c] ss:$16 sps:$4 sm:$0xff]   ;;  %v9776_v1 = vld [vmem:[#allocation13 + $0x120] ss:$16 sps:$4 sm:$0xff]  }
 0x48a   :  { %4208 = vmatpush1.bf16.msra.mxu0 %v9716_v3  ;;  %4249 = vmatpush1.bf16.msra.mxu1 %v9719_v4  ;;  %v9779_v3 = vld [vmem:[#allocation13 + $0x128] ss:$16 sps:$4 sm:$0xff]   ;;  %v9784_v4 = vld [vmem:[#allocation13 + $0x144] ss:$16 sps:$4 sm:$0xff]  }
 0x48b   :  { %5074 = vmatprep.subr.bf16.mxu0 %v9724_v5  ;;  %5156 = vmatprep.subr.bf16.mxu1 %v9727_v6  ;;  %v9787_v5 = vld [vmem:[#allocation13 + $0x14c] ss:$16 sps:$4 sm:$0xff]   ;;  %v9782_v6 = vld [vmem:[#allocation13 + $0x140] ss:$16 sps:$4 sm:$0xff]  }
 0x540   :  { %v8855_v7 = vpop.f32.mrb[16].mxu0  ;;  %v8877_v8 = vpop.f32.mrb[16].mxu1 }
 0x541   :  { %v8856_v11 = vpop.f32.mrb[17].mxu0  ;;  %v8878_v15 = vpop.f32.mrb[17].mxu1 }
 0x542   :  { %v8857_v16 = vadd.f32 %v8856_v11, %v8855_v7  ;;  %v8879_v17 = vadd.f32 %v8878_v15, %v8877_v8  ;;  %v8858_v19 = vpop.f32.mrb[18].mxu0  ;;  %v8880_v20 = vpop.f32.mrb[18].mxu1  ;;  %v9785_v7 = vld [vmem:[#allocation13 + $0x148] ss:$16 sps:$4 sm:$0xff]   ;;  %v9790_v8 = vld [vmem:[#allocation13 + $0x164] ss:$16 sps:$4 sm:$0xff]  }
 0x543   :  { %v8859_v22 = vpop.f32.mrb[19].mxu0  ;;  %v8881_v63 = vpop.f32.mrb[19].mxu1  ;;  %v9788_v11 = vld [vmem:[#allocation13 + $0x160] ss:$16 sps:$4 sm:$0xff]   ;;  %v9791_v15 = vld [vmem:[#allocation13 + $0x168] ss:$16 sps:$4 sm:$0xff]  }
 0x544   :  { %v3931_v23 = vadd.f32 %v8857_v16, %v3703_v9  ;;  %v9793_v9 = vld [vmem:[#allocation13 + $0x16c] ss:$16 sps:$4 sm:$0xff]   ;;  %v9796_v16 = vld [vmem:[#allocation13 + $0x184] ss:$16 sps:$4 sm:$0xff]   ;;  %v9794_v19 = vld [vmem:[#allocation13 + $0x180] ss:$16 sps:$4 sm:$0xff]  }
 0x545   :  { %v9797_v20 = vld [vmem:[#allocation13 + $0x188] ss:$16 sps:$4 sm:$0xff]   ;;  %v9802_v22 = vld [vmem:[#allocation13 + $0x1a4] ss:$16 sps:$4 sm:$0xff]   ;;  %v9805_v63 = vld [vmem:[#allocation13 + $0x1ac] ss:$16 sps:$4 sm:$0xff]  }
 0x546   :  { %v3971_v24 = vadd.f32 %v8879_v17, %v3931_v23  ;;  %v9799_v17 = vld [vmem:[#allocation13 + $0x18c] ss:$16 sps:$4 sm:$0xff]   ;;  %v9800_v23 = vld [vmem:[#allocation13 + $0x1a0] ss:$16 sps:$4 sm:$0xff]  }
 0x548   :  { %v4009_v25 = vpack.c.bf16 %v3971_v24, %v3971_v24  ;;  %3976 = vst [vmem:[#allocation19] sm:$0xff] %v3971_v24  ;;  %v9803_v24 = vld [vmem:[#allocation13 + $0x1a8] ss:$16 sps:$4 sm:$0xff]  }
 0x54a   :  { %4226 = vmatmul.mubr.bf16.vlgmr.msra.gmra.mrb[20].mxu0 %v4009_v25  ;;  %4267 = vmatmul.mubr.bf16.vlgmr.msra.gmra.mrb[20].mxu1 %v4009_v25  ;;  %v9806_v25 = vld [vmem:[#allocation13 + $0x1c0] ss:$16 sps:$4 sm:$0xff]  }
 0x54b   :  { %5075 = vmatpush1.bf16.msra.mxu0 %v9722_v2  ;;  %5157 = vmatpush1.bf16.msra.mxu1 %v9725_v43  ;;  %v9808_v2 = vld [vmem:[#allocation13 + $0x1c4] ss:$16 sps:$4 sm:$0xff]   ;;  %v9811_v43 = vld [vmem:[#allocation13 + $0x1cc] ss:$16 sps:$4 sm:$0xff]  }
 0x54c   :  { %5076 = vmatprep.subr.bf16.mxu0 %v9730_v26  ;;  %5158 = vmatprep.subr.bf16.mxu1 %v9733_v50  ;;  %v9809_v26 = vld [vmem:[#allocation13 + $0x1c8] ss:$16 sps:$4 sm:$0xff]   ;;  %v9814_v50 = vld [vmem:[#allocation13 + $0x1e4] ss:$16 sps:$4 sm:$0xff]  }
 0x54f   :  { %5077 = vmatpush1.bf16.msra.mxu0 %v9728_v27  ;;  %5159 = vmatpush1.bf16.msra.mxu1 %v9731_v28  ;;  %v9817_v27 = vld [vmem:[#allocation13 + $0x1ec] ss:$16 sps:$4 sm:$0xff]   ;;  %v9812_v28 = vld [vmem:[#allocation13 + $0x1e0] ss:$16 sps:$4 sm:$0xff]  }
 0x550   :  { %5078 = vmatprep.subr.bf16.mxu0 %v9736_v31  ;;  %5160 = vmatprep.subr.bf16.mxu1 %v9739_v32  ;;  %v9815_v31 = vld [vmem:[#allocation13 + $0x1e8] ss:$16 sps:$4 sm:$0xff]   ;;  %v9820_v32 = vld [vmem:[#allocation13 + $0x204] ss:$16 sps:$4 sm:$0xff]  }
 0x553   :  { %5079 = vmatpush1.bf16.msra.mxu0 %v9734_v29  ;;  %5161 = vmatpush1.bf16.msra.mxu1 %v9737_v33  ;;  %v9823_v29 = vld [vmem:[#allocation13 + $0x20c] ss:$16 sps:$4 sm:$0xff]  }
 0x554   :  { %5080 = vmatprep.subr.bf16.mxu0 %v9742_v34  ;;  %5162 = vmatprep.subr.bf16.mxu1 %v9745_v36  ;;  %v10565_v33 = vld [vmem:[#allocation17 + $0x4] ss:$8 sm:$0xf] }
 0x555   :  { %v4016_v34 = vrot.slane %v10565_v33, %v10496_v13  ;;  %v4020_v36 = vrot.slane %v10565_v33, %v10499_v14 }
 0x557   :  { %5081 = vmatpush1.bf16.msra.mxu0 %v9740_v12  ;;  %5163 = vmatpush1.bf16.msra.mxu1 %v9743_v37  ;;  %v4028_v12 = vrot.slane %v10565_v33, %v10506_v18 }
 0x558   :  { %5082 = vmatprep.subr.bf16.mxu0 %v9748_v38  ;;  %5164 = vmatprep.subr.bf16.mxu1 %v9751_v40 }
 0x55b   :  { %5083 = vmatpush1.bf16.msra.mxu0 %v9746_v41  ;;  %5165 = vmatpush1.bf16.msra.mxu1 %v9749_v39 }
 0x55c   :  { %5084 = vmatprep.subr.bf16.mxu0 %v9754_v42  ;;  %5166 = vmatprep.subr.bf16.mxu1 %v9757_v44 }
 0x55f   :  { %5085 = vmatpush1.bf16.msra.mxu0 %v9752_v45  ;;  %5167 = vmatpush1.bf16.msra.mxu1 %v9755_v46 }
 0x560   :  { %5086 = vmatprep.subr.bf16.mxu0 %v9760_v47  ;;  %5168 = vmatprep.subr.bf16.mxu1 %v9763_v48 }
 0x563   :  { %5087 = vmatpush1.bf16.msra.mxu0 %v9758_v49  ;;  %5169 = vmatpush1.bf16.msra.mxu1 %v9761_v51 }
 0x564   :  { %5088 = vmatprep.subr.bf16.mxu0 %v9766_v0  ;;  %5170 = vmatprep.subr.bf16.mxu1 %v9769_v52 }
 0x567   :  { %5089 = vmatpush1.bf16.msra.mxu0 %v9764_v53  ;;  %5171 = vmatpush1.bf16.msra.mxu1 %v9767_v54  ;;  %v9818_v53 = vld [vmem:[#allocation13 + $0x200] ss:$16 sps:$4 sm:$0xff]   ;;  %v9821_v54 = vld [vmem:[#allocation13 + $0x208] ss:$16 sps:$4 sm:$0xff]  }
 0x568   :  { %5090 = vmatprep.subr.bf16.mxu0 %v9772_v56  ;;  %5172 = vmatprep.subr.bf16.mxu1 %v9775_v57  ;;  %v9826_v57 = vld [vmem:[#allocation13 + $0x224] ss:$16 sps:$4 sm:$0xff]  }
 0x56b   :  { %5091 = vmatpush1.bf16.msra.mxu0 %v9770_v58  ;;  %5173 = vmatpush1.bf16.msra.mxu1 %v9773_v60  ;;  %v9829_v58 = vld [vmem:[#allocation13 + $0x22c] ss:$16 sps:$4 sm:$0xff]  }
 0x56c   :  { %5092 = vmatprep.subr.bf16.mxu0 %v9778_v61  ;;  %5174 = vmatprep.subr.bf16.mxu1 %v9781_v62  ;;  %v9824_v61 = vld [vmem:[#allocation13 + $0x220] ss:$16 sps:$4 sm:$0xff]   ;;  %v9827_v62 = vld [vmem:[#allocation13 + $0x228] ss:$16 sps:$4 sm:$0xff]  }
 0x56f   :  { %5093 = vmatpush1.bf16.msra.mxu0 %v9776_v1  ;;  %5175 = vmatpush1.bf16.msra.mxu1 %v9779_v3  ;;  %v9832_v1 = vld [vmem:[#allocation13 + $0x244] ss:$16 sps:$4 sm:$0xff]   ;;  %v9835_v3 = vld [vmem:[#allocation13 + $0x24c] ss:$16 sps:$4 sm:$0xff]  }
 0x570   :  { %5094 = vmatprep.subr.bf16.mxu0 %v9784_v4  ;;  %5176 = vmatprep.subr.bf16.mxu1 %v9787_v5  ;;  %v9830_v4 = vld [vmem:[#allocation13 + $0x240] ss:$16 sps:$4 sm:$0xff]   ;;  %v9833_v5 = vld [vmem:[#allocation13 + $0x248] ss:$16 sps:$4 sm:$0xff]  }
 0x573   :  { %5095 = vmatpush1.bf16.msra.mxu0 %v9782_v6  ;;  %5177 = vmatpush1.bf16.msra.mxu1 %v9785_v7  ;;  %v9838_v6 = vld [vmem:[#allocation13 + $0x264] ss:$16 sps:$4 sm:$0xff]   ;;  %v9841_v7 = vld [vmem:[#allocation13 + $0x26c] ss:$16 sps:$4 sm:$0xff]  }
 0x574   :  { %5096 = vmatprep.subr.bf16.mxu0 %v9790_v8  ;;  %5178 = vmatprep.subr.bf16.mxu1 %v9793_v9  ;;  %v9836_v8 = vld [vmem:[#allocation13 + $0x260] ss:$16 sps:$4 sm:$0xff]   ;;  %v9839_v9 = vld [vmem:[#allocation13 + $0x268] ss:$16 sps:$4 sm:$0xff]  }
 0x577   :  { %5097 = vmatpush1.bf16.msra.mxu0 %v9788_v11  ;;  %5179 = vmatpush1.bf16.msra.mxu1 %v9791_v15  ;;  %v9844_v11 = vld [vmem:[#allocation13 + $0x284] ss:$16 sps:$4 sm:$0xff]   ;;  %v9847_v15 = vld [vmem:[#allocation13 + $0x28c] ss:$16 sps:$4 sm:$0xff]  }
 0x578   :  { %5098 = vmatprep.subr.bf16.mxu0 %v9796_v16  ;;  %5180 = vmatprep.subr.bf16.mxu1 %v9799_v17  ;;  %v9842_v16 = vld [vmem:[#allocation13 + $0x280] ss:$16 sps:$4 sm:$0xff]   ;;  %v9845_v17 = vld [vmem:[#allocation13 + $0x288] ss:$16 sps:$4 sm:$0xff]  }
 0x57b   :  { %5099 = vmatpush1.bf16.msra.mxu0 %v9794_v19  ;;  %5181 = vmatpush1.bf16.msra.mxu1 %v9797_v20  ;;  %v9850_v19 = vld [vmem:[#allocation13 + $0x2a4] ss:$16 sps:$4 sm:$0xff]   ;;  %v9853_v20 = vld [vmem:[#allocation13 + $0x2ac] ss:$16 sps:$4 sm:$0xff]  }
 0x57c   :  { %5100 = vmatprep.subr.bf16.mxu0 %v9802_v22  ;;  %5182 = vmatprep.subr.bf16.mxu1 %v9805_v63  ;;  %v9848_v22 = vld [vmem:[#allocation13 + $0x2a0] ss:$16 sps:$4 sm:$0xff]   ;;  %v9851_v63 = vld [vmem:[#allocation13 + $0x2a8] ss:$16 sps:$4 sm:$0xff]  }
 0x57f   :  { %5101 = vmatpush1.bf16.msra.mxu0 %v9800_v23  ;;  %5183 = vmatpush1.bf16.msra.mxu1 %v9803_v24  ;;  %v9856_v23 = vld [vmem:[#allocation13 + $0x2c4] ss:$16 sps:$4 sm:$0xff]   ;;  %v9859_v24 = vld [vmem:[#allocation13 + $0x2cc] ss:$16 sps:$4 sm:$0xff]  }
 0x580   :  { %5102 = vmatprep.subr.bf16.mxu0 %v9808_v2  ;;  %5184 = vmatprep.subr.bf16.mxu1 %v9811_v43  ;;  %v9854_v2 = vld [vmem:[#allocation13 + $0x2c0] ss:$16 sps:$4 sm:$0xff]   ;;  %v9857_v43 = vld [vmem:[#allocation13 + $0x2c8] ss:$16 sps:$4 sm:$0xff]  }
 0x583   :  { %5103 = vmatpush1.bf16.msra.mxu0 %v9806_v25  ;;  %5185 = vmatpush1.bf16.msra.mxu1 %v9809_v26  ;;  %v9862_v25 = vld [vmem:[#allocation13 + $0x2e4] ss:$16 sps:$4 sm:$0xff]   ;;  %v9865_v26 = vld [vmem:[#allocation13 + $0x2ec] ss:$16 sps:$4 sm:$0xff]  }
 0x584   :  { %5104 = vmatprep.subr.bf16.mxu0 %v9814_v50  ;;  %5186 = vmatprep.subr.bf16.mxu1 %v9817_v27  ;;  %v9860_v50 = vld [vmem:[#allocation13 + $0x2e0] ss:$16 sps:$4 sm:$0xff]   ;;  %v9863_v27 = vld [vmem:[#allocation13 + $0x2e8] ss:$16 sps:$4 sm:$0xff]  }
 0x587   :  { %5105 = vmatpush1.bf16.msra.mxu0 %v9812_v28  ;;  %5187 = vmatpush1.bf16.msra.mxu1 %v9815_v31  ;;  %v9868_v28 = vld [vmem:[#allocation13 + $0x304] ss:$16 sps:$4 sm:$0xff]   ;;  %v9871_v31 = vld [vmem:[#allocation13 + $0x30c] ss:$16 sps:$4 sm:$0xff]  }
 0x588   :  { %5115 = vmatprep.subr.bf16.mxu0 %v9820_v32  ;;  %5197 = vmatprep.subr.bf16.mxu1 %v9823_v29  ;;  %v9866_v32 = vld [vmem:[#allocation13 + $0x300] ss:$16 sps:$4 sm:$0xff]   ;;  %v9869_v29 = vld [vmem:[#allocation13 + $0x308] ss:$16 sps:$4 sm:$0xff]  }
 0x61d   :  { %v4227_v37 = vpop.f32.mrb[20].mxu0  ;;  %v10573_v38 = vpop.f32.mrb[20].mxu1 }
 0x61e   :  { %v4228_v40 = vadd.f32 %v4227_v37, %v4016_v34  ;;  %v4229_v41 = vpop.f32.mrb[21].mxu0  ;;  %v4270_v39 = vpop.f32.mrb[21].mxu1  ;;  %v9874_v34 = vld [vmem:[#allocation13 + $0x324] ss:$16 sps:$4 sm:$0xff]   ;;  %v9875_v37 = vld [vmem:[#allocation13 + $0x328] ss:$16 sps:$4 sm:$0xff]  }
 0x61f   :  { %v4230_v42 = vadd.f32 %v4229_v41, %v4020_v36  ;;  %v4271_v44 = vadd.f32 %v4270_v39, %v4028_v12  ;;  %v4231_v45 = vpop.f32.mrb[22].mxu0  ;;  %v4272_v46 = vpop.f32.mrb[22].mxu1  ;;  %v9877_v36 = vld [vmem:[#allocation13 + $0x32c] ss:$16 sps:$4 sm:$0xff]   ;;  %v9872_v12 = vld [vmem:[#allocation13 + $0x320] ss:$16 sps:$4 sm:$0xff]  }
 0x620   :  { %v4275_v47 = vmax.f32 %v4228_v40, 0.0  ;;  %v4232_v48 = vpop.f32.mrb[23].mxu0  ;;  %v4273_v49 = vpop.f32.mrb[23].mxu1  ;;  %v9880_v40 = vld [vmem:[#allocation13 + $0x344] ss:$16 sps:$4 sm:$0xff]  }
 0x621   :  { %v4276_v51 = vmax.f32 %v4230_v42, 0.0  ;;  %v4278_v0 = vmax.f32 %v4271_v44, 0.0  ;;  %v9883_v41 = vld [vmem:[#allocation13 + $0x34c] ss:$16 sps:$4 sm:$0xff]   ;;  %v9878_v39 = vld [vmem:[#allocation13 + $0x340] ss:$16 sps:$4 sm:$0xff]  }
 0x622   :  { %v4407_v56 = vpack.c.bf16 %v4275_v47, %v4275_v47  ;;  %v9881_v42 = vld [vmem:[#allocation13 + $0x348] ss:$16 sps:$4 sm:$0xff]   ;;  %v9886_v44 = vld [vmem:[#allocation13 + $0x364] ss:$16 sps:$4 sm:$0xff]   ;;  %v9889_v45 = vld [vmem:[#allocation13 + $0x36c] ss:$16 sps:$4 sm:$0xff]  }
 0x623   :  { %v4408_v52 = vpack.c.bf16 %v4276_v51, %v4276_v51  ;;  %v4410_v60 = vpack.c.bf16 %v4278_v0, %v4278_v0  ;;  %v9884_v46 = vld [vmem:[#allocation13 + $0x360] ss:$16 sps:$4 sm:$0xff]   ;;  %v9887_v47 = vld [vmem:[#allocation13 + $0x368] ss:$16 sps:$4 sm:$0xff]   ;;  %v9892_v48 = vld [vmem:[#allocation13 + $0x384] ss:$16 sps:$4 sm:$0xff]  }
 0x624   :  { %v9895_v49 = vld [vmem:[#allocation13 + $0x38c] ss:$16 sps:$4 sm:$0xff]   ;;  %v9890_v51 = vld [vmem:[#allocation13 + $0x380] ss:$16 sps:$4 sm:$0xff]   ;;  %v9893_v0 = vld [vmem:[#allocation13 + $0x388] ss:$16 sps:$4 sm:$0xff]  }
 0x625   :  { %5106 = vmatprep.mubr.bf16.mxu0 %v4408_v52  ;;  %5188 = vmatprep.mubr.bf16.mxu1 %v4408_v52  ;;  %v9898_v52 = vld [vmem:[#allocation13 + $0x3a4] ss:$16 sps:$4 sm:$0xff]  }
 0x626   :  { %5107 = vmatmul.mubr.bf16.vlgmr.msra.gmra.mrb[24].mxu0 %v4407_v56  ;;  %5189 = vmatmul.mubr.bf16.vlgmr.msra.gmra.mrb[24].mxu1 %v4407_v56  ;;  %v9899_v56 = vld [vmem:[#allocation13 + $0x3a8] ss:$16 sps:$4 sm:$0xff]  }
 0x627   :  { %5116 = vmatpush1.bf16.msra.mxu0 %v9818_v53  ;;  %5198 = vmatpush1.bf16.msra.mxu1 %v9821_v54  ;;  %v9901_v53 = vld [vmem:[#allocation13 + $0x3ac] ss:$16 sps:$4 sm:$0xff]   ;;  %v9896_v54 = vld [vmem:[#allocation13 + $0x3a0] ss:$16 sps:$4 sm:$0xff]  }
 0x628   :  { %5147 = vmatprep.mubr.bf16.mxu0 %v4410_v60  ;;  %5229 = vmatprep.mubr.bf16.mxu1 %v4410_v60  ;;  %v9907_v60 = vld [vmem:[#allocation13 + $0x3cc] ss:$16 sps:$4 sm:$0xff]  }
 0x629   :  { %5117 = vmatprep.subr.bf16.mxu0 %v9826_v57  ;;  %5199 = vmatprep.subr.bf16.mxu1 %v9829_v58  ;;  %v4024_v57 = vrot.slane %v10565_v33, %v10517_v30  ;;  %v9904_v58 = vld [vmem:[#allocation13 + $0x3c4] ss:$16 sps:$4 sm:$0xff]   ;;  %v9908_v33 = vld [vmem:[#allocation13 + $0x3e0] ss:$16 sps:$4 sm:$0xff]  }
 0x62b   :  { %5118 = vmatpush1.bf16.msra.mxu0 %v9824_v61  ;;  %5200 = vmatpush1.bf16.msra.mxu1 %v9827_v62  ;;  %v9902_v61 = vld [vmem:[#allocation13 + $0x3c0] ss:$16 sps:$4 sm:$0xff]   ;;  %v9905_v62 = vld [vmem:[#allocation13 + $0x3c8] ss:$16 sps:$4 sm:$0xff]  }
 0x62c   :  { %5119 = vmatprep.subr.bf16.mxu0 %v9832_v1  ;;  %5201 = vmatprep.subr.bf16.mxu1 %v9835_v3  ;;  %v4269_v1 = vadd.f32 %v10573_v38, %v4024_v57  ;;  %v9910_v3 = vld [vmem:[#allocation13 + $0x3e4] ss:$16 sps:$4 sm:$0xff]   ;;  %v5251_v38 = vld [vmem:[#allocation14 + $0x48] sm:$0xff] }
 0x62f   :  { %5120 = vmatpush1.bf16.msra.mxu0 %v9830_v4  ;;  %5202 = vmatpush1.bf16.msra.mxu1 %v9833_v5  ;;  %v9913_v4 = vld [vmem:[#allocation13 + $0x3ec] ss:$16 sps:$4 sm:$0xff]   ;;  %v5242_v5 = vld [vmem:[#allocation14] sm:$0xff] }
 0x630   :  { %5121 = vmatprep.subr.bf16.mxu0 %v9838_v6  ;;  %5203 = vmatprep.subr.bf16.mxu1 %v9841_v7  ;;  %v5246_v6 = vld [vmem:[#allocation14 + $0x20] sm:$0xff]  ;;  %v5243_v7 = vld [vmem:[#allocation14 + $0x8] sm:$0xff] }
 0x633   :  { %5122 = vmatpush1.bf16.msra.mxu0 %v9836_v8  ;;  %5204 = vmatpush1.bf16.msra.mxu1 %v9839_v9  ;;  %v5247_v8 = vld [vmem:[#allocation14 + $0x28] sm:$0xff] }
 0x634   :  { %5123 = vmatprep.subr.bf16.mxu0 %v9844_v11  ;;  %5205 = vmatprep.subr.bf16.mxu1 %v9847_v15  ;;  %v9911_v9 = vld [vmem:[#allocation13 + $0x3e8] ss:$16 sps:$4 sm:$0xff]   ;;  %v4277_v11 = vmax.f32 %v4269_v1, 0.0  ;;  %v8520_v15 = vcombine.high %v5242_v5, %v5246_v6 }
 0x635   :  { %v5291_v1 = vld [vmem:[#allocation14 + $0x188] sm:$0xff] }
 0x637   :  { %5124 = vmatpush1.bf16.msra.mxu0 %v9842_v16  ;;  %5206 = vmatpush1.bf16.msra.mxu1 %v9845_v17  ;;  %v8522_v16 = vcombine.high %v5243_v7, %v5247_v8  ;;  %v5250_v17 = vld [vmem:[#allocation14 + $0x40] sm:$0xff] }
 0x638   :  { %5125 = vmatprep.subr.bf16.mxu0 %v9850_v19  ;;  %5207 = vmatprep.subr.bf16.mxu1 %v9853_v20  ;;  %v5254_v19 = vld [vmem:[#allocation14 + $0x60] sm:$0xff]  ;;  %v5255_v20 = vld [vmem:[#allocation14 + $0x68] sm:$0xff] }
 0x63b   :  { %5126 = vmatpush1.bf16.msra.mxu0 %v9848_v22  ;;  %5208 = vmatpush1.bf16.msra.mxu1 %v9851_v63  ;;  %v8519_v22 = vcombine.low %v5242_v5, %v5246_v6  ;;  %v8521_v63 = vcombine.low %v5243_v7, %v5247_v8  ;;  %v5298_v8 = vld [vmem:[#allocation14 + $0x1c0] sm:$0xff] }
 0x63c   :  { %5127 = vmatprep.subr.bf16.mxu0 %v9856_v23  ;;  %5209 = vmatprep.subr.bf16.mxu1 %v9859_v24  ;;  %v4409_v23 = vpack.c.bf16 %v4277_v11, %v4277_v11  ;;  %v8528_v24 = vcombine.high %v5250_v17, %v5254_v19  ;;  %v5303_v11 = vld [vmem:[#allocation14 + $0x1e8] sm:$0xff] }
 0x63f   :  { %5128 = vmatpush1.bf16.msra.mxu0 %v9854_v2  ;;  %5210 = vmatpush1.bf16.msra.mxu1 %v9857_v43  ;;  %v8530_v2 = vcombine.high %v5251_v38, %v5255_v20  ;;  %v5258_v43 = vld [vmem:[#allocation14 + $0x80] sm:$0xff] }
 0x640   :  { %5129 = vmatprep.subr.bf16.mxu0 %v9862_v25  ;;  %5211 = vmatprep.subr.bf16.mxu1 %v9865_v26  ;;  %v5262_v25 = vld [vmem:[#allocation14 + $0xa0] sm:$0xff]  ;;  %v5259_v26 = vld [vmem:[#allocation14 + $0x88] sm:$0xff] }
 0x643   :  { %5130 = vmatpush1.bf16.msra.mxu0 %v9860_v50  ;;  %5212 = vmatpush1.bf16.msra.mxu1 %v9863_v27  ;;  %v5263_v50 = vld [vmem:[#allocation14 + $0xa8] sm:$0xff]  ;;  %v8527_v27 = vcombine.low %v5250_v17, %v5254_v19 }
 0x644   :  { %5131 = vmatprep.subr.bf16.mxu0 %v9868_v28  ;;  %5213 = vmatprep.subr.bf16.mxu1 %v9871_v31  ;;  %v8529_v28 = vcombine.low %v5251_v38, %v5255_v20  ;;  %v8536_v31 = vcombine.high %v5258_v43, %v5262_v25  ;;  %v5306_v38 = vld [vmem:[#allocation14 + $0x200] sm:$0xff] }
 0x645   :  { %v5310_v20 = vld [vmem:[#allocation14 + $0x220] sm:$0xff] }
 0x647   :  { %5132 = vmatpush1.bf16.msra.mxu0 %v9866_v32  ;;  %5214 = vmatpush1.bf16.msra.mxu1 %v9869_v29  ;;  %v8538_v32 = vcombine.high %v5259_v26, %v5263_v50  ;;  %v5266_v29 = vld [vmem:[#allocation14 + $0xc0] sm:$0xff] }
 0x648   :  { %5133 = vmatprep.subr.bf16.mxu0 %v9874_v34  ;;  %5215 = vmatprep.subr.bf16.mxu1 %v9877_v36  ;;  %v5270_v34 = vld [vmem:[#allocation14 + $0xe0] sm:$0xff]  ;;  %v5267_v36 = vld [vmem:[#allocation14 + $0xc8] sm:$0xff] }
 0x64b   :  { %5134 = vmatpush1.bf16.msra.mxu0 %v9872_v12  ;;  %5216 = vmatpush1.bf16.msra.mxu1 %v9875_v37  ;;  %v5271_v12 = vld [vmem:[#allocation14 + $0xe8] sm:$0xff]  ;;  %v8535_v37 = vcombine.low %v5258_v43, %v5262_v25  ;;  %v5314_v25 = vld [vmem:[#allocation14 + $0x240] sm:$0xff] }
 0x64c   :  { %5135 = vmatprep.subr.bf16.mxu0 %v9880_v40  ;;  %5217 = vmatprep.subr.bf16.mxu1 %v9883_v41  ;;  %v8537_v40 = vcombine.low %v5259_v26, %v5263_v50  ;;  %v8544_v41 = vcombine.high %v5266_v29, %v5270_v34  ;;  %v5318_v26 = vld [vmem:[#allocation14 + $0x260] sm:$0xff]  ;;  %v5315_v50 = vld [vmem:[#allocation14 + $0x248] sm:$0xff] }
 0x64f   :  { %5136 = vmatpush1.bf16.msra.mxu0 %v9878_v39  ;;  %5218 = vmatpush1.bf16.msra.mxu1 %v9881_v42  ;;  %v8546_v39 = vcombine.high %v5267_v36, %v5271_v12  ;;  %v5274_v42 = vld [vmem:[#allocation14 + $0x100] sm:$0xff] }
 0x650   :  { %5137 = vmatprep.subr.bf16.mxu0 %v9886_v44  ;;  %5219 = vmatprep.subr.bf16.mxu1 %v9889_v45  ;;  %v5278_v44 = vld [vmem:[#allocation14 + $0x120] sm:$0xff]  ;;  %v5275_v45 = vld [vmem:[#allocation14 + $0x108] sm:$0xff] }
 0x653   :  { %5138 = vmatpush1.bf16.msra.mxu0 %v9884_v46  ;;  %5220 = vmatpush1.bf16.msra.mxu1 %v9887_v47  ;;  %v5279_v46 = vld [vmem:[#allocation14 + $0x128] sm:$0xff]  ;;  %v8543_v47 = vcombine.low %v5266_v29, %v5270_v34  ;;  %v5322_v34 = vld [vmem:[#allocation14 + $0x280] sm:$0xff] }
 0x654   :  { %5139 = vmatprep.subr.bf16.mxu0 %v9892_v48  ;;  %5221 = vmatprep.subr.bf16.mxu1 %v9895_v49  ;;  %v8545_v48 = vcombine.low %v5267_v36, %v5271_v12  ;;  %v8552_v49 = vcombine.high %v5274_v42, %v5278_v44  ;;  %v8553_v57 = vcombine.low %v5275_v45, %v5279_v46  ;;  %v5326_v36 = vld [vmem:[#allocation14 + $0x2a0] sm:$0xff]  ;;  %v5323_v12 = vld [vmem:[#allocation14 + $0x288] sm:$0xff] }
 0x657   :  { %5140 = vmatpush1.bf16.msra.mxu0 %v9890_v51  ;;  %5222 = vmatpush1.bf16.msra.mxu1 %v9893_v0  ;;  %v8554_v51 = vcombine.high %v5275_v45, %v5279_v46  ;;  %v5282_v0 = vld [vmem:[#allocation14 + $0x140] sm:$0xff]  ;;  %v5331_v46 = vld [vmem:[#allocation14 + $0x2c8] sm:$0xff] }
 0x658   :  { %5141 = vmatprep.subr.bf16.mxu0 %v9898_v52  ;;  %5223 = vmatprep.subr.bf16.mxu1 %v9901_v53  ;;  %v5286_v52 = vld [vmem:[#allocation14 + $0x160] sm:$0xff]  ;;  %v5283_v53 = vld [vmem:[#allocation14 + $0x148] sm:$0xff] }
 0x659   :  { %v5334_v45 = vld [vmem:[#allocation14 + $0x2e0] sm:$0xff] }
 0x65b   :  { %5142 = vmatpush1.bf16.msra.mxu0 %v9896_v54  ;;  %5224 = vmatpush1.bf16.msra.mxu1 %v9899_v56  ;;  %v5287_v54 = vld [vmem:[#allocation14 + $0x168] sm:$0xff]  ;;  %v8551_v56 = vcombine.low %v5274_v42, %v5278_v44  ;;  %v5330_v44 = vld [vmem:[#allocation14 + $0x2c0] sm:$0xff] }
 0x65c   :  { %5143 = vmatprep.subr.bf16.mxu0 %v9904_v58  ;;  %5225 = vmatprep.subr.bf16.mxu1 %v9907_v60  ;;  %v8560_v58 = vcombine.high %v5282_v0, %v5286_v52  ;;  %v8562_v60 = vcombine.high %v5283_v53, %v5287_v54  ;;  %v8561_v5 = vcombine.low %v5283_v53, %v5287_v54  ;;  %v5342_v53 = vld [vmem:[#allocation14 + $0x320] sm:$0xff]  ;;  %v5339_v54 = vld [vmem:[#allocation14 + $0x308] sm:$0xff] }
 0x65f   :  { %5144 = vmatpush1.bf16.msra.mxu0 %v9902_v61  ;;  %5226 = vmatpush1.bf16.msra.mxu1 %v9905_v62  ;;  %v5290_v61 = vld [vmem:[#allocation14 + $0x180] sm:$0xff] }
 0x660   :  { %5145 = vmatprep.subr.bf16.mxu0 %v9910_v3  ;;  %5227 = vmatprep.subr.bf16.mxu1 %v9913_v4  ;;  %v5294_v62 = vld [vmem:[#allocation14 + $0x1a0] sm:$0xff]  ;;  %v5295_v3 = vld [vmem:[#allocation14 + $0x1a8] sm:$0xff]  ;;  %v8559_v4 = vcombine.low %v5282_v0, %v5286_v52 }
 0x661   :  { %v8568_v6 = vcombine.high %v5290_v61, %v5294_v62  ;;  %v8570_v7 = vcombine.high %v5291_v1, %v5295_v3  ;;  %v5338_v52 = vld [vmem:[#allocation14 + $0x300] sm:$0xff] }
 0x663   :  { %5146 = vmatpush1.bf16.msra.mxu0 %v9908_v33  ;;  %5228 = vmatpush1.bf16.msra.mxu1 %v9911_v9  ;;  %v5302_v33 = vld [vmem:[#allocation14 + $0x1e0] sm:$0xff]  ;;  %v5299_v9 = vld [vmem:[#allocation14 + $0x1c8] sm:$0xff] }
 0x664   :  { %6827 = vmatprep.subr.bf16.mxu0 %v8520_v15  ;;  %6909 = vmatprep.subr.bf16.mxu1 %v8522_v16  ;;  %v8567_v15 = vcombine.low %v5290_v61, %v5294_v62  ;;  %v8569_v16 = vcombine.low %v5291_v1, %v5295_v3  ;;  %v8576_v17 = vcombine.high %v5298_v8, %v5302_v33  ;;  %v5346_v62 = vld [vmem:[#allocation14 + $0x340] sm:$0xff]  ;;  %v5347_v3 = vld [vmem:[#allocation14 + $0x348] sm:$0xff] }
 0x665   :  { %v8578_v19 = vcombine.high %v5299_v9, %v5303_v11  ;;  %v5350_v1 = vld [vmem:[#allocation14 + $0x360] sm:$0xff] }
 0x666   :  { %5148 = vmatmul.mubr.bf16.vlgmr.msra.gmra.mrb[24].mxu0 %v4409_v23  ;;  %5230 = vmatmul.mubr.bf16.vlgmr.msra.gmra.mrb[24].mxu1 %v4409_v23  ;;  %v8575_v23 = vcombine.low %v5298_v8, %v5302_v33  ;;  %v8623_v33 = vcombine.low %v5346_v62, %v5350_v1 }
 0x667   :  { %6828 = vmatpush1.bf16.msra.mxu0 %v8519_v22  ;;  %6910 = vmatpush1.bf16.msra.mxu1 %v8521_v63  ;;  %v5307_v22 = vld [vmem:[#allocation14 + $0x208] sm:$0xff] }
 0x668   :  { %6829 = vmatprep.subr.bf16.mxu0 %v8528_v24  ;;  %6911 = vmatprep.subr.bf16.mxu1 %v8530_v2  ;;  %v5311_v63 = vld [vmem:[#allocation14 + $0x228] sm:$0xff]  ;;  %v8577_v24 = vcombine.low %v5299_v9, %v5303_v11  ;;  %v8584_v2 = vcombine.high %v5306_v38, %v5310_v20  ;;  %v5354_v11 = vld [vmem:[#allocation14 + $0x380] sm:$0xff] }
 0x669   :  { %v8586_v43 = vcombine.high %v5307_v22, %v5311_v63 }
 0x66b   :  { %6830 = vmatpush1.bf16.msra.mxu0 %v8527_v27  ;;  %6912 = vmatpush1.bf16.msra.mxu1 %v8529_v28  ;;  %v5319_v27 = vld [vmem:[#allocation14 + $0x268] sm:$0xff]  ;;  %v8583_v28 = vcombine.low %v5306_v38, %v5310_v20 }
 0x66c   :  { %6831 = vmatprep.subr.bf16.mxu0 %v8536_v31  ;;  %6913 = vmatprep.subr.bf16.mxu1 %v8538_v32  ;;  %v8585_v31 = vcombine.low %v5307_v22, %v5311_v63  ;;  %v8592_v32 = vcombine.high %v5314_v25, %v5318_v26  ;;  %v8594_v29 = vcombine.high %v5315_v50, %v5319_v27  ;;  %v5362_v63 = vld [vmem:[#allocation14 + $0x3c0] sm:$0xff] }
 0x66f   :  { %6832 = vmatpush1.bf16.msra.mxu0 %v8535_v37  ;;  %6914 = vmatpush1.bf16.msra.mxu1 %v8537_v40  ;;  %v5327_v37 = vld [vmem:[#allocation14 + $0x2a8] sm:$0xff]  ;;  %v8591_v40 = vcombine.low %v5314_v25, %v5318_v26 }
 0x670   :  { %6833 = vmatprep.subr.bf16.mxu0 %v8544_v41  ;;  %6915 = vmatprep.subr.bf16.mxu1 %v8546_v39  ;;  %v8593_v41 = vcombine.low %v5315_v50, %v5319_v27  ;;  %v8600_v39 = vcombine.high %v5322_v34, %v5326_v36  ;;  %v8602_v42 = vcombine.high %v5323_v12, %v5327_v37  ;;  %v5370_v27 = vld [vmem:[#allocation14 + $0x400] sm:$0xff] }
 0x673   :  { %6834 = vmatpush1.bf16.msra.mxu0 %v8543_v47  ;;  %6916 = vmatpush1.bf16.msra.mxu1 %v8545_v48  ;;  %v5335_v47 = vld [vmem:[#allocation14 + $0x2e8] sm:$0xff]  ;;  %v8599_v48 = vcombine.low %v5322_v34, %v5326_v36 }
 0x674   :  { %6835 = vmatprep.subr.bf16.mxu0 %v8552_v49  ;;  %6917 = vmatprep.subr.bf16.mxu1 %v8554_v51  ;;  %v8601_v49 = vcombine.low %v5323_v12, %v5327_v37  ;;  %v8608_v51 = vcombine.high %v5330_v44, %v5334_v45  ;;  %v8610_v0 = vcombine.high %v5331_v46, %v5335_v47  ;;  %v10578_v37 = vld [vmem:[#allocation17 + $0x5] ss:$8 sm:$0xf] }
 0x677   :  { %6836 = vmatpush1.bf16.msra.mxu0 %v8551_v56  ;;  %6918 = vmatpush1.bf16.msra.mxu1 %v8553_v57  ;;  %v5343_v56 = vld [vmem:[#allocation14 + $0x328] sm:$0xff]  ;;  %v8607_v57 = vcombine.low %v5330_v44, %v5334_v45 }
 0x678   :  { %6837 = vmatprep.subr.bf16.mxu0 %v8560_v58  ;;  %6919 = vmatprep.subr.bf16.mxu1 %v8562_v60  ;;  %v8609_v58 = vcombine.low %v5331_v46, %v5335_v47  ;;  %v8616_v60 = vcombine.high %v5338_v52, %v5342_v53  ;;  %v8618_v61 = vcombine.high %v5339_v54, %v5343_v56 }
 0x67b   :  { %6838 = vmatpush1.bf16.msra.mxu0 %v8559_v4  ;;  %6920 = vmatpush1.bf16.msra.mxu1 %v8561_v5  ;;  %v5351_v4 = vld [vmem:[#allocation14 + $0x368] sm:$0xff]  ;;  %v8615_v5 = vcombine.low %v5338_v52, %v5342_v53 }
 0x67c   :  { %6839 = vmatprep.subr.bf16.mxu0 %v8568_v6  ;;  %6921 = vmatprep.subr.bf16.mxu1 %v8570_v7  ;;  %v8617_v6 = vcombine.low %v5339_v54, %v5343_v56  ;;  %v8624_v7 = vcombine.high %v5346_v62, %v5350_v1  ;;  %v8626_v8 = vcombine.high %v5347_v3, %v5351_v4  ;;  %v5383_v62 = vld [vmem:[#allocation14 + $0x468] sm:$0xff] }
 0x67d   :  { %v8625_v9 = vcombine.low %v5347_v3, %v5351_v4  ;;  %v5386_v4 = vld [vmem:[#allocation14 + $0x480] sm:$0xff] }
 0x67f   :  { %6840 = vmatpush1.bf16.msra.mxu0 %v8567_v15  ;;  %6922 = vmatpush1.bf16.msra.mxu1 %v8569_v16  ;;  %v5358_v15 = vld [vmem:[#allocation14 + $0x3a0] sm:$0xff]  ;;  %v5355_v16 = vld [vmem:[#allocation14 + $0x388] sm:$0xff] }
 0x680   :  { %6841 = vmatprep.subr.bf16.mxu0 %v8576_v17  ;;  %6923 = vmatprep.subr.bf16.mxu1 %v8578_v19  ;;  %v8632_v17 = vcombine.high %v5354_v11, %v5358_v15  ;;  %v5359_v19 = vld [vmem:[#allocation14 + $0x3a8] sm:$0xff]  ;;  %v8631_v38 = vcombine.low %v5354_v11, %v5358_v15 }
 0x681   :  { %v8633_v20 = vcombine.low %v5355_v16, %v5359_v19  ;;  %v8634_v22 = vcombine.high %v5355_v16, %v5359_v19  ;;  %v5394_v19 = vld [vmem:[#allocation14 + $0x4c0] sm:$0xff] }
 0x683   :  { %6842 = vmatpush1.bf16.msra.mxu0 %v8575_v23  ;;  %6924 = vmatpush1.bf16.msra.mxu1 %v8577_v24  ;;  %v5366_v23 = vld [vmem:[#allocation14 + $0x3e0] sm:$0xff]  ;;  %v5363_v24 = vld [vmem:[#allocation14 + $0x3c8] sm:$0xff] }
 0x684   :  { %6843 = vmatprep.subr.bf16.mxu0 %v8584_v2  ;;  %6925 = vmatprep.subr.bf16.mxu1 %v8586_v43  ;;  %v8640_v2 = vcombine.high %v5362_v63, %v5366_v23  ;;  %v5367_v43 = vld [vmem:[#allocation14 + $0x3e8] sm:$0xff]  ;;  %v8639_v25 = vcombine.low %v5362_v63, %v5366_v23 }
 0x685   :  { %v8641_v26 = vcombine.low %v5363_v24, %v5367_v43  ;;  %v8642_v50 = vcombine.high %v5363_v24, %v5367_v43  ;;  %v5402_v43 = vld [vmem:[#allocation14 + $0x500] sm:$0xff] }
 0x687   :  { %6844 = vmatpush1.bf16.msra.mxu0 %v8583_v28  ;;  %6926 = vmatpush1.bf16.msra.mxu1 %v8585_v31  ;;  %v5374_v28 = vld [vmem:[#allocation14 + $0x420] sm:$0xff]  ;;  %v5371_v31 = vld [vmem:[#allocation14 + $0x408] sm:$0xff] }
 0x688   :  { %6845 = vmatprep.subr.bf16.mxu0 %v8592_v32  ;;  %6927 = vmatprep.subr.bf16.mxu1 %v8594_v29  ;;  %v8648_v32 = vcombine.high %v5370_v27, %v5374_v28  ;;  %v5375_v29 = vld [vmem:[#allocation14 + $0x428] sm:$0xff]  ;;  %v8647_v34 = vcombine.low %v5370_v27, %v5374_v28 }
 0x689   :  { %v8649_v36 = vcombine.low %v5371_v31, %v5375_v29  ;;  %v8650_v12 = vcombine.high %v5371_v31, %v5375_v29  ;;  %v5410_v29 = vld [vmem:[#allocation14 + $0x540] sm:$0xff] }
 0x68b   :  { %6846 = vmatpush1.bf16.msra.mxu0 %v8591_v40  ;;  %6928 = vmatpush1.bf16.msra.mxu1 %v8593_v41  ;;  %v4417_v40 = vrot.slane %v10578_v37, %v10496_v13  ;;  %v4421_v41 = vrot.slane %v10578_v37, %v10499_v14 }
 0x68c   :  { %6847 = vmatprep.subr.bf16.mxu0 %v8600_v39  ;;  %6929 = vmatprep.subr.bf16.mxu1 %v8602_v42  ;;  %v4429_v39 = vrot.slane %v10578_v37, %v10506_v18 }
 0x68f   :  { %6848 = vmatpush1.bf16.msra.mxu0 %v8599_v48  ;;  %6930 = vmatpush1.bf16.msra.mxu1 %v8601_v49 }
 0x690   :  { %6849 = vmatprep.subr.bf16.mxu0 %v8608_v51  ;;  %6931 = vmatprep.subr.bf16.mxu1 %v8610_v0 }
 0x693   :  { %6850 = vmatpush1.bf16.msra.mxu0 %v8607_v57  ;;  %6932 = vmatpush1.bf16.msra.mxu1 %v8609_v58  ;;  %v5378_v57 = vld [vmem:[#allocation14 + $0x440] sm:$0xff] }
 0x694   :  { %6851 = vmatprep.subr.bf16.mxu0 %v8616_v60  ;;  %6933 = vmatprep.subr.bf16.mxu1 %v8618_v61  ;;  %v5382_v60 = vld [vmem:[#allocation14 + $0x460] sm:$0xff]  ;;  %v5379_v61 = vld [vmem:[#allocation14 + $0x448] sm:$0xff] }
 0x695   :  { %v8655_v11 = vcombine.low %v5378_v57, %v5382_v60  ;;  %v8657_v15 = vcombine.low %v5379_v61, %v5383_v62 }
 0x697   :  { %6852 = vmatpush1.bf16.msra.mxu0 %v8615_v5  ;;  %6934 = vmatpush1.bf16.msra.mxu1 %v8617_v6  ;;  %v8656_v5 = vcombine.high %v5378_v57, %v5382_v60  ;;  %v8658_v6 = vcombine.high %v5379_v61, %v5383_v62  ;;  %v5431_v57 = vld [vmem:[#allocation14 + $0x5e8] sm:$0xff] }
 0x698   :  { %6853 = vmatprep.subr.bf16.mxu0 %v8624_v7  ;;  %6935 = vmatprep.subr.bf16.mxu1 %v8626_v8  ;;  %v5390_v7 = vld [vmem:[#allocation14 + $0x4a0] sm:$0xff]  ;;  %v5387_v8 = vld [vmem:[#allocation14 + $0x488] sm:$0xff] }
 0x699   :  { %v8664_v16 = vcombine.high %v5386_v4, %v5390_v7  ;;  %v8663_v63 = vcombine.low %v5386_v4, %v5390_v7  ;;  %v5434_v4 = vld [vmem:[#allocation14 + $0x600] sm:$0xff]  ;;  %v5439_v7 = vld [vmem:[#allocation14 + $0x628] sm:$0xff] }
 0x69b   :  { %6854 = vmatpush1.bf16.msra.mxu0 %v8623_v33  ;;  %6936 = vmatpush1.bf16.msra.mxu1 %v8625_v9  ;;  %v5391_v33 = vld [vmem:[#allocation14 + $0x4a8] sm:$0xff] }
 0x69c   :  { %6855 = vmatprep.subr.bf16.mxu0 %v8632_v17  ;;  %6937 = vmatprep.subr.bf16.mxu1 %v8634_v22  ;;  %v8666_v17 = vcombine.high %v5387_v8, %v5391_v33  ;;  %v5399_v22 = vld [vmem:[#allocation14 + $0x4e8] sm:$0xff]  ;;  %v8665_v23 = vcombine.low %v5387_v8, %v5391_v33 }
 0x69f   :  { %6856 = vmatpush1.bf16.msra.mxu0 %v8631_v38  ;;  %6938 = vmatpush1.bf16.msra.mxu1 %v8633_v20  ;;  %v5398_v38 = vld [vmem:[#allocation14 + $0x4e0] sm:$0xff]  ;;  %v5395_v20 = vld [vmem:[#allocation14 + $0x4c8] sm:$0xff] }
 0x6a0   :  { %6857 = vmatprep.subr.bf16.mxu0 %v8640_v2  ;;  %6939 = vmatprep.subr.bf16.mxu1 %v8642_v50  ;;  %v8672_v24 = vcombine.high %v5394_v19, %v5398_v38  ;;  %v8674_v2 = vcombine.high %v5395_v20, %v5399_v22  ;;  %v5407_v50 = vld [vmem:[#allocation14 + $0x528] sm:$0xff]  ;;  %v8671_v27 = vcombine.low %v5394_v19, %v5398_v38 }
 0x6a1   :  { %v8673_v28 = vcombine.low %v5395_v20, %v5399_v22  ;;  %v5443_v19 = vld [vmem:[#allocation14 + $0x648] sm:$0xff] }
 0x6a2   :  { %v5447_v38 = vld [vmem:[#allocation14 + $0x668] sm:$0xff] }
 0x6a3   :  { %6858 = vmatpush1.bf16.msra.mxu0 %v8639_v25  ;;  %6940 = vmatpush1.bf16.msra.mxu1 %v8641_v26  ;;  %v5406_v25 = vld [vmem:[#allocation14 + $0x520] sm:$0xff]  ;;  %v5403_v26 = vld [vmem:[#allocation14 + $0x508] sm:$0xff] }
 0x6a4   :  { %6868 = vmatprep.subr.bf16.mxu0 %v8648_v32  ;;  %6950 = vmatprep.subr.bf16.mxu1 %v8650_v12  ;;  %v8680_v31 = vcombine.high %v5402_v43, %v5406_v25  ;;  %v8682_v32 = vcombine.high %v5403_v26, %v5407_v50  ;;  %v5415_v12 = vld [vmem:[#allocation14 + $0x568] sm:$0xff] }
 0x739   :  { %v5149_v42 = vpop.f32.mrb[24].mxu0  ;;  %v10586_v44 = vpop.f32.mrb[24].mxu1 }
 0x73a   :  { %v8979_v45 = vadd.f32 %v5149_v42, %v4417_v40  ;;  %v5151_v46 = vpop.f32.mrb[25].mxu0  ;;  %v5233_v47 = vpop.f32.mrb[25].mxu1  ;;  %v8679_v40 = vcombine.low %v5402_v43, %v5406_v25  ;;  %v5451_v43 = vld [vmem:[#allocation14 + $0x688] sm:$0xff] }
 0x73b   :  { %v8980_v48 = vadd.f32 %v5151_v46, %v4421_v41  ;;  %v8982_v49 = vadd.f32 %v5233_v47, %v4429_v39  ;;  %v5153_v51 = vpop.f32.mrb[26].mxu0  ;;  %v5235_v0 = vpop.f32.mrb[26].mxu1  ;;  %v8681_v41 = vcombine.low %v5403_v26, %v5407_v50  ;;  %v5422_v46 = vld [vmem:[#allocation14 + $0x5a0] sm:$0xff]  ;;  %v5419_v47 = vld [vmem:[#allocation14 + $0x588] sm:$0xff]  ;;  %v8721_v50 = vcombine.low %v5443_v19, %v5447_v38 }
 0x73c   :  { %v5238_v52 = vmax.f32 %v8979_v45, 0.0  ;;  %v5154_v53 = vpop.f32.mrb[27].mxu0  ;;  %v5236_v54 = vpop.f32.mrb[27].mxu1  ;;  %v5418_v45 = vld [vmem:[#allocation14 + $0x580] sm:$0xff]  ;;  %v5455_v25 = vld [vmem:[#allocation14 + $0x6a8] sm:$0xff] }
 0x73d   :  { %v5239_v56 = vmax.f32 %v8980_v48, 0.0  ;;  %v5241_v58 = vmax.f32 %v8982_v49, 0.0  ;;  %v5423_v48 = vld [vmem:[#allocation14 + $0x5a8] sm:$0xff]  ;;  %v8696_v0 = vcombine.high %v5418_v45, %v5422_v46  ;;  %v5426_v53 = vld [vmem:[#allocation14 + $0x5c0] sm:$0xff] }
 0x73e   :  { %v10590_v3 = vpack.c.bf16 %v5238_v52, %v5238_v52  ;;  %v8698_v52 = vcombine.high %v5419_v47, %v5423_v48  ;;  %v5430_v54 = vld [vmem:[#allocation14 + $0x5e0] sm:$0xff]  ;;  %v8697_v60 = vcombine.low %v5419_v47, %v5423_v48 }
 0x73f   :  { %v10588_v1 = vpack.c.bf16 %v5239_v56, %v5239_v56  ;;  %v10594_v9 = vpack.c.bf16 %v5241_v58, %v5241_v58  ;;  %v5427_v56 = vld [vmem:[#allocation14 + $0x5c8] sm:$0xff]  ;;  %v8695_v58 = vcombine.low %v5418_v45, %v5422_v46  ;;  %v8704_v61 = vcombine.high %v5426_v53, %v5430_v54 }
 0x740   :  { %v8706_v62 = vcombine.high %v5427_v56, %v5431_v57  ;;  %v8703_v8 = vcombine.low %v5426_v53, %v5430_v54  ;;  %v8705_v33 = vcombine.low %v5427_v56, %v5431_v57  ;;  %v5467_v45 = vld [vmem:[#allocation14 + $0x708] sm:$0xff] }
 0x741   :  { %6859 = vmatprep.mubr.bf16.mxu0 %v10588_v1  ;;  %6941 = vmatprep.mubr.bf16.mxu1 %v10588_v1  ;;  %v5471_v46 = vld [vmem:[#allocation14 + $0x728] sm:$0xff] }
 0x742   :  { %6860 = vmatmul.mubr.bf16.vlgmr.msra.gmra.mrb[28].mxu0 %v10590_v3  ;;  %6942 = vmatmul.mubr.bf16.vlgmr.msra.gmra.mrb[28].mxu1 %v10590_v3  ;;  %v5475_v53 = vld [vmem:[#allocation14 + $0x748] sm:$0xff]  ;;  %v8745_v57 = vcombine.low %v5467_v45, %v5471_v46 }
 0x743   :  { %6869 = vmatpush1.bf16.msra.mxu0 %v8647_v34  ;;  %6951 = vmatpush1.bf16.msra.mxu1 %v8649_v36  ;;  %v5414_v34 = vld [vmem:[#allocation14 + $0x560] sm:$0xff]  ;;  %v5411_v36 = vld [vmem:[#allocation14 + $0x548] sm:$0xff] }
 0x744   :  { %6900 = vmatprep.mubr.bf16.mxu0 %v10594_v9  ;;  %6982 = vmatprep.mubr.bf16.mxu1 %v10594_v9  ;;  %v8688_v39 = vcombine.high %v5410_v29, %v5414_v34  ;;  %v8690_v42 = vcombine.high %v5411_v36, %v5415_v12  ;;  %v8687_v49 = vcombine.low %v5410_v29, %v5414_v34  ;;  %v5459_v29 = vld [vmem:[#allocation14 + $0x6c8] sm:$0xff] }
 0x745   :  { %6870 = vmatprep.subr.bf16.mxu0 %v8656_v5  ;;  %6952 = vmatprep.subr.bf16.mxu1 %v8658_v6  ;;  %v8689_v51 = vcombine.low %v5411_v36, %v5415_v12  ;;  %v5438_v5 = vld [vmem:[#allocation14 + $0x620] sm:$0xff]  ;;  %v5435_v6 = vld [vmem:[#allocation14 + $0x608] sm:$0xff]  ;;  %v8729_v12 = vcombine.low %v5451_v43, %v5455_v25 }
 0x746   :  { %v8711_v20 = vcombine.low %v5434_v4, %v5438_v5  ;;  %v8713_v22 = vcombine.low %v5435_v6, %v5439_v7  ;;  %v5463_v34 = vld [vmem:[#allocation14 + $0x6e8] sm:$0xff] }
 0x747   :  { %6871 = vmatpush1.bf16.msra.mxu0 %v8655_v11  ;;  %6953 = vmatpush1.bf16.msra.mxu1 %v8657_v15  ;;  %v8712_v11 = vcombine.high %v5434_v4, %v5438_v5  ;;  %v8714_v15 = vcombine.high %v5435_v6, %v5439_v7  ;;  %v8737_v48 = vcombine.low %v5459_v29, %v5463_v34  ;;  %v5479_v54 = vld [vmem:[#allocation14 + $0x768] sm:$0xff] }
 0x748   :  { %6872 = vmatprep.subr.bf16.mxu0 %v8664_v16  ;;  %6954 = vmatprep.subr.bf16.mxu1 %v8666_v17  ;;  %v5442_v16 = vld [vmem:[#allocation14 + $0x640] sm:$0xff]  ;;  %v5483_v4 = vld [vmem:[#allocation14 + $0x788] sm:$0xff]  ;;  %v8753_v7 = vcombine.low %v5475_v53, %v5479_v54 }
 0x749   :  { %v5446_v17 = vld [vmem:[#allocation14 + $0x660] sm:$0xff]  ;;  %v5487_v5 = vld [vmem:[#allocation14 + $0x7a8] sm:$0xff] }
 0x74a   :  { %v8719_v26 = vcombine.low %v5442_v16, %v5446_v17 }
 0x74b   :  { %6873 = vmatpush1.bf16.msra.mxu0 %v8663_v63  ;;  %6955 = vmatpush1.bf16.msra.mxu1 %v8665_v23  ;;  %v8720_v63 = vcombine.high %v5442_v16, %v5446_v17  ;;  %v8722_v23 = vcombine.high %v5443_v19, %v5447_v38  ;;  %v5494_v16 = vld [vmem:[#allocation14 + $0x7e0] sm:$0xff]  ;;  %v5491_v17 = vld [vmem:[#allocation14 + $0x7c8] sm:$0xff] }
 0x74c   :  { %6874 = vmatprep.subr.bf16.mxu0 %v8672_v24  ;;  %6956 = vmatprep.subr.bf16.mxu1 %v8674_v2  ;;  %v5450_v24 = vld [vmem:[#allocation14 + $0x680] sm:$0xff]  ;;  %v5495_v19 = vld [vmem:[#allocation14 + $0x7e8] sm:$0xff] }
 0x74d   :  { %v5454_v2 = vld [vmem:[#allocation14 + $0x6a0] sm:$0xff] }
 0x74e   :  { %v8727_v36 = vcombine.low %v5450_v24, %v5454_v2 }
 0x74f   :  { %6875 = vmatpush1.bf16.msra.mxu0 %v8671_v27  ;;  %6957 = vmatpush1.bf16.msra.mxu1 %v8673_v28  ;;  %v8728_v27 = vcombine.high %v5450_v24, %v5454_v2  ;;  %v8730_v28 = vcombine.high %v5451_v43, %v5455_v25  ;;  %v5244_v24 = vld [vmem:[#allocation14 + $0x10] sm:$0xff]  ;;  %v5245_v2 = vld [vmem:[#allocation14 + $0x18] sm:$0xff] }
 0x750   :  { %6876 = vmatprep.subr.bf16.mxu0 %v8680_v31  ;;  %6958 = vmatprep.subr.bf16.mxu1 %v8682_v32  ;;  %v5458_v31 = vld [vmem:[#allocation14 + $0x6c0] sm:$0xff]  ;;  %v5249_v43 = vld [vmem:[#allocation14 + $0x38] sm:$0xff] }
 0x751   :  { %v5462_v32 = vld [vmem:[#allocation14 + $0x6e0] sm:$0xff] }
 0x752   :  { %v8735_v47 = vcombine.low %v5458_v31, %v5462_v32 }
 0x753   :  { %6877 = vmatpush1.bf16.msra.mxu0 %v8679_v40  ;;  %6959 = vmatpush1.bf16.msra.mxu1 %v8681_v41  ;;  %v8736_v40 = vcombine.high %v5458_v31, %v5462_v32  ;;  %v8738_v41 = vcombine.high %v5459_v29, %v5463_v34  ;;  %v5252_v31 = vld [vmem:[#allocation14 + $0x50] sm:$0xff]  ;;  %v5257_v29 = vld [vmem:[#allocation14 + $0x78] sm:$0xff] }
 0x754   :  { %6878 = vmatprep.subr.bf16.mxu0 %v8688_v39  ;;  %6960 = vmatprep.subr.bf16.mxu1 %v8690_v42  ;;  %v5466_v39 = vld [vmem:[#allocation14 + $0x700] sm:$0xff]  ;;  %v5256_v32 = vld [vmem:[#allocation14 + $0x70] sm:$0xff] }
 0x755   :  { %v5470_v42 = vld [vmem:[#allocation14 + $0x720] sm:$0xff] }
 0x756   :  { %v8743_v56 = vcombine.low %v5466_v39, %v5470_v42 }
 0x757   :  { %6879 = vmatpush1.bf16.msra.mxu0 %v8687_v49  ;;  %6961 = vmatpush1.bf16.msra.mxu1 %v8689_v51  ;;  %v8744_v49 = vcombine.high %v5466_v39, %v5470_v42  ;;  %v8746_v51 = vcombine.high %v5467_v45, %v5471_v46  ;;  %v5260_v39 = vld [vmem:[#allocation14 + $0x90] sm:$0xff]  ;;  %v5261_v45 = vld [vmem:[#allocation14 + $0x98] sm:$0xff] }
 0x758   :  { %6880 = vmatprep.subr.bf16.mxu0 %v8696_v0  ;;  %6962 = vmatprep.subr.bf16.mxu1 %v8698_v52  ;;  %v5474_v0 = vld [vmem:[#allocation14 + $0x740] sm:$0xff]  ;;  %v5264_v42 = vld [vmem:[#allocation14 + $0xb0] sm:$0xff]  ;;  %v5265_v46 = vld [vmem:[#allocation14 + $0xb8] sm:$0xff] }
 0x759   :  { %v5478_v52 = vld [vmem:[#allocation14 + $0x760] sm:$0xff] }
 0x75a   :  { %v8751_v6 = vcombine.low %v5474_v0, %v5478_v52 }
 0x75b   :  { %6881 = vmatpush1.bf16.msra.mxu0 %v8695_v58  ;;  %6963 = vmatpush1.bf16.msra.mxu1 %v8697_v60  ;;  %v8752_v58 = vcombine.high %v5474_v0, %v5478_v52  ;;  %v8754_v60 = vcombine.high %v5475_v53, %v5479_v54  ;;  %v5268_v0 = vld [vmem:[#allocation14 + $0xd0] sm:$0xff]  ;;  %v5269_v53 = vld [vmem:[#allocation14 + $0xd8] sm:$0xff] }
 0x75c   :  { %6882 = vmatprep.subr.bf16.mxu0 %v8704_v61  ;;  %6964 = vmatprep.subr.bf16.mxu1 %v8706_v62  ;;  %v5482_v61 = vld [vmem:[#allocation14 + $0x780] sm:$0xff]  ;;  %v5272_v52 = vld [vmem:[#allocation14 + $0xf0] sm:$0xff]  ;;  %v5273_v54 = vld [vmem:[#allocation14 + $0xf8] sm:$0xff] }
 0x75d   :  { %v5486_v62 = vld [vmem:[#allocation14 + $0x7a0] sm:$0xff] }
 0x75e   :  { %v8759_v38 = vcombine.low %v5482_v61, %v5486_v62 }
 0x75f   :  { %6883 = vmatpush1.bf16.msra.mxu0 %v8703_v8  ;;  %6965 = vmatpush1.bf16.msra.mxu1 %v8705_v33  ;;  %v4425_v8 = vrot.slane %v10578_v37, %v10517_v30  ;;  %v8760_v33 = vcombine.high %v5482_v61, %v5486_v62  ;;  %v5248_v37 = vld [vmem:[#allocation14 + $0x30] sm:$0xff] }
 0x760   :  { %6884 = vmatprep.subr.bf16.mxu0 %v8712_v11  ;;  %6966 = vmatprep.subr.bf16.mxu1 %v8714_v15  ;;  %v8762_v11 = vcombine.high %v5483_v4, %v5487_v5  ;;  %v5490_v15 = vld [vmem:[#allocation14 + $0x7c0] sm:$0xff]  ;;  %v8523_v34 = vcombine.low %v5244_v24, %v5248_v37  ;;  %v5276_v61 = vld [vmem:[#allocation14 + $0x110] sm:$0xff] }
 0x761   :  { %v8767_v25 = vcombine.low %v5490_v15, %v5494_v16  ;;  %v5280_v62 = vld [vmem:[#allocation14 + $0x130] sm:$0xff] }
 0x763   :  { %6885 = vmatpush1.bf16.msra.mxu0 %v8711_v20  ;;  %6967 = vmatpush1.bf16.msra.mxu1 %v8713_v22  ;;  %v8761_v20 = vcombine.low %v5483_v4, %v5487_v5  ;;  %v8981_v22 = vadd.f32 %v10586_v44, %v4425_v8  ;;  %v5253_v44 = vld [vmem:[#allocation14 + $0x58] sm:$0xff]  ;;  %v8547_v5 = vcombine.low %v5268_v0, %v5272_v52 }
 0x764   :  { %6886 = vmatprep.subr.bf16.mxu0 %v8720_v63  ;;  %6968 = vmatprep.subr.bf16.mxu1 %v8722_v23  ;;  %v8768_v63 = vcombine.high %v5490_v15, %v5494_v16  ;;  %v8770_v23 = vcombine.high %v5491_v17, %v5495_v19  ;;  %v5281_v4 = vld [vmem:[#allocation14 + $0x138] sm:$0xff] }
 0x765   :  { %v5285_v15 = vld [vmem:[#allocation14 + $0x158] sm:$0xff] }
 0x766   :  { %v5289_v16 = vld [vmem:[#allocation14 + $0x178] sm:$0xff] }
 0x767   :  { %6887 = vmatpush1.bf16.msra.mxu0 %v8719_v26  ;;  %6969 = vmatpush1.bf16.msra.mxu1 %v8721_v50  ;;  %v8769_v26 = vcombine.low %v5491_v17, %v5495_v19  ;;  %v5240_v50 = vmax.f32 %v8981_v22, 0.0  ;;  %v8555_v17 = vcombine.low %v5276_v61, %v5280_v62  ;;  %v5292_v22 = vld [vmem:[#allocation14 + $0x190] sm:$0xff] }
 0x768   :  { %6888 = vmatprep.subr.bf16.mxu0 %v8728_v27  ;;  %6970 = vmatprep.subr.bf16.mxu1 %v8730_v28  ;;  %v8524_v27 = vcombine.high %v5244_v24, %v5248_v37  ;;  %v8526_v28 = vcombine.high %v5245_v2, %v5249_v43  ;;  %v5297_v24 = vld [vmem:[#allocation14 + $0x1b8] sm:$0xff] }
 0x76b   :  { %6889 = vmatpush1.bf16.msra.mxu0 %v8727_v36  ;;  %6971 = vmatpush1.bf16.msra.mxu1 %v8729_v12  ;;  %v10603_v36 = vpack.c.bf16 %v5240_v50, %v5240_v50  ;;  %v8525_v12 = vcombine.low %v5245_v2, %v5249_v43  ;;  %v8565_v2 = vcombine.low %v5285_v15, %v5289_v16  ;;  %v5304_v50 = vld [vmem:[#allocation14 + $0x1f0] sm:$0xff] }
 0x76c   :  { %6890 = vmatprep.subr.bf16.mxu0 %v8736_v40  ;;  %6972 = vmatprep.subr.bf16.mxu1 %v8738_v41  ;;  %v8532_v40 = vcombine.high %v5252_v31, %v5256_v32  ;;  %v8534_v41 = vcombine.high %v5253_v44, %v5257_v29 }
 0x76f   :  { %6891 = vmatpush1.bf16.msra.mxu0 %v8735_v47  ;;  %6973 = vmatpush1.bf16.msra.mxu1 %v8737_v48  ;;  %v8531_v47 = vcombine.low %v5252_v31, %v5256_v32  ;;  %v8533_v48 = vcombine.low %v5253_v44, %v5257_v29 }
 0x770   :  { %6892 = vmatprep.subr.bf16.mxu0 %v8744_v49  ;;  %6974 = vmatprep.subr.bf16.mxu1 %v8746_v51  ;;  %v8540_v49 = vcombine.high %v5260_v39, %v5264_v42  ;;  %v8542_v51 = vcombine.high %v5261_v45, %v5265_v46 }
 0x773   :  { %6893 = vmatpush1.bf16.msra.mxu0 %v8743_v56  ;;  %6975 = vmatpush1.bf16.msra.mxu1 %v8745_v57  ;;  %v8539_v56 = vcombine.low %v5260_v39, %v5264_v42  ;;  %v8541_v57 = vcombine.low %v5261_v45, %v5265_v46 }
 0x774   :  { %6894 = vmatprep.subr.bf16.mxu0 %v8752_v58  ;;  %6976 = vmatprep.subr.bf16.mxu1 %v8754_v60  ;;  %v8548_v58 = vcombine.high %v5268_v0, %v5272_v52  ;;  %v8550_v60 = vcombine.high %v5269_v53, %v5273_v54 }
 0x777   :  { %6895 = vmatpush1.bf16.msra.mxu0 %v8751_v6  ;;  %6977 = vmatpush1.bf16.msra.mxu1 %v8753_v7  ;;  %v8549_v6 = vcombine.low %v5269_v53, %v5273_v54  ;;  %v8556_v7 = vcombine.high %v5276_v61, %v5280_v62 }
 0x778   :  { %6896 = vmatprep.subr.bf16.mxu0 %v8760_v33  ;;  %6978 = vmatprep.subr.bf16.mxu1 %v8762_v11  ;;  %v5284_v33 = vld [vmem:[#allocation14 + $0x150] sm:$0xff] }
 0x779   :  { %v5288_v11 = vld [vmem:[#allocation14 + $0x170] sm:$0xff] }
 0x77a   :  { %v8563_v37 = vcombine.low %v5284_v33, %v5288_v11 }
 0x77b   :  { %6897 = vmatpush1.bf16.msra.mxu0 %v8759_v38  ;;  %6979 = vmatpush1.bf16.msra.mxu1 %v8761_v20  ;;  %v8564_v38 = vcombine.high %v5284_v33, %v5288_v11  ;;  %v8566_v20 = vcombine.high %v5285_v15, %v5289_v16 }
 0x77c   :  { %6898 = vmatprep.subr.bf16.mxu0 %v8768_v63  ;;  %6980 = vmatprep.subr.bf16.mxu1 %v8770_v23  ;;  %v5296_v63 = vld [vmem:[#allocation14 + $0x1b0] sm:$0xff]  ;;  %v5293_v23 = vld [vmem:[#allocation14 + $0x198] sm:$0xff] }
 0x77d   :  { %v8572_v43 = vcombine.high %v5292_v22, %v5296_v63  ;;  %v8571_v31 = vcombine.low %v5292_v22, %v5296_v63  ;;  %v8573_v32 = vcombine.low %v5293_v23, %v5297_v24 }
 0x77f   :  { %6899 = vmatpush1.bf16.msra.mxu0 %v8767_v25  ;;  %6981 = vmatpush1.bf16.msra.mxu1 %v8769_v26  ;;  %v8574_v25 = vcombine.high %v5293_v23, %v5297_v24  ;;  %v5300_v26 = vld [vmem:[#allocation14 + $0x1d0] sm:$0xff] }
 0x780   :  { %6991 = vmatprep.subr.bf16.mxu0 %v8524_v27  ;;  %7073 = vmatprep.subr.bf16.mxu1 %v8526_v28  ;;  %v5301_v27 = vld [vmem:[#allocation14 + $0x1d8] sm:$0xff]  ;;  %v8580_v44 = vcombine.high %v5300_v26, %v5304_v50  ;;  %v8579_v39 = vcombine.low %v5300_v26, %v5304_v50 }
 0x781   :  { %v5305_v28 = vld [vmem:[#allocation14 + $0x1f8] sm:$0xff] }
 0x782   :  { %6901 = vmatmul.mubr.bf16.vlgmr.msra.gmra.mrb[28].mxu0 %v10603_v36  ;;  %6983 = vmatmul.mubr.bf16.vlgmr.msra.gmra.mrb[28].mxu1 %v10603_v36  ;;  %v8582_v29 = vcombine.high %v5301_v27, %v5305_v28  ;;  %v8581_v42 = vcombine.low %v5301_v27, %v5305_v28 }
 0x783   :  { %6992 = vmatpush1.bf16.msra.mxu0 %v8523_v34  ;;  %7023 = vmatprep.mubr.bf16.mxu0 %v10588_v1  ;;  %v5308_v34 = vld [vmem:[#allocation14 + $0x210] sm:$0xff] }
 0x784   :  { %7074 = vmatpush1.bf16.msra.mxu1 %v8525_v12  ;;  %7105 = vmatprep.mubr.bf16.mxu1 %v10588_v1  ;;  %v5277_v1 = vld [vmem:[#allocation14 + $0x118] sm:$0xff]  ;;  %v5312_v12 = vld [vmem:[#allocation14 + $0x230] sm:$0xff] }
 0x785   :  { %6993 = vmatprep.subr.bf16.mxu0 %v8532_v40  ;;  %7075 = vmatprep.subr.bf16.mxu1 %v8534_v41  ;;  %v8558_v8 = vcombine.high %v5277_v1, %v5281_v4  ;;  %v8557_v19 = vcombine.low %v5277_v1, %v5281_v4  ;;  %v5309_v40 = vld [vmem:[#allocation14 + $0x218] sm:$0xff]  ;;  %v8588_v45 = vcombine.high %v5308_v34, %v5312_v12 }
 0x786   :  { %v5313_v41 = vld [vmem:[#allocation14 + $0x238] sm:$0xff]  ;;  %v8587_v0 = vcombine.low %v5308_v34, %v5312_v12 }
 0x787   :  { %6994 = vmatpush1.bf16.msra.mxu0 %v8531_v47  ;;  %v8590_v46 = vcombine.high %v5309_v40, %v5313_v41  ;;  %v5316_v47 = vld [vmem:[#allocation14 + $0x250] sm:$0xff]  ;;  %v8589_v52 = vcombine.low %v5309_v40, %v5313_v41 }
 0x788   :  { %7076 = vmatpush1.bf16.msra.mxu1 %v8533_v48  ;;  %6995 = vmatprep.subr.bf16.mxu0 %v8540_v49  ;;  %v5320_v48 = vld [vmem:[#allocation14 + $0x270] sm:$0xff]  ;;  %v5317_v49 = vld [vmem:[#allocation14 + $0x258] sm:$0xff] }
 0x789   :  { %7077 = vmatprep.subr.bf16.mxu1 %v8542_v51  ;;  %v5321_v51 = vld [vmem:[#allocation14 + $0x278] sm:$0xff]  ;;  %v8596_v53 = vcombine.high %v5316_v47, %v5320_v48  ;;  %v8595_v61 = vcombine.low %v5316_v47, %v5320_v48 }
 0x78a   :  { %v8598_v54 = vcombine.high %v5317_v49, %v5321_v51  ;;  %v8597_v62 = vcombine.low %v5317_v49, %v5321_v51 }
 0x78b   :  { %6996 = vmatpush1.bf16.msra.mxu0 %v8539_v56  ;;  %v5324_v56 = vld [vmem:[#allocation14 + $0x290] sm:$0xff] }
 0x78c   :  { %7078 = vmatpush1.bf16.msra.mxu1 %v8541_v57  ;;  %6997 = vmatprep.subr.bf16.mxu0 %v8548_v58  ;;  %v5328_v57 = vld [vmem:[#allocation14 + $0x2b0] sm:$0xff]  ;;  %v5325_v58 = vld [vmem:[#allocation14 + $0x298] sm:$0xff] }
 0x78d   :  { %7079 = vmatprep.subr.bf16.mxu1 %v8550_v60  ;;  %v5329_v60 = vld [vmem:[#allocation14 + $0x2b8] sm:$0xff]  ;;  %v8604_v1 = vcombine.high %v5324_v56, %v5328_v57  ;;  %v8603_v33 = vcombine.low %v5324_v56, %v5328_v57 }
 0x78e   :  { %v8606_v4 = vcombine.high %v5325_v58, %v5329_v60  ;;  %v8605_v11 = vcombine.low %v5325_v58, %v5329_v60 }
 0x78f   :  { %6998 = vmatpush1.bf16.msra.mxu0 %v8547_v5  ;;  %v5332_v5 = vld [vmem:[#allocation14 + $0x2d0] sm:$0xff] }
 0x790   :  { %7080 = vmatpush1.bf16.msra.mxu1 %v8549_v6  ;;  %6999 = vmatprep.subr.bf16.mxu0 %v8556_v7  ;;  %v5336_v6 = vld [vmem:[#allocation14 + $0x2f0] sm:$0xff]  ;;  %v5333_v7 = vld [vmem:[#allocation14 + $0x2d8] sm:$0xff] }
 0x791   :  { %7081 = vmatprep.subr.bf16.mxu1 %v8558_v8  ;;  %v5337_v8 = vld [vmem:[#allocation14 + $0x2f8] sm:$0xff]  ;;  %v8612_v15 = vcombine.high %v5332_v5, %v5336_v6  ;;  %v8611_v22 = vcombine.low %v5332_v5, %v5336_v6 }
 0x792   :  { %v8614_v16 = vcombine.high %v5333_v7, %v5337_v8  ;;  %v8613_v63 = vcombine.low %v5333_v7, %v5337_v8  ;;  %v5385_v5 = vld [vmem:[#allocation14 + $0x478] sm:$0xff]  ;;  %v5388_v8 = vld [vmem:[#allocation14 + $0x490] sm:$0xff] }
 0x793   :  { %7000 = vmatpush1.bf16.msra.mxu0 %v8555_v17  ;;  %v5340_v17 = vld [vmem:[#allocation14 + $0x310] sm:$0xff] }
 0x794   :  { %7082 = vmatpush1.bf16.msra.mxu1 %v8557_v19  ;;  %7001 = vmatprep.subr.bf16.mxu0 %v8564_v38  ;;  %v5344_v19 = vld [vmem:[#allocation14 + $0x330] sm:$0xff]  ;;  %v5341_v38 = vld [vmem:[#allocation14 + $0x318] sm:$0xff] }
 0x795   :  { %7083 = vmatprep.subr.bf16.mxu1 %v8566_v20  ;;  %v5345_v20 = vld [vmem:[#allocation14 + $0x338] sm:$0xff]  ;;  %v8620_v23 = vcombine.high %v5340_v17, %v5344_v19  ;;  %v8619_v26 = vcombine.low %v5340_v17, %v5344_v19 }
 0x796   :  { %v8622_v24 = vcombine.high %v5341_v38, %v5345_v20  ;;  %v8621_v50 = vcombine.low %v5341_v38, %v5345_v20 }
 0x797   :  { %7002 = vmatpush1.bf16.msra.mxu0 %v8563_v37  ;;  %v5348_v37 = vld [vmem:[#allocation14 + $0x350] sm:$0xff] }
 0x798   :  { %7084 = vmatpush1.bf16.msra.mxu1 %v8565_v2  ;;  %7003 = vmatprep.subr.bf16.mxu0 %v8572_v43  ;;  %v5352_v2 = vld [vmem:[#allocation14 + $0x370] sm:$0xff]  ;;  %v5349_v43 = vld [vmem:[#allocation14 + $0x358] sm:$0xff] }
 0x799   :  { %7085 = vmatprep.subr.bf16.mxu1 %v8574_v25  ;;  %v5353_v25 = vld [vmem:[#allocation14 + $0x378] sm:$0xff]  ;;  %v8628_v27 = vcombine.high %v5348_v37, %v5352_v2  ;;  %v8627_v34 = vcombine.low %v5348_v37, %v5352_v2 }
 0x79a   :  { %v8630_v28 = vcombine.high %v5349_v43, %v5353_v25  ;;  %v8629_v12 = vcombine.low %v5349_v43, %v5353_v25  ;;  %v5404_v25 = vld [vmem:[#allocation14 + $0x510] sm:$0xff] }
 0x79b   :  { %7004 = vmatpush1.bf16.msra.mxu0 %v8571_v31  ;;  %v5356_v31 = vld [vmem:[#allocation14 + $0x390] sm:$0xff] }
 0x79c   :  { %7086 = vmatpush1.bf16.msra.mxu1 %v8573_v32  ;;  %7005 = vmatprep.subr.bf16.mxu0 %v8580_v44  ;;  %v5360_v32 = vld [vmem:[#allocation14 + $0x3b0] sm:$0xff]  ;;  %v5357_v44 = vld [vmem:[#allocation14 + $0x398] sm:$0xff] }
 0x79d   :  { %7087 = vmatprep.subr.bf16.mxu1 %v8582_v29  ;;  %v5361_v29 = vld [vmem:[#allocation14 + $0x3b8] sm:$0xff]  ;;  %v8636_v40 = vcombine.high %v5356_v31, %v5360_v32  ;;  %v8635_v47 = vcombine.low %v5356_v31, %v5360_v32 }
 0x79e   :  { %v8638_v41 = vcombine.high %v5357_v44, %v5361_v29  ;;  %v8637_v48 = vcombine.low %v5357_v44, %v5361_v29  ;;  %v5412_v44 = vld [vmem:[#allocation14 + $0x550] sm:$0xff] }
 0x79f   :  { %7006 = vmatpush1.bf16.msra.mxu0 %v8579_v39  ;;  %v5364_v39 = vld [vmem:[#allocation14 + $0x3d0] sm:$0xff] }
 0x7a0   :  { %7088 = vmatpush1.bf16.msra.mxu1 %v8581_v42  ;;  %7007 = vmatprep.subr.bf16.mxu0 %v8588_v45  ;;  %v5368_v42 = vld [vmem:[#allocation14 + $0x3f0] sm:$0xff]  ;;  %v5365_v45 = vld [vmem:[#allocation14 + $0x3d8] sm:$0xff] }
 0x7a1   :  { %7089 = vmatprep.subr.bf16.mxu1 %v8590_v46  ;;  %v5369_v46 = vld [vmem:[#allocation14 + $0x3f8] sm:$0xff]  ;;  %v8644_v49 = vcombine.high %v5364_v39, %v5368_v42  ;;  %v8643_v56 = vcombine.low %v5364_v39, %v5368_v42  ;;  %v5416_v29 = vld [vmem:[#allocation14 + $0x570] sm:$0xff] }
 0x7a2   :  { %v8646_v51 = vcombine.high %v5365_v45, %v5369_v46  ;;  %v8645_v57 = vcombine.low %v5365_v45, %v5369_v46  ;;  %v8692_v39 = vcombine.high %v5412_v44, %v5416_v29  ;;  %v5420_v45 = vld [vmem:[#allocation14 + $0x590] sm:$0xff] }
 0x7a3   :  { %7008 = vmatpush1.bf16.msra.mxu0 %v8587_v0  ;;  %v5372_v0 = vld [vmem:[#allocation14 + $0x410] sm:$0xff] }
 0x7a4   :  { %7090 = vmatpush1.bf16.msra.mxu1 %v8589_v52  ;;  %7009 = vmatprep.subr.bf16.mxu0 %v8596_v53  ;;  %v5376_v52 = vld [vmem:[#allocation14 + $0x430] sm:$0xff]  ;;  %v5373_v53 = vld [vmem:[#allocation14 + $0x418] sm:$0xff] }
 0x7a5   :  { %7091 = vmatprep.subr.bf16.mxu1 %v8598_v54  ;;  %v5377_v54 = vld [vmem:[#allocation14 + $0x438] sm:$0xff]  ;;  %v8652_v58 = vcombine.high %v5372_v0, %v5376_v52  ;;  %v5424_v46 = vld [vmem:[#allocation14 + $0x5b0] sm:$0xff] }
 0x7a6   :  { %v8654_v60 = vcombine.high %v5373_v53, %v5377_v54  ;;  %v8653_v6 = vcombine.low %v5373_v53, %v5377_v54  ;;  %v5428_v53 = vld [vmem:[#allocation14 + $0x5d0] sm:$0xff] }
 0x7a7   :  { %7010 = vmatpush1.bf16.msra.mxu0 %v8595_v61  ;;  %v5380_v61 = vld [vmem:[#allocation14 + $0x450] sm:$0xff] }
 0x7a8   :  { %7092 = vmatpush1.bf16.msra.mxu1 %v8597_v62  ;;  %7011 = vmatprep.subr.bf16.mxu0 %v8604_v1  ;;  %v5384_v62 = vld [vmem:[#allocation14 + $0x470] sm:$0xff]  ;;  %v8651_v1 = vcombine.low %v5372_v0, %v5376_v52  ;;  %v8700_v0 = vcombine.high %v5420_v45, %v5424_v46 }
 0x7a9   :  { %7093 = vmatprep.subr.bf16.mxu1 %v8606_v4  ;;  %v5381_v4 = vld [vmem:[#allocation14 + $0x458] sm:$0xff]  ;;  %v8660_v7 = vcombine.high %v5380_v61, %v5384_v62  ;;  %v8659_v17 = vcombine.low %v5380_v61, %v5384_v62  ;;  %v5432_v54 = vld [vmem:[#allocation14 + $0x5f0] sm:$0xff] }
 0x7aa   :  { %v8661_v19 = vcombine.low %v5381_v4, %v5385_v5  ;;  %v8708_v61 = vcombine.high %v5428_v53, %v5432_v54 }
 0x7ab   :  { %7012 = vmatpush1.bf16.msra.mxu0 %v8603_v33  ;;  %v5392_v33 = vld [vmem:[#allocation14 + $0x4b0] sm:$0xff] }
 0x7ac   :  { %7094 = vmatpush1.bf16.msra.mxu1 %v8605_v11  ;;  %7013 = vmatprep.subr.bf16.mxu0 %v8612_v15  ;;  %v8662_v11 = vcombine.high %v5381_v4, %v5385_v5  ;;  %v5389_v15 = vld [vmem:[#allocation14 + $0x498] sm:$0xff]  ;;  %v8668_v38 = vcombine.high %v5388_v8, %v5392_v33  ;;  %v8667_v37 = vcombine.low %v5388_v8, %v5392_v33  ;;  %v5440_v4 = vld [vmem:[#allocation14 + $0x630] sm:$0xff] }
 0x7ad   :  { %7095 = vmatprep.subr.bf16.mxu1 %v8614_v16  ;;  %v5393_v16 = vld [vmem:[#allocation14 + $0x4b8] sm:$0xff] }
 0x7ae   :  { %v8670_v20 = vcombine.high %v5389_v15, %v5393_v16  ;;  %v5437_v5 = vld [vmem:[#allocation14 + $0x618] sm:$0xff] }
 0x7af   :  { %7014 = vmatpush1.bf16.msra.mxu0 %v8611_v22  ;;  %v5396_v22 = vld [vmem:[#allocation14 + $0x4d0] sm:$0xff] }
 0x7b0   :  { %7096 = vmatpush1.bf16.msra.mxu1 %v8613_v63  ;;  %7015 = vmatprep.subr.bf16.mxu0 %v8620_v23  ;;  %v5400_v63 = vld [vmem:[#allocation14 + $0x4f0] sm:$0xff]  ;;  %v5397_v23 = vld [vmem:[#allocation14 + $0x4d8] sm:$0xff] }
 0x7b1   :  { %7097 = vmatprep.subr.bf16.mxu1 %v8622_v24  ;;  %v5401_v24 = vld [vmem:[#allocation14 + $0x4f8] sm:$0xff]  ;;  %v8676_v2 = vcombine.high %v5396_v22, %v5400_v63 }
 0x7b2   :  { %v8678_v43 = vcombine.high %v5397_v23, %v5401_v24 }
 0x7b3   :  { %7016 = vmatpush1.bf16.msra.mxu0 %v8619_v26  ;;  %v5408_v26 = vld [vmem:[#allocation14 + $0x530] sm:$0xff] }
 0x7b4   :  { %7098 = vmatpush1.bf16.msra.mxu1 %v8621_v50  ;;  %7017 = vmatprep.subr.bf16.mxu0 %v8628_v27  ;;  %v5405_v50 = vld [vmem:[#allocation14 + $0x518] sm:$0xff]  ;;  %v8684_v31 = vcombine.high %v5404_v25, %v5408_v26 }
 0x7b5   :  { %7099 = vmatprep.subr.bf16.mxu1 %v8630_v28  ;;  %v5409_v27 = vld [vmem:[#allocation14 + $0x538] sm:$0xff]  ;;  %v8677_v28 = vcombine.low %v5397_v23, %v5401_v24  ;;  %v5452_v23 = vld [vmem:[#allocation14 + $0x690] sm:$0xff] }
 0x7b6   :  { %v8686_v32 = vcombine.high %v5405_v50, %v5409_v27  ;;  %v5456_v24 = vld [vmem:[#allocation14 + $0x6b0] sm:$0xff] }
 0x7b7   :  { %7018 = vmatpush1.bf16.msra.mxu0 %v8627_v34  ;;  %v5413_v34 = vld [vmem:[#allocation14 + $0x558] sm:$0xff] }
 0x7b8   :  { %7100 = vmatpush1.bf16.msra.mxu1 %v8629_v12  ;;  %7019 = vmatprep.subr.bf16.mxu0 %v8636_v40  ;;  %v5417_v12 = vld [vmem:[#allocation14 + $0x578] sm:$0xff]  ;;  %v8683_v40 = vcombine.low %v5404_v25, %v5408_v26  ;;  %v8732_v25 = vcombine.high %v5452_v23, %v5456_v24 }
 0x7b9   :  { %7101 = vmatprep.subr.bf16.mxu1 %v8638_v41  ;;  %v8685_v41 = vcombine.low %v5405_v50, %v5409_v27  ;;  %v8694_v42 = vcombine.high %v5413_v34, %v5417_v12  ;;  %v5460_v50 = vld [vmem:[#allocation14 + $0x6d0] sm:$0xff] }
 0x7ba   :  { %v5464_v27 = vld [vmem:[#allocation14 + $0x6f0] sm:$0xff] }
 0x7bb   :  { %7020 = vmatpush1.bf16.msra.mxu0 %v8635_v47  ;;  %v5421_v47 = vld [vmem:[#allocation14 + $0x598] sm:$0xff] }
 0x7bc   :  { %7102 = vmatpush1.bf16.msra.mxu1 %v8637_v48  ;;  %7021 = vmatprep.subr.bf16.mxu0 %v8644_v49  ;;  %v5425_v48 = vld [vmem:[#allocation14 + $0x5b8] sm:$0xff]  ;;  %v8691_v49 = vcombine.low %v5412_v44, %v5416_v29  ;;  %v8740_v44 = vcombine.high %v5460_v50, %v5464_v27 }
 0x7bd   :  { %7103 = vmatprep.subr.bf16.mxu1 %v8646_v51  ;;  %v8693_v51 = vcombine.low %v5413_v34, %v5417_v12  ;;  %v8702_v52 = vcombine.high %v5421_v47, %v5425_v48  ;;  %v5468_v34 = vld [vmem:[#allocation14 + $0x710] sm:$0xff] }
 0x7be   :  { %v5472_v12 = vld [vmem:[#allocation14 + $0x730] sm:$0xff] }
 0x7bf   :  { %7022 = vmatpush1.bf16.msra.mxu0 %v8643_v56  ;;  %v5429_v56 = vld [vmem:[#allocation14 + $0x5d8] sm:$0xff] }
 0x7c0   :  { %7104 = vmatpush1.bf16.msra.mxu1 %v8645_v57  ;;  %7032 = vmatprep.subr.bf16.mxu0 %v8652_v58  ;;  %v5433_v57 = vld [vmem:[#allocation14 + $0x5f8] sm:$0xff]  ;;  %v8699_v58 = vcombine.low %v5420_v45, %v5424_v46  ;;  %v8748_v45 = vcombine.high %v5468_v34, %v5472_v12 }
 0x7c1   :  { %7114 = vmatprep.subr.bf16.mxu1 %v8654_v60  ;;  %v8701_v60 = vcombine.low %v5421_v47, %v5425_v48  ;;  %v8710_v62 = vcombine.high %v5429_v56, %v5433_v57  ;;  %v8709_v8 = vcombine.low %v5429_v56, %v5433_v57  ;;  %v5476_v47 = vld [vmem:[#allocation14 + $0x750] sm:$0xff] }
 0x7c2   :  { %7024 = vmatmul.mubr.bf16.vlgmr.msra.gmra.mrb[32].mxu0 %v10590_v3  ;;  %v5480_v48 = vld [vmem:[#allocation14 + $0x770] sm:$0xff] }
 0x7c3   :  { %7106 = vmatmul.mubr.bf16.vlgmr.msra.gmra.mrb[32].mxu1 %v10590_v3  ;;  %7033 = vmatpush1.bf16.msra.mxu0 %v8651_v1  ;;  %v8669_v3 = vcombine.low %v5389_v15, %v5393_v16  ;;  %v5436_v1 = vld [vmem:[#allocation14 + $0x610] sm:$0xff] }
 0x7c4   :  { %7064 = vmatprep.mubr.bf16.mxu0 %v10594_v9  ;;  %7115 = vmatpush1.bf16.msra.mxu1 %v8653_v6  ;;  %v5441_v6 = vld [vmem:[#allocation14 + $0x638] sm:$0xff]  ;;  %v8716_v33 = vcombine.high %v5436_v1, %v5440_v4  ;;  %v5444_v15 = vld [vmem:[#allocation14 + $0x650] sm:$0xff] }
 0x7c5   :  { %7146 = vmatprep.mubr.bf16.mxu1 %v10594_v9  ;;  %7034 = vmatprep.subr.bf16.mxu0 %v8660_v7  ;;  %v8675_v9 = vcombine.low %v5396_v22, %v5400_v63  ;;  %v8707_v7 = vcombine.low %v5428_v53, %v5432_v54  ;;  %v5448_v16 = vld [vmem:[#allocation14 + $0x670] sm:$0xff]  ;;  %v8756_v53 = vcombine.high %v5476_v47, %v5480_v48 }
 0x7c6   :  { %7116 = vmatprep.subr.bf16.mxu1 %v8662_v11  ;;  %v8718_v11 = vcombine.high %v5437_v5, %v5441_v6  ;;  %v8724_v22 = vcombine.high %v5444_v15, %v5448_v16  ;;  %v5484_v56 = vld [vmem:[#allocation14 + $0x790] sm:$0xff] }
 0x7c7   :  { %7035 = vmatpush1.bf16.msra.mxu0 %v8659_v17  ;;  %v5445_v17 = vld [vmem:[#allocation14 + $0x658] sm:$0xff]  ;;  %v5488_v57 = vld [vmem:[#allocation14 + $0x7b0] sm:$0xff] }
 0x7c8   :  { %7117 = vmatpush1.bf16.msra.mxu1 %v8661_v19  ;;  %7036 = vmatprep.subr.bf16.mxu0 %v8668_v38  ;;  %v5449_v19 = vld [vmem:[#allocation14 + $0x678] sm:$0xff]  ;;  %v8715_v38 = vcombine.low %v5436_v1, %v5440_v4  ;;  %v8764_v1 = vcombine.high %v5484_v56, %v5488_v57 }
 0x7c9   :  { %7118 = vmatprep.subr.bf16.mxu1 %v8670_v20  ;;  %v8717_v20 = vcombine.low %v5437_v5, %v5441_v6  ;;  %v8726_v63 = vcombine.high %v5445_v17, %v5449_v19  ;;  %v5492_v5 = vld [vmem:[#allocation14 + $0x7d0] sm:$0xff] }
 0x7ca   :  { %v5496_v6 = vld [vmem:[#allocation14 + $0x7f0] sm:$0xff] }
 0x7cb   :  { %7037 = vmatpush1.bf16.msra.mxu0 %v8667_v37  ;;  %v5453_v37 = vld [vmem:[#allocation14 + $0x698] sm:$0xff] }
 0x7cc   :  { %7119 = vmatpush1.bf16.msra.mxu1 %v8669_v3  ;;  %7038 = vmatprep.subr.bf16.mxu0 %v8676_v2  ;;  %v5457_v3 = vld [vmem:[#allocation14 + $0x6b8] sm:$0xff]  ;;  %v8723_v2 = vcombine.low %v5444_v15, %v5448_v16  ;;  %v8772_v15 = vcombine.high %v5492_v5, %v5496_v6 }
 0x7cd   :  { %7120 = vmatprep.subr.bf16.mxu1 %v8678_v43  ;;  %v8725_v43 = vcombine.low %v5445_v17, %v5449_v19  ;;  %v8734_v26 = vcombine.high %v5453_v37, %v5457_v3  ;;  %v8771_v17 = vcombine.low %v5492_v5, %v5496_v6 }
 0x7cf   :  { %7039 = vmatpush1.bf16.msra.mxu0 %v8675_v9  ;;  %v5461_v9 = vld [vmem:[#allocation14 + $0x6d8] sm:$0xff] }
 0x7d0   :  { %7121 = vmatpush1.bf16.msra.mxu1 %v8677_v28  ;;  %7040 = vmatprep.subr.bf16.mxu0 %v8684_v31  ;;  %v5465_v28 = vld [vmem:[#allocation14 + $0x6f8] sm:$0xff]  ;;  %v8731_v31 = vcombine.low %v5452_v23, %v5456_v24  ;;  %v9918_v23 = vld [vmem:[#allocation16 + $0x48] sm:$0xff]  }
 0x7d1   :  { %7122 = vmatprep.subr.bf16.mxu1 %v8686_v32  ;;  %v8733_v32 = vcombine.low %v5453_v37, %v5457_v3  ;;  %v8742_v29 = vcombine.high %v5461_v9, %v5465_v28  ;;  %v9919_v24 = vld [vmem:[#allocation16 + $0xc8] sm:$0xff]  }
 0x7d2   :  { %v9920_v37 = vld [vmem:[#allocation16 + $0x8] sm:$0xff]  }
 0x7d3   :  { %7041 = vmatpush1.bf16.msra.mxu0 %v8683_v40  ;;  %v5469_v40 = vld [vmem:[#allocation14 + $0x718] sm:$0xff]  ;;  %v9921_v3 = vld [vmem:[#allocation16 + $0x88] sm:$0xff]  }
 0x7d4   :  { %7123 = vmatpush1.bf16.msra.mxu1 %v8685_v41  ;;  %7042 = vmatprep.subr.bf16.mxu0 %v8692_v39  ;;  %v5473_v41 = vld [vmem:[#allocation14 + $0x738] sm:$0xff]  ;;  %v8739_v39 = vcombine.low %v5460_v50, %v5464_v27 }
 0x7d5   :  { %7124 = vmatprep.subr.bf16.mxu1 %v8694_v42  ;;  %v8741_v42 = vcombine.low %v5461_v9, %v5465_v28  ;;  %v8750_v46 = vcombine.high %v5469_v40, %v5473_v41  ;;  %v9926_v50 = vld [vmem:[#allocation16 + $0x58] sm:$0xff]   ;;  %v9930_v28 = vld [vmem:[#allocation16 + $0x60] sm:$0xff]  }
 0x7d6   :  { %v9927_v27 = vld [vmem:[#allocation16 + $0xd8] sm:$0xff]  }
 0x7d7   :  { %7043 = vmatpush1.bf16.msra.mxu0 %v8691_v49  ;;  %v5477_v49 = vld [vmem:[#allocation14 + $0x758] sm:$0xff] }
 0x7d8   :  { %7125 = vmatpush1.bf16.msra.mxu1 %v8693_v51  ;;  %7044 = vmatprep.subr.bf16.mxu0 %v8700_v0  ;;  %v5481_v51 = vld [vmem:[#allocation14 + $0x778] sm:$0xff]  ;;  %v8747_v0 = vcombine.low %v5468_v34, %v5472_v12  ;;  %v9935_v34 = vld [vmem:[#allocation16 + $0xe8] sm:$0xff]  }
 0x7d9   :  { %7126 = vmatprep.subr.bf16.mxu1 %v8702_v52  ;;  %v8749_v52 = vcombine.low %v5469_v40, %v5473_v41  ;;  %v8758_v54 = vcombine.high %v5477_v49, %v5481_v51  ;;  %v9928_v9 = vld [vmem:[#allocation16 + $0x18] sm:$0xff]   ;;  %v9936_v12 = vld [vmem:[#allocation16 + $0x28] sm:$0xff]   ;;  %v9938_v41 = vld [vmem:[#allocation16 + $0x70] sm:$0xff]  }
 0x7da   :  { %v9937_v40 = vld [vmem:[#allocation16 + $0xa8] sm:$0xff]  }
 0x7db   :  { %7045 = vmatpush1.bf16.msra.mxu0 %v8699_v58  ;;  %v5485_v58 = vld [vmem:[#allocation14 + $0x798] sm:$0xff] }
 0x7dc   :  { %7127 = vmatpush1.bf16.msra.mxu1 %v8701_v60  ;;  %7046 = vmatprep.subr.bf16.mxu0 %v8708_v61  ;;  %v5489_v60 = vld [vmem:[#allocation14 + $0x7b8] sm:$0xff]  ;;  %v8755_v61 = vcombine.low %v5476_v47, %v5480_v48 }
 0x7dd   :  { %7128 = vmatprep.subr.bf16.mxu1 %v8710_v62  ;;  %v8757_v62 = vcombine.low %v5477_v49, %v5481_v51  ;;  %v8766_v4 = vcombine.high %v5485_v58, %v5489_v60  ;;  %v9943_v47 = vld [vmem:[#allocation16 + $0xf8] sm:$0xff]   ;;  %v9946_v51 = vld [vmem:[#allocation16 + $0x140] sm:$0xff]  }
 0x7de   :  { %v9944_v48 = vld [vmem:[#allocation16 + $0x38] sm:$0xff]  }
 0x7df   :  { %7047 = vmatpush1.bf16.msra.mxu0 %v8707_v7  ;;  %v5493_v7 = vld [vmem:[#allocation14 + $0x7d8] sm:$0xff] }
 0x7e0   :  { %7129 = vmatpush1.bf16.msra.mxu1 %v8709_v8  ;;  %7048 = vmatprep.subr.bf16.mxu0 %v8716_v33  ;;  %v5497_v8 = vld [vmem:[#allocation14 + $0x7f8] sm:$0xff]  ;;  %v8763_v33 = vcombine.low %v5484_v56, %v5488_v57 }
 0x7e1   :  { %7130 = vmatprep.subr.bf16.mxu1 %v8718_v11  ;;  %v8765_v11 = vcombine.low %v5485_v58, %v5489_v60  ;;  %v8774_v16 = vcombine.high %v5493_v7, %v5497_v8  ;;  %v8773_v19 = vcombine.low %v5493_v7, %v5497_v8  ;;  %v9945_v49 = vld [vmem:[#allocation16 + $0xb8] sm:$0xff]  }
 0x7e3   :  { %7049 = vmatpush1.bf16.msra.mxu0 %v8715_v38  ;;  %v9914_v38 = vld [vmem:[#allocation16 + $0x40] sm:$0xff]  }
 0x7e4   :  { %7131 = vmatpush1.bf16.msra.mxu1 %v8717_v20  ;;  %7050 = vmatprep.subr.bf16.mxu0 %v8724_v22  ;;  %v9915_v20 = vld [vmem:[#allocation16 + $0xc0] sm:$0xff]  }
 0x7e5   :  { %7132 = vmatprep.subr.bf16.mxu1 %v8726_v63  ;;  %v9916_v22 = vld [vmem:[#allocation16] sm:$0xff]  }
 0x7e6   :  { %v9917_v63 = vld [vmem:[#allocation16 + $0x80] sm:$0xff]  }
 0x7e7   :  { %7051 = vmatpush1.bf16.msra.mxu0 %v8723_v2  ;;  %v9922_v2 = vld [vmem:[#allocation16 + $0x50] sm:$0xff]  }
 0x7e8   :  { %7133 = vmatpush1.bf16.msra.mxu1 %v8725_v43  ;;  %7052 = vmatprep.subr.bf16.mxu0 %v8732_v25  ;;  %v9923_v43 = vld [vmem:[#allocation16 + $0xd0] sm:$0xff]  }
 0x7e9   :  { %7134 = vmatprep.subr.bf16.mxu1 %v8734_v26  ;;  %v9924_v25 = vld [vmem:[#allocation16 + $0x10] sm:$0xff]  }
 0x7ea   :  { %v9925_v26 = vld [vmem:[#allocation16 + $0x90] sm:$0xff]  }
 0x7eb   :  { %7053 = vmatpush1.bf16.msra.mxu0 %v8731_v31  ;;  %v9931_v31 = vld [vmem:[#allocation16 + $0xe0] sm:$0xff]  }
 0x7ec   :  { %7135 = vmatpush1.bf16.msra.mxu1 %v8733_v32  ;;  %7054 = vmatprep.subr.bf16.mxu0 %v8740_v44  ;;  %v9932_v32 = vld [vmem:[#allocation16 + $0x20] sm:$0xff]  }
 0x7ed   :  { %7136 = vmatprep.subr.bf16.mxu1 %v8742_v29  ;;  %v9933_v44 = vld [vmem:[#allocation16 + $0xa0] sm:$0xff]   ;;  %v9934_v29 = vld [vmem:[#allocation16 + $0x68] sm:$0xff]  }
 0x7ef   :  { %7055 = vmatpush1.bf16.msra.mxu0 %v8739_v39  ;;  %v9939_v39 = vld [vmem:[#allocation16 + $0xf0] sm:$0xff]  }
 0x7f0   :  { %7137 = vmatpush1.bf16.msra.mxu1 %v8741_v42  ;;  %7056 = vmatprep.subr.bf16.mxu0 %v8748_v45  ;;  %v9940_v42 = vld [vmem:[#allocation16 + $0x30] sm:$0xff]  }
 0x7f1   :  { %7138 = vmatprep.subr.bf16.mxu1 %v8750_v46  ;;  %v9941_v45 = vld [vmem:[#allocation16 + $0xb0] sm:$0xff]   ;;  %v9942_v46 = vld [vmem:[#allocation16 + $0x78] sm:$0xff]  }
 0x7f3   :  { %7057 = vmatpush1.bf16.msra.mxu0 %v8747_v0  ;;  %v9947_v0 = vld [vmem:[#allocation16 + $0x1c0] sm:$0xff]  }
 0x7f4   :  { %7139 = vmatpush1.bf16.msra.mxu1 %v8749_v52  ;;  %7058 = vmatprep.subr.bf16.mxu0 %v8756_v53  ;;  %v5503_v52 = vld [vmem:[#allocation17 + $0x6] ss:$8 sm:$0xf] }
 0x7f5   :  { %7140 = vmatprep.subr.bf16.mxu1 %v8758_v54  ;;  %v5504_v53 = vld [vmem:[#allocation17 + $0x6] ss:$8 sm:$0xf0] }
 0x7f6   :  { %v10615_v54 = vor.u32 %v5504_v53, %v5503_v52 }
 0x7f7   :  { %7059 = vmatpush1.bf16.msra.mxu0 %v8755_v61 }
 0x7f8   :  { %7141 = vmatpush1.bf16.msra.mxu1 %v8757_v62  ;;  %7060 = vmatprep.subr.bf16.mxu0 %v8764_v1  ;;  %v5510_v56 = vrot.slane %v10615_v54, %v10496_v13  ;;  %v5518_v57 = vrot.slane %v10615_v54, %v10517_v30  ;;  %v5514_v58 = vrot.slane %v10615_v54, %v10499_v14 }
 0x7f9   :  { %7142 = vmatprep.subr.bf16.mxu1 %v8766_v4  ;;  %v5522_v60 = vrot.slane %v10615_v54, %v10506_v18  ;;  %v9949_v18 = vld [vmem:[#allocation16 + $0x180] sm:$0xff]   ;;  %v5530_v52 = vrot.slane %v10615_v54, %v263_v35  ;;  %v5538_v53 = vrot.slane %v10615_v54, %v271_v59 }
 0x7fb   :  { %7061 = vmatpush1.bf16.msra.mxu0 %v8763_v33 }
 0x7fc   :  { %7143 = vmatpush1.bf16.msra.mxu1 %v8765_v11  ;;  %7062 = vmatprep.subr.bf16.mxu0 %v8772_v15 }
 0x7fd   :  { %7144 = vmatprep.subr.bf16.mxu1 %v8774_v16 }
 0x7ff   :  { %7063 = vmatpush1.bf16.msra.mxu0 %v8771_v17 }
 0x800   :  { %7145 = vmatpush1.bf16.msra.mxu1 %v8773_v19  ;;  %8883 = vmatprep.subr.bf16.mxu0 %v9914_v38 }
 0x801   :  { %8905 = vmatprep.subr.bf16.mxu1 %v9915_v20  ;;  %v9948_v20 = vld [vmem:[#allocation16 + $0x100] sm:$0xff]  }
 0x802   :  { %7065 = vmatmul.mubr.bf16.vlgmr.msra.gmra.mrb[32].mxu0 %v10603_v36 }
 0x803   :  { %7147 = vmatmul.mubr.bf16.vlgmr.msra.gmra.mrb[32].mxu1 %v10603_v36  ;;  %8884 = vmatpush3.bf16.msra.mxu0 %v9916_v22  ;;  %v9929_v36 = vld [vmem:[#allocation16 + $0x98] sm:$0xff]  }
 0x804   :  { %8906 = vmatpush3.bf16.msra.mxu1 %v9917_v63  ;;  %8885 = vmatprep.subr.bf16.mxu0 %v9918_v23  ;;  %v9950_v23 = vld [vmem:[#allocation16 + $0x148] sm:$0xff]  }
 0x805   :  { %8907 = vmatprep.subr.bf16.mxu1 %v9919_v24  ;;  %v9951_v24 = vld [vmem:[#allocation16 + $0x1c8] sm:$0xff]  }
 0x807   :  { %8886 = vmatpush3.bf16.msra.mxu0 %v9920_v37  ;;  %v9952_v37 = vld [vmem:[#allocation16 + $0x108] sm:$0xff]  }
 0x808   :  { %8908 = vmatpush3.bf16.msra.mxu1 %v9921_v3  ;;  %8887 = vmatprep.subr.bf16.mxu0 %v9922_v2  ;;  %v9953_v3 = vld [vmem:[#allocation16 + $0x188] sm:$0xff]   ;;  %v9954_v2 = vld [vmem:[#allocation16 + $0x150] sm:$0xff]  }
 0x809   :  { %8909 = vmatprep.subr.bf16.mxu1 %v9923_v43  ;;  %v9955_v43 = vld [vmem:[#allocation16 + $0x1d0] sm:$0xff]  }
 0x80b   :  { %8888 = vmatpush3.bf16.msra.mxu0 %v9924_v25  ;;  %v9956_v25 = vld [vmem:[#allocation16 + $0x110] sm:$0xff]  }
 0x80c   :  { %8910 = vmatpush3.bf16.msra.mxu1 %v9925_v26  ;;  %8889 = vmatprep.subr.bf16.mxu0 %v9926_v50  ;;  %v9957_v26 = vld [vmem:[#allocation16 + $0x190] sm:$0xff]   ;;  %v9958_v50 = vld [vmem:[#allocation16 + $0x158] sm:$0xff]  }
 0x80d   :  { %8911 = vmatprep.subr.bf16.mxu1 %v9927_v27  ;;  %v9959_v27 = vld [vmem:[#allocation16 + $0x1d8] sm:$0xff]  }
 0x80f   :  { %8890 = vmatpush3.bf16.msra.mxu0 %v9928_v9  ;;  %v9960_v9 = vld [vmem:[#allocation16 + $0x118] sm:$0xff]  }
 0x810   :  { %8912 = vmatpush3.bf16.msra.mxu1 %v9929_v36  ;;  %8891 = vmatprep.subr.bf16.mxu0 %v9930_v28  ;;  %v9961_v36 = vld [vmem:[#allocation16 + $0x198] sm:$0xff]   ;;  %v9962_v28 = vld [vmem:[#allocation16 + $0x160] sm:$0xff]  }
 0x811   :  { %8913 = vmatprep.subr.bf16.mxu1 %v9931_v31  ;;  %v9963_v31 = vld [vmem:[#allocation16 + $0x1e0] sm:$0xff]  }
 0x813   :  { %8892 = vmatpush3.bf16.msra.mxu0 %v9932_v32  ;;  %v9964_v32 = vld [vmem:[#allocation16 + $0x120] sm:$0xff]  }
 0x814   :  { %8914 = vmatpush3.bf16.msra.mxu1 %v9933_v44  ;;  %8893 = vmatprep.subr.bf16.mxu0 %v9934_v29  ;;  %v9965_v44 = vld [vmem:[#allocation16 + $0x1a0] sm:$0xff]   ;;  %v9966_v29 = vld [vmem:[#allocation16 + $0x168] sm:$0xff]  }
 0x815   :  { %8915 = vmatprep.subr.bf16.mxu1 %v9935_v34  ;;  %v9967_v34 = vld [vmem:[#allocation16 + $0x1e8] sm:$0xff]  }
 0x817   :  { %8894 = vmatpush3.bf16.msra.mxu0 %v9936_v12  ;;  %v9968_v12 = vld [vmem:[#allocation16 + $0x128] sm:$0xff]  }
 0x818   :  { %8916 = vmatpush3.bf16.msra.mxu1 %v9937_v40  ;;  %8895 = vmatprep.subr.bf16.mxu0 %v9938_v41  ;;  %v9969_v40 = vld [vmem:[#allocation16 + $0x1a8] sm:$0xff]   ;;  %v9970_v41 = vld [vmem:[#allocation16 + $0x170] sm:$0xff]  }
 0x819   :  { %8917 = vmatprep.subr.bf16.mxu1 %v9939_v39  ;;  %v9971_v39 = vld [vmem:[#allocation16 + $0x1f0] sm:$0xff]  }
 0x81b   :  { %8896 = vmatpush3.bf16.msra.mxu0 %v9940_v42  ;;  %v9972_v42 = vld [vmem:[#allocation16 + $0x130] sm:$0xff]  }
 0x81c   :  { %8918 = vmatpush3.bf16.msra.mxu1 %v9941_v45  ;;  %8897 = vmatprep.subr.bf16.mxu0 %v9942_v46  ;;  %v9973_v45 = vld [vmem:[#allocation16 + $0x1b0] sm:$0xff]   ;;  %v9974_v46 = vld [vmem:[#allocation16 + $0x178] sm:$0xff]  }
 0x81d   :  { %8919 = vmatprep.subr.bf16.mxu1 %v9943_v47  ;;  %v9975_v47 = vld [vmem:[#allocation16 + $0x1f8] sm:$0xff]  }
 0x81f   :  { %8898 = vmatpush3.bf16.msra.mxu0 %v9944_v48  ;;  %v9976_v48 = vld [vmem:[#allocation16 + $0x138] sm:$0xff]  }
 0x820   :  { %8920 = vmatpush3.bf16.msra.mxu1 %v9945_v49  ;;  %8927 = vmatprep.subr.bf16.mxu0 %v9946_v51  ;;  %v9977_v49 = vld [vmem:[#allocation16 + $0x1b8] sm:$0xff]   ;;  %v5526_v51 = vrot.slane %v10615_v54, %v259_v55 }
 0x821   :  { %8949 = vmatprep.subr.bf16.mxu1 %v9947_v0  ;;  %v5534_v0 = vrot.slane %v10615_v54, %v267_v21 }
 0x855   :  { %v6902_v61 = vpop.f32.mrb[28].mxu0  ;;  %v6984_v62 = vpop.f32.mrb[28].mxu1 }
 0x856   :  { %v8983_v1 = vadd.f32 %v6902_v61, %v5510_v56  ;;  %v8985_v4 = vadd.f32 %v6984_v62, %v5518_v57  ;;  %v6904_v5 = vpop.f32.mrb[29].mxu0  ;;  %v6986_v6 = vpop.f32.mrb[29].mxu1 }
 0x857   :  { %v8984_v7 = vadd.f32 %v6904_v5, %v5514_v58  ;;  %v8986_v8 = vadd.f32 %v6986_v6, %v5522_v60  ;;  %v6906_v33 = vpop.f32.mrb[30].mxu0  ;;  %v6988_v11 = vpop.f32.mrb[30].mxu1 }
 0x858   :  { %v7155_v13 = vmax.f32 %v8983_v1, 0.0  ;;  %v7157_v15 = vmax.f32 %v8985_v4, 0.0  ;;  %v6907_v16 = vpop.f32.mrb[31].mxu0  ;;  %v6989_v30 = vpop.f32.mrb[31].mxu1 }
 0x859   :  { %v7156_v17 = vmax.f32 %v8984_v7, 0.0  ;;  %v7158_v19 = vmax.f32 %v8986_v8, 0.0  ;;  %v7299_v16 = vld [vmem:[#allocation17 + $0x7] ss:$0 sm:$0xff] }
 0x85a   :  { %v7291_v22 = vpack.c.bf16 %v7155_v13, %v7155_v13  ;;  %v7293_v63 = vpack.c.bf16 %v7157_v15, %v7157_v15 }
 0x85b   :  { %v7292_v14 = vpack.c.bf16 %v7156_v17, %v7156_v17  ;;  %v7294_v38 = vpack.c.bf16 %v7158_v19, %v7158_v19 }
 0x85d   :  { %7716 = vmatprep.mubr.bf16.mxu0 %v7292_v14  ;;  %7756 = vmatprep.mubr.bf16.mxu1 %v7294_v38 }
 0x85e   :  { %7717 = vmatmul.mubr.bf16.vlgmr.msra.gmra.mrb[36].mxu0 %v7291_v22  ;;  %7757 = vmatmul.mubr.bf16.vlgmr.msra.gmra.mrb[36].mxu1 %v7293_v63 }
 0x85f   :  { %8928 = vmatpush3.bf16.msra.mxu0 %v9948_v20  ;;  %8950 = vmatpush3.bf16.msra.mxu1 %v9949_v18 }
 0x860   :  { %8929 = vmatprep.subr.bf16.mxu0 %v9950_v23  ;;  %8951 = vmatprep.subr.bf16.mxu1 %v9951_v24 }
 0x863   :  { %8930 = vmatpush3.bf16.msra.mxu0 %v9952_v37  ;;  %8952 = vmatpush3.bf16.msra.mxu1 %v9953_v3 }
 0x864   :  { %8931 = vmatprep.subr.bf16.mxu0 %v9954_v2  ;;  %8953 = vmatprep.subr.bf16.mxu1 %v9955_v43 }
 0x867   :  { %8932 = vmatpush3.bf16.msra.mxu0 %v9956_v25  ;;  %8954 = vmatpush3.bf16.msra.mxu1 %v9957_v26 }
 0x868   :  { %8933 = vmatprep.subr.bf16.mxu0 %v9958_v50  ;;  %8955 = vmatprep.subr.bf16.mxu1 %v9959_v27 }
 0x86b   :  { %8934 = vmatpush3.bf16.msra.mxu0 %v9960_v9  ;;  %8956 = vmatpush3.bf16.msra.mxu1 %v9961_v36 }
 0x86c   :  { %8935 = vmatprep.subr.bf16.mxu0 %v9962_v28  ;;  %8957 = vmatprep.subr.bf16.mxu1 %v9963_v31 }
 0x86f   :  { %8936 = vmatpush3.bf16.msra.mxu0 %v9964_v32  ;;  %8958 = vmatpush3.bf16.msra.mxu1 %v9965_v44 }
 0x870   :  { %8937 = vmatprep.subr.bf16.mxu0 %v9966_v29  ;;  %8959 = vmatprep.subr.bf16.mxu1 %v9967_v34 }
 0x873   :  { %8938 = vmatpush3.bf16.msra.mxu0 %v9968_v12  ;;  %8960 = vmatpush3.bf16.msra.mxu1 %v9969_v40 }
 0x874   :  { %8939 = vmatprep.subr.bf16.mxu0 %v9970_v41  ;;  %8961 = vmatprep.subr.bf16.mxu1 %v9971_v39 }
 0x877   :  { %8940 = vmatpush3.bf16.msra.mxu0 %v9972_v42  ;;  %8962 = vmatpush3.bf16.msra.mxu1 %v9973_v45 }
 0x878   :  { %8941 = vmatprep.subr.bf16.mxu0 %v9974_v46  ;;  %8963 = vmatprep.subr.bf16.mxu1 %v9975_v47 }
 0x87b   :  { %8942 = vmatpush3.bf16.msra.mxu0 %v9976_v48  ;;  %8964 = vmatpush3.bf16.msra.mxu1 %v9977_v49 }
 0x8d5   :  { %v7066_v56 = vpop.f32.mrb[32].mxu0 }
 0x8d6   :  { %v8987_v57 = vadd.f32 %v7066_v56, %v5526_v51  ;;  %v7148_v58 = vpop.f32.mrb[32].mxu1  ;;  %v7068_v60 = vpop.f32.mrb[33].mxu0 }
 0x8d7   :  { %v8989_v61 = vadd.f32 %v7148_v58, %v5534_v0  ;;  %v8988_v62 = vadd.f32 %v7068_v60, %v5530_v52  ;;  %v7150_v1 = vpop.f32.mrb[33].mxu1  ;;  %v7070_v55 = vpop.f32.mrb[34].mxu0 }
 0x8d8   :  { %v7159_v4 = vmax.f32 %v8987_v57, 0.0  ;;  %v8990_v5 = vadd.f32 %v7150_v1, %v5538_v53  ;;  %v7152_v6 = vpop.f32.mrb[34].mxu1  ;;  %v7071_v21 = vpop.f32.mrb[35].mxu0 }
 0x8d9   :  { %v7161_v7 = vmax.f32 %v8989_v61, 0.0  ;;  %v7160_v8 = vmax.f32 %v8988_v62, 0.0  ;;  %v7153_v33 = vpop.f32.mrb[35].mxu1 }
 0x8da   :  { %v7162_v35 = vmax.f32 %v8990_v5, 0.0  ;;  %v7295_v10 = vpack.c.bf16 %v7159_v4, %v7159_v4 }
 0x8db   :  { %v7296_v11 = vpack.c.bf16 %v7160_v8, %v7160_v8  ;;  %v7297_v59 = vpack.c.bf16 %v7161_v7, %v7161_v7 }
 0x8dc   :  { %v7298_v13 = vpack.c.bf16 %v7162_v35, %v7162_v35 }
 0x8dd   :  { %7796 = vmatprep.mubr.bf16.mxu0 %v7296_v11 }
 0x8de   :  { %7836 = vmatprep.mubr.bf16.mxu1 %v7298_v13  ;;  %7797 = vmatmul.mubr.bf16.vlgmr.msra.gmra.mrb[40].mxu0 %v7295_v10 }
 0x8df   :  { %7837 = vmatmul.mubr.bf16.vlgmr.msra.gmra.mrb[40].mxu1 %v7297_v59 }
 0x931   :  { %v8899_v54 = vpop.f32.mrb[36].mxu0  ;;  %v8921_v15 = vpop.f32.mrb[36].mxu1 }
 0x932   :  { %v8900_v30 = vpop.f32.mrb[37].mxu0  ;;  %v8922_v17 = vpop.f32.mrb[37].mxu1 }
 0x933   :  { %v8901_v19 = vadd.f32 %v8900_v30, %v8899_v54  ;;  %v8923_v14 = vadd.f32 %v8922_v17, %v8921_v15  ;;  %v8902_v38 = vpop.f32.mrb[38].mxu0  ;;  %v8924_v20 = vpop.f32.mrb[38].mxu1 }
 0x934   :  { %v8903_v18 = vpop.f32.mrb[39].mxu0  ;;  %v8925_v22 = vpop.f32.mrb[39].mxu1 }
 0x935   :  { %v7719_v63 = vadd.f32 %v8901_v19, %v7299_v16 }
 0x937   :  { %v7759_v23 = vadd.f32 %v8923_v14, %v7719_v63 }
 0x938   :  { %10209 = shalt.err (!%p10206_p0)
}
 0x939   :  { %s10210_s30 = scalar_lea.hbm %s10671_s10, 128 }
 0x93a   :  { %p10211_p1 = scmp.ne.s32.totalorder %s10671_s10, %s10210_s30  ;;  %p10214_p2 = scmp.lt.u32.totalorder %s10210_s30, %s10671_s10 }
 0x93c   :  { %p10216_p3 = pnand %p10214_p2, %p10211_p1 }
 0x93e   :  { %10219 = shalt.err (!%p10216_p3)
}
 0x93f   :  { %7854 = dma.vmem_to_hbm [thread:$0]  %s7852_s28, 128, %s10671_s10, [#allocation4]  }
 0x940   :  { %s10276_s27 = smov [#allocation20]  }
 0x941   :  { %s7861_s22 = sshll.u32 %s10276_s27, 4  ;;  %s7862_s22 = int_to_ptr.vmem [resolvable:$true] %s7861_s22 }
 0x942   :  { %s10220_s29 = scalar_lea.vmem %s7862_s22, 128  ;;  %p10225_p5 = scmp.lt.s32.totalorder %s7862_s22, %s7862_s22 }
 0x943   :  { %p10221_p4 = scmp.ne.s32.totalorder %s7862_s22, %s10220_s29  ;;  %p10226_p6 = scmp.lt.s32.totalorder %s10220_s29, %s10220_s29 }
 0x945   :  { %p10227_p7 = por %p10226_p6, %p10225_p5 }
 0x947   :  { %p10228_p8 = pnand %p10227_p7, %p10221_p4 }
 0x9b1   :  { %v8943_v24 = vpop.f32.mrb[40].mxu0 }
 0x9b2   :  { %v8965_v37 = vpop.f32.mrb[40].mxu1  ;;  %v8944_v3 = vpop.f32.mrb[41].mxu0 }
 0x9b3   :  { %v8945_v2 = vadd.f32 %v8944_v3, %v8943_v24  ;;  %v8966_v43 = vpop.f32.mrb[41].mxu1  ;;  %v8946_v25 = vpop.f32.mrb[42].mxu0 }
 0x9b4   :  { %v8967_v26 = vadd.f32 %v8966_v43, %v8965_v37  ;;  %v8968_v50 = vpop.f32.mrb[42].mxu1  ;;  %v8947_v27 = vpop.f32.mrb[43].mxu0 }
 0x9b5   :  { %v7799_v9 = vadd.f32 %v8945_v2, %v7759_v23  ;;  %v8969_v36 = vpop.f32.mrb[43].mxu1 }
 0x9b7   :  { %v7839_v28 = vadd.f32 %v8967_v26, %v7799_v9 }
 0x9b9   :  { %7844 = vst [vmem:[#allocation20] sm:$0xff] %v7839_v28 }
 0x9ba   :  { %10231 = shalt.err (!%p10228_p8)
}
 0x9bb   :  { %s10232_s18 = scalar_lea.hbm %s10672_s11, 128 }
 0x9bc   :  { %p10233_p9 = scmp.ne.s32.totalorder %s10672_s11, %s10232_s18  ;;  %p10236_p10 = scmp.lt.u32.totalorder %s10232_s18, %s10672_s11 }
 0x9be   :  { %p10238_p11 = pnand %p10236_p10, %p10233_p9 }
 0x9c0   :  { %10241 = shalt.err (!%p10238_p11)
}
 0x9c1   :  { %7864 = dma.vmem_to_hbm [thread:$0]  %s7862_s22, 128, %s10672_s11, [#allocation21]  }
 0x9c2   :  { %10254 = dma.done.wait [#allocation4], 128  }
 0x9c3   :  { %10255 = vsyncadd [#allocation4], 4294967168 }
 0x9c4   :  { %10256 = dma.done.wait [#allocation21], 128  }
 0x9c5   :  { %10257 = vsyncadd [#allocation21], 4294967168 }
 0x9c6   :  { %7871 = vsyncpa [#allocation3], 1 }
 0x9c7   :  { %7872 = vsyncpa [#allocation6], 1 }
 0x9c8   :  { %7873 = vsyncpa [#allocation9], 1 }
 0x9c9   :  { %7874 = vsyncpa [#allocation12], 1 }
 0x9ca   :  { %7875 = vsyncpa [#allocation15], 1 }
 0x9cb   :  { %7876 = vsyncpa [#allocation18], 1 }
 0x9cc   :  { %7877 = vsyncpa [#allocation4], 1 }
 0x9cd   :  { %7878 = vsyncpa [#allocation21], 1 }

</bundles_post_ra>
